<compile_context>
chip_gen: v6e
topology: v6e:2x2x1
jax: 0.10.0
libtpu: 0.0.40
codegen_flags: <defaults>
</compile_context>

<pallas_src>
import jax
import jax.numpy as jnp
from jax.experimental import pallas as pl
from jax.experimental.pallas import tpu as pltpu


# ---------------------------------------------------------------------------
# Kernel
# ---------------------------------------------------------------------------
def disc_kernel(x_ref, y_ref,
                w1_ref, b1_ref,
                w2_ref, b2_ref,
                w3a_ref, w3b_ref, b3_ref,
                w4_ref, b4_ref,
                o_ref):
    """One batch tile of OldDiscriminator.forward (eval-mode dropout = identity).

    w*_ref[s] holds original weight columns {j*k + s}, so
    max_s(x @ w[s] + b[s]) == MaxPool1d(k, k)(x @ W + b).
    """
    x = x_ref[...]            # (TB, 784) bf16
    y = y_ref[...]            # (TB, 9)   bf16

    # m1: Linear(784 -> 1200) + MaxPool1d(5, 5) -> (TB, 240), f32
    h1 = None
    for s in range(5):
        t = jnp.dot(x, w1_ref[s], preferred_element_type=jnp.float32) + b1_ref[s]
        h1 = t if h1 is None else jnp.maximum(h1, t)

    # m2: Linear(9 -> 250) + MaxPool1d(5, 5) -> (TB, 50), f32
    h2 = None
    for s in range(5):
        t = jnp.dot(y, w2_ref[s], preferred_element_type=jnp.float32) + b2_ref[s]
        h2 = t if h2 is None else jnp.maximum(h2, t)

    # Dropout(0.5) in eval mode is the identity.
    h1b = h1.astype(jnp.bfloat16)
    h2b = h2.astype(jnp.bfloat16)

    # m3: Linear(290 -> 960) + MaxPool1d(4, 4) -> (TB, 240), f32.
    # concat([h1, h2]) @ W3  ==  h1 @ W3[:240] + h2 @ W3[240:]  (no concat).
    h3 = None
    for s in range(4):
        t = (jnp.dot(h1b, w3a_ref[s], preferred_element_type=jnp.float32)
             + jnp.dot(h2b, w3b_ref[s], preferred_element_type=jnp.float32)
             + b3_ref[s])
        h3 = t if h3 is None else jnp.maximum(h3, t)

    # m4: Linear(240 -> 1) on the VPU/XLU (N=1 MXU pass would be wasted).
    logit = jnp.sum(h3 * w4_ref[...], axis=-1, keepdims=True) + b4_ref[...]  # (TB, 1)
    # Lane-dense store: one cheap transpose -> (1, TB) row per tile.
    o_ref[...] = logit.T.reshape(1, 1, -1).astype(o_ref.dtype)


# ---------------------------------------------------------------------------
# Wrapper / parameter preprocessing
# ---------------------------------------------------------------------------
def _round_up(n, m):
    return (n + m - 1) // m * m


def _choose_tiling(B, tile_hint):
    """Pick (tile_b, b_pad, n_tiles).

    tile_b is 16-aligned (bf16 sublane pack). Small batches are split into two
    equal tiles and large batches get an even tile count so both v7x
    TensorCores receive balanced work; large tiles keep the MXU M-dim full and
    amortize the ~0.35 us/step pipeline overhead.
    """
    b16 = _round_up(max(B, 1), 16)
    tile_hint = max(16, _round_up(tile_hint, 16))
    if b16 <= 16:
        return 16, 16, 1                       # nothing to shard
    n = -(-b16 // tile_hint)                   # tiles at the hint size
    if n == 1:
        n = 2                                  # split across both v7x TCs
    elif n % 2:
        n += 1                                 # keep grid length even
    tile_b = _round_up(-(-b16 // n), 16)
    return tile_b, n * tile_b, n


def preprocess_params(params):
    """Permute / split / cast the f32 nn.Linear params into the kernel layout."""
    w1, b1, w2, b2, w3, b3, w4, b4 = params

    def pool_layout(w, b, k):
        fin, fout = w.shape
        # wp[s, :, j] = w[:, j*k + s]   /   bp[s, 0, j] = b[0, j*k + s]
        wp = w.reshape(fin, fout // k, k).transpose(2, 0, 1)      # (k, fin, fout//k)
        bp = b.reshape(fout // k, k).T.reshape(k, 1, fout // k)   # (k, 1,  fout//k)
        return wp.astype(jnp.bfloat16), bp.astype(jnp.float32)

    w1p, b1p = pool_layout(w1, b1, 5)          # (5, 784, 240), (5, 1, 240)
    w2p, b2p = pool_layout(w2, b2, 5)          # (5,   9,  50), (5, 1,  50)
    w3p, b3p = pool_layout(w3, b3, 4)          # (4, 290, 240), (4, 1, 240)
    w3a = w3p[:, :240, :]                      # rows multiplied by h1
    w3b = w3p[:, 240:, :]                      # rows multiplied by h2
    w4row = w4.reshape(1, 240).astype(jnp.float32)
    b4r = b4.reshape(1, 1).astype(jnp.float32)
    return (w1p, b1p, w2p, b2p, w3a, w3b, b3p, w4row, b4r)


def old_discriminator_forward(x, y, params, *, tile_b=512):
    """x: (B, 784) f32, y: (B, 9) f32 -> (B, 1) f32 logits (eval-mode dropout)."""
    B = x.shape[0]
    tile_b, b_pad, n_tiles = _choose_tiling(B, tile_b)
    if b_pad != B:
        x = jnp.pad(x, ((0, b_pad - B), (0, 0)))
        y = jnp.pad(y, ((0, b_pad - B), (0, 0)))
    xb = x.astype(jnp.bfloat16)
    yb = y.astype(jnp.bfloat16)
    kparams = preprocess_params(params)

    def const_spec(p):
        # Grid-invariant -> never re-DMA'd; single-buffer to save VMEM.
        nd = p.ndim
        return pl.BlockSpec(p.shape, lambda i, _n=nd: (0,) * _n,
                            pipeline_mode=pl.Buffered(1))

    in_specs = [
        pl.BlockSpec((tile_b, 784), lambda i: (i, 0)),
        pl.BlockSpec((tile_b, 9), lambda i: (i, 0)),
    ] + [const_spec(p) for p in kparams]
    # Lane-dense output: (n_tiles, 1, tile_b); last two block dims == full dims.
    out_specs = pl.BlockSpec((1, 1, tile_b), lambda i: (i, 0, 0))

    weight_bytes = sum(int(p.size) * p.dtype.itemsize for p in kparams)
    flops = 2 * b_pad * (784 * 1200 + 9 * 250 + 290 * 960 + 240)
    bytes_accessed = weight_bytes + b_pad * (784 + 9) * 2 + b_pad * 4

    out = pl.pallas_call(
        disc_kernel,
        out_shape=jax.ShapeDtypeStruct((n_tiles, 1, tile_b), jnp.float32),
        grid=(n_tiles,),
        in_specs=in_specs,
        out_specs=out_specs,
        compiler_params=pltpu.CompilerParams(
            dimension_semantics=("parallel",),
            vmem_limit_bytes=32 << 20,
        ),
        cost_estimate=pl.CostEstimate(
            flops=flops, transcendentals=0, bytes_accessed=bytes_accessed),
    )(xb, yb, *kparams)
    return out.reshape(b_pad)[:B].reshape(B, 1)


# ---------------------------------------------------------------------------
# Synthetic parameters + pure-JAX reference
# ---------------------------------------------------------------------------
def init_params(key):
    """Deterministic synthetic parameters with the module's shapes.
    Weights are (in, out); biases are (1, out)."""
    def linear(k, fan_in, fan_out):
        kw, kb = jax.random.split(k)
        lim = 1.0 / jnp.sqrt(fan_in)
        w = jax.random.uniform(kw, (fan_in, fan_out), jnp.float32, -lim, lim)
        b = jax.random.uniform(kb, (1, fan_out), jnp.float32, -lim, lim)
        return w, b

    k1, k2, k3, k4 = jax.random.split(key, 4)
    w1, b1 = linear(k1, 784, 1200)
    w2, b2 = linear(k2, 9, 250)
    w3, b3 = linear(k3, 290, 960)
    w4, b4 = linear(k4, 240, 1)
    return (w1, b1, w2, b2, w3, b3, w4, b4)


def _maxpool1d(h, k):
    b, f = h.shape
    return jnp.max(h.reshape(b, f // k, k), axis=-1)


def reference_forward(x, y, params):
    """Pure-JAX reference with the same bf16-in / f32-accumulate matmul policy,
    using the original (unpermuted, unsplit) weight layout."""
    w1, b1, w2, b2, w3, b3, w4, b4 = params
    bf = jnp.bfloat16
    h1 = _maxpool1d(jnp.dot(x.astype(bf), w1.astype(bf),
                            preferred_element_type=jnp.float32) + b1, 5)
    h2 = _maxpool1d(jnp.dot(y.astype(bf), w2.astype(bf),
                            preferred_element_type=jnp.float32) + b2, 5)
    h = jnp.concatenate([h1, h2], axis=-1)
    h3 = _maxpool1d(jnp.dot(h.astype(bf), w3.astype(bf),
                            preferred_element_type=jnp.float32) + b3, 4)
    return (h3 @ w4 + b4).reshape(-1, 1)


if __name__ == "__main__":
    key = jax.random.PRNGKey(0)
    kx, ky, kp = jax.random.split(key, 3)

    # X enters the module as arbitrary shape and is viewed as (-1, 1, 784);
    # generate (B, 28, 28) images and flatten. B is deliberately not a
    # multiple of 16 to exercise padding; the tiling logic turns B=20 into
    # two 16-row tiles (even grid -> both v7x TensorCores busy).
    B = 20
    X_img = jax.random.normal(kx, (B, 28, 28), jnp.float32)
    X = X_img.reshape(B, 784)
    Y = jax.random.normal(ky, (B, 9), jnp.float32)

    params = init_params(kp)

    out = old_discriminator_forward(X, Y, params)
    out = jax.block_until_ready(out)

    ref = reference_forward(X, Y, params)
    assert out.shape == (B, 1), out.shape
    assert jnp.allclose(out, ref, atol=2e-3, rtol=2e-3), (out, ref)

    print("KERNEL_OK")
</pallas_src>

<mosaic_0001>
module attributes {stable_mosaic.version = 11 : i64} {
  func.func @disc_kernel(%arg0: i32, %arg1: memref<16x784xbf16, #tpu.memory_space<vmem>>, %arg2: memref<16x9xbf16, #tpu.memory_space<vmem>>, %arg3: memref<5x784x240xbf16, #tpu.memory_space<vmem>>, %arg4: memref<5x1x240xf32, #tpu.memory_space<vmem>>, %arg5: memref<5x9x50xbf16, #tpu.memory_space<vmem>>, %arg6: memref<5x1x50xf32, #tpu.memory_space<vmem>>, %arg7: memref<4x240x240xbf16, #tpu.memory_space<vmem>>, %arg8: memref<4x50x240xbf16, #tpu.memory_space<vmem>>, %arg9: memref<4x1x240xf32, #tpu.memory_space<vmem>>, %arg10: memref<1x240xf32, #tpu.memory_space<vmem>>, %arg11: memref<1x1xf32, #tpu.memory_space<vmem>>, %arg12: memref<1x1x16xf32, #tpu.memory_space<vmem>>) attributes {dimension_semantics = [#tpu.dimension_semantics<parallel>], iteration_bounds = array<i64: 2>, scalar_prefetch = 0 : i64, scratch_operands = 0 : i64, tpu.core_type = #tpu.core_type<tc>, window_params = [{transform_indices = @transform_0, window_bounds = array<i64: 16, 784>}, {transform_indices = @transform_1, window_bounds = array<i64: 16, 9>}, {pipeline_mode = #tpu.pipeline_mode<synchronous>, transform_indices = @transform_2, window_bounds = array<i64: 5, 784, 240>}, {pipeline_mode = #tpu.pipeline_mode<synchronous>, transform_indices = @transform_3, window_bounds = array<i64: 5, 1, 240>}, {pipeline_mode = #tpu.pipeline_mode<synchronous>, transform_indices = @transform_4, window_bounds = array<i64: 5, 9, 50>}, {pipeline_mode = #tpu.pipeline_mode<synchronous>, transform_indices = @transform_5, window_bounds = array<i64: 5, 1, 50>}, {pipeline_mode = #tpu.pipeline_mode<synchronous>, transform_indices = @transform_6, window_bounds = array<i64: 4, 240, 240>}, {pipeline_mode = #tpu.pipeline_mode<synchronous>, transform_indices = @transform_7, window_bounds = array<i64: 4, 50, 240>}, {pipeline_mode = #tpu.pipeline_mode<synchronous>, transform_indices = @transform_8, window_bounds = array<i64: 4, 1, 240>}, {pipeline_mode = #tpu.pipeline_mode<synchronous>, transform_indices = @transform_9, window_bounds = array<i64: 1, 240>}, {pipeline_mode = #tpu.pipeline_mode<synchronous>, transform_indices = @transform_10, window_bounds = array<i64: 1, 1>}, {transform_indices = @transform_11, window_bounds = array<i64: 1, 1, 16>}]} {
    %c0 = arith.constant 0 : index
    %c0_0 = arith.constant 0 : index
    %0 = vector.load %arg1[%c0, %c0_0] : memref<16x784xbf16, #tpu.memory_space<vmem>>, vector<16x784xbf16>
    %c0_1 = arith.constant 0 : index
    %c0_2 = arith.constant 0 : index
    %1 = vector.load %arg2[%c0_1, %c0_2] : memref<16x9xbf16, #tpu.memory_space<vmem>>, vector<16x9xbf16>
    %c0_3 = arith.constant 0 : index
    %c0_4 = arith.constant 0 : index
    %c0_5 = arith.constant 0 : index
    %2 = vector.load %arg3[%c0_3, %c0_4, %c0_5] : memref<5x784x240xbf16, #tpu.memory_space<vmem>>, vector<1x784x240xbf16>
    %3 = vector.shape_cast %2 : vector<1x784x240xbf16> to vector<784x240xbf16>
    %cst = arith.constant dense<0.000000e+00> : vector<16x240xf32>
    %4 = tpu.matmul %0, %3, %cst {dimension_numbers = #tpu.dot_dimension_numbers<[1], [0], [0], [1], [0, 0, 1, 1], [], []>} : vector<16x784xbf16>, vector<784x240xbf16>, vector<16x240xf32> -> vector<16x240xf32>
    %c0_6 = arith.constant 0 : index
    %c0_7 = arith.constant 0 : index
    %c0_8 = arith.constant 0 : index
    %5 = vector.load %arg4[%c0_6, %c0_7, %c0_8] : memref<5x1x240xf32, #tpu.memory_space<vmem>>, vector<1x1x240xf32>
    %6 = vector.shape_cast %5 : vector<1x1x240xf32> to vector<1x240xf32>
    %7 = vector.broadcast %6 : vector<1x240xf32> to vector<16x240xf32>
    %8 = arith.addf %4, %7 : vector<16x240xf32>
    %c1 = arith.constant 1 : index
    %c0_9 = arith.constant 0 : index
    %c0_10 = arith.constant 0 : index
    %9 = vector.load %arg3[%c1, %c0_9, %c0_10] : memref<5x784x240xbf16, #tpu.memory_space<vmem>>, vector<1x784x240xbf16>
    %10 = vector.shape_cast %9 : vector<1x784x240xbf16> to vector<784x240xbf16>
    %cst_11 = arith.constant dense<0.000000e+00> : vector<16x240xf32>
    %11 = tpu.matmul %0, %10, %cst_11 {dimension_numbers = #tpu.dot_dimension_numbers<[1], [0], [0], [1], [0, 0, 1, 1], [], []>} : vector<16x784xbf16>, vector<784x240xbf16>, vector<16x240xf32> -> vector<16x240xf32>
    %c1_12 = arith.constant 1 : index
    %c0_13 = arith.constant 0 : index
    %c0_14 = arith.constant 0 : index
    %12 = vector.load %arg4[%c1_12, %c0_13, %c0_14] : memref<5x1x240xf32, #tpu.memory_space<vmem>>, vector<1x1x240xf32>
    %13 = vector.shape_cast %12 : vector<1x1x240xf32> to vector<1x240xf32>
    %14 = vector.broadcast %13 : vector<1x240xf32> to vector<16x240xf32>
    %15 = arith.addf %11, %14 : vector<16x240xf32>
    %16 = arith.maximumf %8, %15 : vector<16x240xf32>
    %c2 = arith.constant 2 : index
    %c0_15 = arith.constant 0 : index
    %c0_16 = arith.constant 0 : index
    %17 = vector.load %arg3[%c2, %c0_15, %c0_16] : memref<5x784x240xbf16, #tpu.memory_space<vmem>>, vector<1x784x240xbf16>
    %18 = vector.shape_cast %17 : vector<1x784x240xbf16> to vector<784x240xbf16>
    %cst_17 = arith.constant dense<0.000000e+00> : vector<16x240xf32>
    %19 = tpu.matmul %0, %18, %cst_17 {dimension_numbers = #tpu.dot_dimension_numbers<[1], [0], [0], [1], [0, 0, 1, 1], [], []>} : vector<16x784xbf16>, vector<784x240xbf16>, vector<16x240xf32> -> vector<16x240xf32>
    %c2_18 = arith.constant 2 : index
    %c0_19 = arith.constant 0 : index
    %c0_20 = arith.constant 0 : index
    %20 = vector.load %arg4[%c2_18, %c0_19, %c0_20] : memref<5x1x240xf32, #tpu.memory_space<vmem>>, vector<1x1x240xf32>
    %21 = vector.shape_cast %20 : vector<1x1x240xf32> to vector<1x240xf32>
    %22 = vector.broadcast %21 : vector<1x240xf32> to vector<16x240xf32>
    %23 = arith.addf %19, %22 : vector<16x240xf32>
    %24 = arith.maximumf %16, %23 : vector<16x240xf32>
    %c3 = arith.constant 3 : index
    %c0_21 = arith.constant 0 : index
    %c0_22 = arith.constant 0 : index
    %25 = vector.load %arg3[%c3, %c0_21, %c0_22] : memref<5x784x240xbf16, #tpu.memory_space<vmem>>, vector<1x784x240xbf16>
    %26 = vector.shape_cast %25 : vector<1x784x240xbf16> to vector<784x240xbf16>
    %cst_23 = arith.constant dense<0.000000e+00> : vector<16x240xf32>
    %27 = tpu.matmul %0, %26, %cst_23 {dimension_numbers = #tpu.dot_dimension_numbers<[1], [0], [0], [1], [0, 0, 1, 1], [], []>} : vector<16x784xbf16>, vector<784x240xbf16>, vector<16x240xf32> -> vector<16x240xf32>
    %c3_24 = arith.constant 3 : index
    %c0_25 = arith.constant 0 : index
    %c0_26 = arith.constant 0 : index
    %28 = vector.load %arg4[%c3_24, %c0_25, %c0_26] : memref<5x1x240xf32, #tpu.memory_space<vmem>>, vector<1x1x240xf32>
    %29 = vector.shape_cast %28 : vector<1x1x240xf32> to vector<1x240xf32>
    %30 = vector.broadcast %29 : vector<1x240xf32> to vector<16x240xf32>
    %31 = arith.addf %27, %30 : vector<16x240xf32>
    %32 = arith.maximumf %24, %31 : vector<16x240xf32>
    %c4 = arith.constant 4 : index
    %c0_27 = arith.constant 0 : index
    %c0_28 = arith.constant 0 : index
    %33 = vector.load %arg3[%c4, %c0_27, %c0_28] : memref<5x784x240xbf16, #tpu.memory_space<vmem>>, vector<1x784x240xbf16>
    %34 = vector.shape_cast %33 : vector<1x784x240xbf16> to vector<784x240xbf16>
    %cst_29 = arith.constant dense<0.000000e+00> : vector<16x240xf32>
    %35 = tpu.matmul %0, %34, %cst_29 {dimension_numbers = #tpu.dot_dimension_numbers<[1], [0], [0], [1], [0, 0, 1, 1], [], []>} : vector<16x784xbf16>, vector<784x240xbf16>, vector<16x240xf32> -> vector<16x240xf32>
    %c4_30 = arith.constant 4 : index
    %c0_31 = arith.constant 0 : index
    %c0_32 = arith.constant 0 : index
    %36 = vector.load %arg4[%c4_30, %c0_31, %c0_32] : memref<5x1x240xf32, #tpu.memory_space<vmem>>, vector<1x1x240xf32>
    %37 = vector.shape_cast %36 : vector<1x1x240xf32> to vector<1x240xf32>
    %38 = vector.broadcast %37 : vector<1x240xf32> to vector<16x240xf32>
    %39 = arith.addf %35, %38 : vector<16x240xf32>
    %40 = arith.maximumf %32, %39 : vector<16x240xf32>
    %c0_33 = arith.constant 0 : index
    %c0_34 = arith.constant 0 : index
    %c0_35 = arith.constant 0 : index
    %41 = vector.load %arg5[%c0_33, %c0_34, %c0_35] : memref<5x9x50xbf16, #tpu.memory_space<vmem>>, vector<1x9x50xbf16>
    %42 = vector.shape_cast %41 : vector<1x9x50xbf16> to vector<9x50xbf16>
    %cst_36 = arith.constant dense<0.000000e+00> : vector<16x50xf32>
    %43 = tpu.matmul %1, %42, %cst_36 {dimension_numbers = #tpu.dot_dimension_numbers<[1], [0], [0], [1], [0, 0, 1, 1], [], []>} : vector<16x9xbf16>, vector<9x50xbf16>, vector<16x50xf32> -> vector<16x50xf32>
    %c0_37 = arith.constant 0 : index
    %c0_38 = arith.constant 0 : index
    %c0_39 = arith.constant 0 : index
    %44 = vector.load %arg6[%c0_37, %c0_38, %c0_39] : memref<5x1x50xf32, #tpu.memory_space<vmem>>, vector<1x1x50xf32>
    %45 = vector.shape_cast %44 : vector<1x1x50xf32> to vector<1x50xf32>
    %46 = vector.broadcast %45 : vector<1x50xf32> to vector<16x50xf32>
    %47 = arith.addf %43, %46 : vector<16x50xf32>
    %c1_40 = arith.constant 1 : index
    %c0_41 = arith.constant 0 : index
    %c0_42 = arith.constant 0 : index
    %48 = vector.load %arg5[%c1_40, %c0_41, %c0_42] : memref<5x9x50xbf16, #tpu.memory_space<vmem>>, vector<1x9x50xbf16>
    %49 = vector.shape_cast %48 : vector<1x9x50xbf16> to vector<9x50xbf16>
    %cst_43 = arith.constant dense<0.000000e+00> : vector<16x50xf32>
    %50 = tpu.matmul %1, %49, %cst_43 {dimension_numbers = #tpu.dot_dimension_numbers<[1], [0], [0], [1], [0, 0, 1, 1], [], []>} : vector<16x9xbf16>, vector<9x50xbf16>, vector<16x50xf32> -> vector<16x50xf32>
    %c1_44 = arith.constant 1 : index
    %c0_45 = arith.constant 0 : index
    %c0_46 = arith.constant 0 : index
    %51 = vector.load %arg6[%c1_44, %c0_45, %c0_46] : memref<5x1x50xf32, #tpu.memory_space<vmem>>, vector<1x1x50xf32>
    %52 = vector.shape_cast %51 : vector<1x1x50xf32> to vector<1x50xf32>
    %53 = vector.broadcast %52 : vector<1x50xf32> to vector<16x50xf32>
    %54 = arith.addf %50, %53 : vector<16x50xf32>
    %55 = arith.maximumf %47, %54 : vector<16x50xf32>
    %c2_47 = arith.constant 2 : index
    %c0_48 = arith.constant 0 : index
    %c0_49 = arith.constant 0 : index
    %56 = vector.load %arg5[%c2_47, %c0_48, %c0_49] : memref<5x9x50xbf16, #tpu.memory_space<vmem>>, vector<1x9x50xbf16>
    %57 = vector.shape_cast %56 : vector<1x9x50xbf16> to vector<9x50xbf16>
    %cst_50 = arith.constant dense<0.000000e+00> : vector<16x50xf32>
    %58 = tpu.matmul %1, %57, %cst_50 {dimension_numbers = #tpu.dot_dimension_numbers<[1], [0], [0], [1], [0, 0, 1, 1], [], []>} : vector<16x9xbf16>, vector<9x50xbf16>, vector<16x50xf32> -> vector<16x50xf32>
    %c2_51 = arith.constant 2 : index
    %c0_52 = arith.constant 0 : index
    %c0_53 = arith.constant 0 : index
    %59 = vector.load %arg6[%c2_51, %c0_52, %c0_53] : memref<5x1x50xf32, #tpu.memory_space<vmem>>, vector<1x1x50xf32>
    %60 = vector.shape_cast %59 : vector<1x1x50xf32> to vector<1x50xf32>
    %61 = vector.broadcast %60 : vector<1x50xf32> to vector<16x50xf32>
    %62 = arith.addf %58, %61 : vector<16x50xf32>
    %63 = arith.maximumf %55, %62 : vector<16x50xf32>
    %c3_54 = arith.constant 3 : index
    %c0_55 = arith.constant 0 : index
    %c0_56 = arith.constant 0 : index
    %64 = vector.load %arg5[%c3_54, %c0_55, %c0_56] : memref<5x9x50xbf16, #tpu.memory_space<vmem>>, vector<1x9x50xbf16>
    %65 = vector.shape_cast %64 : vector<1x9x50xbf16> to vector<9x50xbf16>
    %cst_57 = arith.constant dense<0.000000e+00> : vector<16x50xf32>
    %66 = tpu.matmul %1, %65, %cst_57 {dimension_numbers = #tpu.dot_dimension_numbers<[1], [0], [0], [1], [0, 0, 1, 1], [], []>} : vector<16x9xbf16>, vector<9x50xbf16>, vector<16x50xf32> -> vector<16x50xf32>
    %c3_58 = arith.constant 3 : index
    %c0_59 = arith.constant 0 : index
    %c0_60 = arith.constant 0 : index
    %67 = vector.load %arg6[%c3_58, %c0_59, %c0_60] : memref<5x1x50xf32, #tpu.memory_space<vmem>>, vector<1x1x50xf32>
    %68 = vector.shape_cast %67 : vector<1x1x50xf32> to vector<1x50xf32>
    %69 = vector.broadcast %68 : vector<1x50xf32> to vector<16x50xf32>
    %70 = arith.addf %66, %69 : vector<16x50xf32>
    %71 = arith.maximumf %63, %70 : vector<16x50xf32>
    %c4_61 = arith.constant 4 : index
    %c0_62 = arith.constant 0 : index
    %c0_63 = arith.constant 0 : index
    %72 = vector.load %arg5[%c4_61, %c0_62, %c0_63] : memref<5x9x50xbf16, #tpu.memory_space<vmem>>, vector<1x9x50xbf16>
    %73 = vector.shape_cast %72 : vector<1x9x50xbf16> to vector<9x50xbf16>
    %cst_64 = arith.constant dense<0.000000e+00> : vector<16x50xf32>
    %74 = tpu.matmul %1, %73, %cst_64 {dimension_numbers = #tpu.dot_dimension_numbers<[1], [0], [0], [1], [0, 0, 1, 1], [], []>} : vector<16x9xbf16>, vector<9x50xbf16>, vector<16x50xf32> -> vector<16x50xf32>
    %c4_65 = arith.constant 4 : index
    %c0_66 = arith.constant 0 : index
    %c0_67 = arith.constant 0 : index
    %75 = vector.load %arg6[%c4_65, %c0_66, %c0_67] : memref<5x1x50xf32, #tpu.memory_space<vmem>>, vector<1x1x50xf32>
    %76 = vector.shape_cast %75 : vector<1x1x50xf32> to vector<1x50xf32>
    %77 = vector.broadcast %76 : vector<1x50xf32> to vector<16x50xf32>
    %78 = arith.addf %74, %77 : vector<16x50xf32>
    %79 = arith.maximumf %71, %78 : vector<16x50xf32>
    %80 = arith.truncf %40 : vector<16x240xf32> to vector<16x240xbf16>
    %81 = arith.truncf %79 : vector<16x50xf32> to vector<16x50xbf16>
    %c0_68 = arith.constant 0 : index
    %c0_69 = arith.constant 0 : index
    %c0_70 = arith.constant 0 : index
    %82 = vector.load %arg7[%c0_68, %c0_69, %c0_70] : memref<4x240x240xbf16, #tpu.memory_space<vmem>>, vector<1x240x240xbf16>
    %83 = vector.shape_cast %82 : vector<1x240x240xbf16> to vector<240x240xbf16>
    %cst_71 = arith.constant dense<0.000000e+00> : vector<16x240xf32>
    %84 = tpu.matmul %80, %83, %cst_71 {dimension_numbers = #tpu.dot_dimension_numbers<[1], [0], [0], [1], [0, 0, 1, 1], [], []>} : vector<16x240xbf16>, vector<240x240xbf16>, vector<16x240xf32> -> vector<16x240xf32>
    %c0_72 = arith.constant 0 : index
    %c0_73 = arith.constant 0 : index
    %c0_74 = arith.constant 0 : index
    %85 = vector.load %arg8[%c0_72, %c0_73, %c0_74] : memref<4x50x240xbf16, #tpu.memory_space<vmem>>, vector<1x50x240xbf16>
    %86 = vector.shape_cast %85 : vector<1x50x240xbf16> to vector<50x240xbf16>
    %cst_75 = arith.constant dense<0.000000e+00> : vector<16x240xf32>
    %87 = tpu.matmul %81, %86, %cst_75 {dimension_numbers = #tpu.dot_dimension_numbers<[1], [0], [0], [1], [0, 0, 1, 1], [], []>} : vector<16x50xbf16>, vector<50x240xbf16>, vector<16x240xf32> -> vector<16x240xf32>
    %88 = arith.addf %84, %87 : vector<16x240xf32>
    %c0_76 = arith.constant 0 : index
    %c0_77 = arith.constant 0 : index
    %c0_78 = arith.constant 0 : index
    %89 = vector.load %arg9[%c0_76, %c0_77, %c0_78] : memref<4x1x240xf32, #tpu.memory_space<vmem>>, vector<1x1x240xf32>
    %90 = vector.shape_cast %89 : vector<1x1x240xf32> to vector<1x240xf32>
    %91 = vector.broadcast %90 : vector<1x240xf32> to vector<16x240xf32>
    %92 = arith.addf %88, %91 : vector<16x240xf32>
    %c1_79 = arith.constant 1 : index
    %c0_80 = arith.constant 0 : index
    %c0_81 = arith.constant 0 : index
    %93 = vector.load %arg7[%c1_79, %c0_80, %c0_81] : memref<4x240x240xbf16, #tpu.memory_space<vmem>>, vector<1x240x240xbf16>
    %94 = vector.shape_cast %93 : vector<1x240x240xbf16> to vector<240x240xbf16>
    %cst_82 = arith.constant dense<0.000000e+00> : vector<16x240xf32>
    %95 = tpu.matmul %80, %94, %cst_82 {dimension_numbers = #tpu.dot_dimension_numbers<[1], [0], [0], [1], [0, 0, 1, 1], [], []>} : vector<16x240xbf16>, vector<240x240xbf16>, vector<16x240xf32> -> vector<16x240xf32>
    %c1_83 = arith.constant 1 : index
    %c0_84 = arith.constant 0 : index
    %c0_85 = arith.constant 0 : index
    %96 = vector.load %arg8[%c1_83, %c0_84, %c0_85] : memref<4x50x240xbf16, #tpu.memory_space<vmem>>, vector<1x50x240xbf16>
    %97 = vector.shape_cast %96 : vector<1x50x240xbf16> to vector<50x240xbf16>
    %cst_86 = arith.constant dense<0.000000e+00> : vector<16x240xf32>
    %98 = tpu.matmul %81, %97, %cst_86 {dimension_numbers = #tpu.dot_dimension_numbers<[1], [0], [0], [1], [0, 0, 1, 1], [], []>} : vector<16x50xbf16>, vector<50x240xbf16>, vector<16x240xf32> -> vector<16x240xf32>
    %99 = arith.addf %95, %98 : vector<16x240xf32>
    %c1_87 = arith.constant 1 : index
    %c0_88 = arith.constant 0 : index
    %c0_89 = arith.constant 0 : index
    %100 = vector.load %arg9[%c1_87, %c0_88, %c0_89] : memref<4x1x240xf32, #tpu.memory_space<vmem>>, vector<1x1x240xf32>
    %101 = vector.shape_cast %100 : vector<1x1x240xf32> to vector<1x240xf32>
    %102 = vector.broadcast %101 : vector<1x240xf32> to vector<16x240xf32>
    %103 = arith.addf %99, %102 : vector<16x240xf32>
    %104 = arith.maximumf %92, %103 : vector<16x240xf32>
    %c2_90 = arith.constant 2 : index
    %c0_91 = arith.constant 0 : index
    %c0_92 = arith.constant 0 : index
    %105 = vector.load %arg7[%c2_90, %c0_91, %c0_92] : memref<4x240x240xbf16, #tpu.memory_space<vmem>>, vector<1x240x240xbf16>
    %106 = vector.shape_cast %105 : vector<1x240x240xbf16> to vector<240x240xbf16>
    %cst_93 = arith.constant dense<0.000000e+00> : vector<16x240xf32>
    %107 = tpu.matmul %80, %106, %cst_93 {dimension_numbers = #tpu.dot_dimension_numbers<[1], [0], [0], [1], [0, 0, 1, 1], [], []>} : vector<16x240xbf16>, vector<240x240xbf16>, vector<16x240xf32> -> vector<16x240xf32>
    %c2_94 = arith.constant 2 : index
    %c0_95 = arith.constant 0 : index
    %c0_96 = arith.constant 0 : index
    %108 = vector.load %arg8[%c2_94, %c0_95, %c0_96] : memref<4x50x240xbf16, #tpu.memory_space<vmem>>, vector<1x50x240xbf16>
    %109 = vector.shape_cast %108 : vector<1x50x240xbf16> to vector<50x240xbf16>
    %cst_97 = arith.constant dense<0.000000e+00> : vector<16x240xf32>
    %110 = tpu.matmul %81, %109, %cst_97 {dimension_numbers = #tpu.dot_dimension_numbers<[1], [0], [0], [1], [0, 0, 1, 1], [], []>} : vector<16x50xbf16>, vector<50x240xbf16>, vector<16x240xf32> -> vector<16x240xf32>
    %111 = arith.addf %107, %110 : vector<16x240xf32>
    %c2_98 = arith.constant 2 : index
    %c0_99 = arith.constant 0 : index
    %c0_100 = arith.constant 0 : index
    %112 = vector.load %arg9[%c2_98, %c0_99, %c0_100] : memref<4x1x240xf32, #tpu.memory_space<vmem>>, vector<1x1x240xf32>
    %113 = vector.shape_cast %112 : vector<1x1x240xf32> to vector<1x240xf32>
    %114 = vector.broadcast %113 : vector<1x240xf32> to vector<16x240xf32>
    %115 = arith.addf %111, %114 : vector<16x240xf32>
    %116 = arith.maximumf %104, %115 : vector<16x240xf32>
    %c3_101 = arith.constant 3 : index
    %c0_102 = arith.constant 0 : index
    %c0_103 = arith.constant 0 : index
    %117 = vector.load %arg7[%c3_101, %c0_102, %c0_103] : memref<4x240x240xbf16, #tpu.memory_space<vmem>>, vector<1x240x240xbf16>
    %118 = vector.shape_cast %117 : vector<1x240x240xbf16> to vector<240x240xbf16>
    %cst_104 = arith.constant dense<0.000000e+00> : vector<16x240xf32>
    %119 = tpu.matmul %80, %118, %cst_104 {dimension_numbers = #tpu.dot_dimension_numbers<[1], [0], [0], [1], [0, 0, 1, 1], [], []>} : vector<16x240xbf16>, vector<240x240xbf16>, vector<16x240xf32> -> vector<16x240xf32>
    %c3_105 = arith.constant 3 : index
    %c0_106 = arith.constant 0 : index
    %c0_107 = arith.constant 0 : index
    %120 = vector.load %arg8[%c3_105, %c0_106, %c0_107] : memref<4x50x240xbf16, #tpu.memory_space<vmem>>, vector<1x50x240xbf16>
    %121 = vector.shape_cast %120 : vector<1x50x240xbf16> to vector<50x240xbf16>
    %cst_108 = arith.constant dense<0.000000e+00> : vector<16x240xf32>
    %122 = tpu.matmul %81, %121, %cst_108 {dimension_numbers = #tpu.dot_dimension_numbers<[1], [0], [0], [1], [0, 0, 1, 1], [], []>} : vector<16x50xbf16>, vector<50x240xbf16>, vector<16x240xf32> -> vector<16x240xf32>
    %123 = arith.addf %119, %122 : vector<16x240xf32>
    %c3_109 = arith.constant 3 : index
    %c0_110 = arith.constant 0 : index
    %c0_111 = arith.constant 0 : index
    %124 = vector.load %arg9[%c3_109, %c0_110, %c0_111] : memref<4x1x240xf32, #tpu.memory_space<vmem>>, vector<1x1x240xf32>
    %125 = vector.shape_cast %124 : vector<1x1x240xf32> to vector<1x240xf32>
    %126 = vector.broadcast %125 : vector<1x240xf32> to vector<16x240xf32>
    %127 = arith.addf %123, %126 : vector<16x240xf32>
    %128 = arith.maximumf %116, %127 : vector<16x240xf32>
    %c0_112 = arith.constant 0 : index
    %c0_113 = arith.constant 0 : index
    %129 = vector.load %arg10[%c0_112, %c0_113] : memref<1x240xf32, #tpu.memory_space<vmem>>, vector<1x240xf32>
    %130 = vector.broadcast %129 : vector<1x240xf32> to vector<16x240xf32>
    %131 = arith.mulf %128, %130 : vector<16x240xf32>
    %cst_114 = arith.constant dense<0.000000e+00> : vector<16xf32>
    %132 = vector.multi_reduction <add>, %131, %cst_114 [1] : vector<16x240xf32> to vector<16xf32>
    %133 = vector.shape_cast %132 : vector<16xf32> to vector<16x1xf32>
    %c0_115 = arith.constant 0 : index
    %c0_116 = arith.constant 0 : index
    %134 = vector.load %arg11[%c0_115, %c0_116] : memref<1x1xf32, #tpu.memory_space<vmem>>, vector<1x1xf32>
    %135 = vector.broadcast %134 : vector<1x1xf32> to vector<16x1xf32>
    %136 = arith.addf %133, %135 : vector<16x1xf32>
    %137 = tpu.transpose %136, [1, 0] : vector<16x1xf32> -> vector<1x16xf32>
    %138 = vector.shape_cast %137 : vector<1x16xf32> to vector<1x1x16xf32>
    %c0_117 = arith.constant 0 : index
    %c0_118 = arith.constant 0 : index
    %c0_119 = arith.constant 0 : index
    %139 = vector.load %arg12[%c0_117, %c0_118, %c0_119] : memref<1x1x16xf32, #tpu.memory_space<vmem>>, vector<1x1x16xf32>
    tpu.vector_store %arg12[%c0_117, %c0_118, %c0_119], %138 {strides = array<i32>} : memref<1x1x16xf32, #tpu.memory_space<vmem>>, vector<1x1x16xf32>,
    return
  }
  func.func @transform_0(%arg0: i32) -> (i32, i32) {
    %c0_i32 = arith.constant 0 : i32
    %c0_i32_0 = arith.constant 0 : i32
    return %arg0, %c0_i32 : i32, i32
  }
  func.func @transform_1(%arg0: i32) -> (i32, i32) {
    %c0_i32 = arith.constant 0 : i32
    %c0_i32_0 = arith.constant 0 : i32
    return %arg0, %c0_i32 : i32, i32
  }
  func.func @transform_2(%arg0: i32) -> (i32, i32, i32) {
    %c0_i32 = arith.constant 0 : i32
    %c0_i32_0 = arith.constant 0 : i32
    %c0_i32_1 = arith.constant 0 : i32
    %c0_i32_2 = arith.constant 0 : i32
    return %c0_i32, %c0_i32_0, %c0_i32_1 : i32, i32, i32
  }
  func.func @transform_3(%arg0: i32) -> (i32, i32, i32) {
    %c0_i32 = arith.constant 0 : i32
    %c0_i32_0 = arith.constant 0 : i32
    %c0_i32_1 = arith.constant 0 : i32
    %c0_i32_2 = arith.constant 0 : i32
    return %c0_i32, %c0_i32_0, %c0_i32_1 : i32, i32, i32
  }
  func.func @transform_4(%arg0: i32) -> (i32, i32, i32) {
    %c0_i32 = arith.constant 0 : i32
    %c0_i32_0 = arith.constant 0 : i32
    %c0_i32_1 = arith.constant 0 : i32
    %c0_i32_2 = arith.constant 0 : i32
    return %c0_i32, %c0_i32_0, %c0_i32_1 : i32, i32, i32
  }
  func.func @transform_5(%arg0: i32) -> (i32, i32, i32) {
    %c0_i32 = arith.constant 0 : i32
    %c0_i32_0 = arith.constant 0 : i32
    %c0_i32_1 = arith.constant 0 : i32
    %c0_i32_2 = arith.constant 0 : i32
    return %c0_i32, %c0_i32_0, %c0_i32_1 : i32, i32, i32
  }
  func.func @transform_6(%arg0: i32) -> (i32, i32, i32) {
    %c0_i32 = arith.constant 0 : i32
    %c0_i32_0 = arith.constant 0 : i32
    %c0_i32_1 = arith.constant 0 : i32
    %c0_i32_2 = arith.constant 0 : i32
    return %c0_i32, %c0_i32_0, %c0_i32_1 : i32, i32, i32
  }
  func.func @transform_7(%arg0: i32) -> (i32, i32, i32) {
    %c0_i32 = arith.constant 0 : i32
    %c0_i32_0 = arith.constant 0 : i32
    %c0_i32_1 = arith.constant 0 : i32
    %c0_i32_2 = arith.constant 0 : i32
    return %c0_i32, %c0_i32_0, %c0_i32_1 : i32, i32, i32
  }
  func.func @transform_8(%arg0: i32) -> (i32, i32, i32) {
    %c0_i32 = arith.constant 0 : i32
    %c0_i32_0 = arith.constant 0 : i32
    %c0_i32_1 = arith.constant 0 : i32
    %c0_i32_2 = arith.constant 0 : i32
    return %c0_i32, %c0_i32_0, %c0_i32_1 : i32, i32, i32
  }
  func.func @transform_9(%arg0: i32) -> (i32, i32) {
    %c0_i32 = arith.constant 0 : i32
    %c0_i32_0 = arith.constant 0 : i32
    %c0_i32_1 = arith.constant 0 : i32
    return %c0_i32, %c0_i32_0 : i32, i32
  }
  func.func @transform_10(%arg0: i32) -> (i32, i32) {
    %c0_i32 = arith.constant 0 : i32
    %c0_i32_0 = arith.constant 0 : i32
    %c0_i32_1 = arith.constant 0 : i32
    return %c0_i32, %c0_i32_0 : i32, i32
  }
  func.func @transform_11(%arg0: i32) -> (i32, i32, i32) {
    %c0_i32 = arith.constant 0 : i32
    %c0_i32_0 = arith.constant 0 : i32
    %c0_i32_1 = arith.constant 0 : i32
    return %arg0, %c0_i32, %c0_i32_0 : i32, i32, i32
  }
}

</mosaic_0001>

<bundles_post_ra>
// kernel: tpu_custom_call.1
= control target key start
LH: loop header
LB: loop body
LE: loop exit
PB: predicated region body
PF: predicated region fallthrough
CT: control target
= control target key end

     0   :  { %s9219_s0 = inlined_call_operand.hbm [shape: bf16[32,784], index: 0, kind: input, shape index: {}]   ;;  %s9220_s1 = inlined_call_operand.vmem [shape: bf16[32,9], index: 1, kind: input, shape index: {}]   ;;  %s9221_s2 = inlined_call_operand.hbm [shape: bf16[5,784,240], index: 2, kind: input, shape index: {}]   ;;  %s9222_s3 = inlined_call_operand.hbm [shape: f32[5,1,240], index: 3, kind: input, shape index: {}]   ;;  %s9223_s4 = inlined_call_operand.vmem [shape: bf16[5,9,50], index: 4, kind: input, shape index: {}]   ;;  %s9224_s5 = inlined_call_operand.hbm [shape: f32[5,1,50], index: 5, kind: input, shape index: {}]   ;;  %s9225_s6 = inlined_call_operand.hbm [shape: bf16[4,240,240], index: 6, kind: input, shape index: {}]   ;;  %s9226_s7 = inlined_call_operand.vmem [shape: bf16[4,50,240], index: 7, kind: input, shape index: {}]   ;;  %s9227_s8 = inlined_call_operand.hbm [shape: f32[4,1,240], index: 8, kind: input, shape index: {}]   ;;  %s9228_s9 = inlined_call_operand.hbm [shape: f32[1,240], index: 9, kind: input, shape index: {}]   ;;  %s9229_s10 = inlined_call_operand.<no memory space> [shape: f32[1,1], index: 10, kind: input, shape index: {}]   ;;  %s9230_s11 = inlined_call_operand.hbm [shape: f32[2,1,16], index: 11, kind: output, shape index: {}]  }
   0x1   :  { %9236 = sst [smem:[#allocation21_spill]] %s9221_s2  ;;  %v16_v0 = vstv %s9229_s10 }
   0x2   :  { %9237 = sst [smem:[#allocation22_spill]] %s9222_s3  ;;  %17 = vst [vmem:[#allocation2] sm:$0x1] %v16_v0 }
   0x3   :  { %9238 = sst [smem:[#allocation23_spill]] %s9224_s5 }
   0x4   :  { %9239 = sst [smem:[#allocation24_spill]] %s9225_s6 }
   0x5   :  { %18 = vsyncpa [#allocation4], 0 }
   0x6   :  { %20 = vsyncpa [#allocation4 + $0x1], 0 }
   0x7   :  { %21 = vsyncpa [#allocation7], 0 }
   0x8   :  { %22 = vsyncpa [#allocation10], 0 }
   0x9   :  { %23 = vsyncpa [#allocation13], 0 }
   0xa   :  { %24 = vsyncpa [#allocation5], 0 }
   0xb   :  { %26 = vsyncpa [#allocation5 + $0x1], 0  ;;  %s8567_s19 = smov 0   ;;  %s8569_s20 = smov 0  }
   0xc   :  { %s8571_s21 = smov 0   ;;  %s8573_s22 = smov 0  }
   0xd LB: > { %s8484_s10 = smov [#allocation6]   ;;  %s8588_s24 = sadd.s32 4294967295, %s8482_s22   ;;  %s8482_s22 = sphi %s8573_s22, %s9267_s22   ;;  %s8478_s21 = sphi %s8571_s21, %s9266_s21   ;;  %s8474_s20 = sphi %s8569_s20, %s9265_s20   ;;  %s8470_s19 = sphi %s8567_s19, %s9264_s19  }
   0xe   : > { %s316_s23 = sshll.u32 %s8484_s10, 4  ;;  %p6337_p0 = scmp.ge.s32.totalorder %s8482_s22, 1  ;;  %s317_s23 = int_to_ptr.vmem [resolvable:$true] %s316_s23 }
   0xf   : > { %p9232_p1 = scmp.eq.s32.totalorder %s8588_s24, 0  ;;  %p304_p2 = scmp.lt.s32.totalorder %s8482_s22, 3 }
  0x10   : > { %s8485_s26 = smov [#allocation9]   ;;  %s8233_s30 = scalar_lea.vmem %s317_s23, 62720 }
  0x11   : > { %p8593_p3 = pnand %p6337_p0, %p304_p2  ;;  %s345_s27 = sshll.u32 %s8485_s26, 4  ;;  %s8606_s27 = int_to_ptr.vmem [resolvable:$true] %s345_s27 }
  0x12   : > { %p8234_p8 = scmp.ne.s32.totalorder %s317_s23, %s8233_s30  ;;  %p8241_p11 = scmp.lt.s32.totalorder %s317_s23, %s317_s23 }
  0x13   : > { %s9240_s25 = scalar_select %p8593_p3, 1, 0 }
  0x14   : > { %p7143_p5 = pneg %p8593_p3  ;;  %p8242_p12 = scmp.lt.s32.totalorder %s8233_s30, %s8233_s30 }
  0x16   : > { %p8602_p6 = pnand %p7143_p5, %p9232_p1  ;;  %p8243_p13 = por %p8242_p12, %p8241_p11 }
  0x18   : > { %p8610_p7 = pneg %p8602_p6 }
  0x1a   : > { %p8236_p9 = pnand %p8234_p8, %p8610_p7 }
  0x1c   : > { %p8237_p10 = pneg %p8236_p9 }
  0x1e   : > { %p8244_p0 = pnand %p8243_p13, %p8237_p10 }
  0x20   : > { %8247 = shalt.err (!%p8244_p0)
}
  0x21   : > { %s9231_s12 = smov 128   ;;  %s8487_s13 = smov 8  }
  0x22   : > { %s9243_s2 = sld [smem:[#allocation21_spill]]  ;;  %s8259_s16 = scalar_lea.vmem %s8606_s27, 80 }
  0x23   : > { %p8260_p2 = scmp.ne.s32.totalorder %s8606_s27, %s8259_s16  ;;  %s8266_s17 = scalar_lea.vmem %s8606_s27, 96 }
  0x24   : > { %p8267_p9 = scmp.lt.s32.totalorder %s8606_s27, %s8606_s27  ;;  %p8268_p10 = scmp.lt.s32.totalorder %s8266_s17, %s8259_s16 }
  0x25   : > { %p8262_p5 = pnand %p8260_p2, %p8610_p7 }
  0x26   : > { %p8269_p11 = por %p8268_p10, %p8267_p9 }
  0x27   : > { %p8263_p8 = pneg %p8262_p5 }
  0x28   : > { %7146 = dma.hbm_to_vmem [thread:$0]  (!%p8602_p6), %s9243_s2, 62720, %s317_s23, [#allocation7], %s9231_s12, %s9231_s12, %s8487_s13  }
  0x29   : > { %p8270_p12 = pnand %p8269_p11, %p8263_p8 }
  0x2b   : > { %8273 = shalt.err (!%p8270_p12)
}
  0x2c   : > { %s8488_s18 = smov 16   ;;  %s8489_s10 = smov 1  }
  0x2d   : > { %s9244_s5 = sld [smem:[#allocation23_spill]]  ;;  %s8490_s30 = smov [#allocation12]  }
  0x2e   : > { %s374_s14 = sshll.u32 %s8490_s30, 4  ;;  %s8491_s15 = smov [#allocation8]   ;;  %s375_s14 = int_to_ptr.vmem [resolvable:$true] %s374_s14 }
  0x2f   : > { %s329_s12 = sshll.u32 %s8491_s15, 4  ;;  %s8285_s16 = scalar_lea.vmem %s375_s14, 128  ;;  %s330_s12 = int_to_ptr.vmem [resolvable:$true] %s329_s12 }
  0x30   : > { %p8286_p13 = scmp.ne.s32.totalorder %s375_s14, %s8285_s16  ;;  %p8293_p5 = scmp.lt.s32.totalorder %s375_s14, %s375_s14 }
  0x31   : > { %p8294_p8 = scmp.lt.s32.totalorder %s8285_s16, %s8285_s16 }
  0x32   : > { %p8288_p0 = pnand %p8286_p13, %p8610_p7 }
  0x33   : > { %7152 = dma.hbm_to_vmem [thread:$0]  (!%p8602_p6), %s9244_s5, 80, %s8606_s27, [#allocation10], %s8488_s18, %s8488_s18, %s8489_s10  }
  0x34   : > { %p8289_p2 = pneg %p8288_p0  ;;  %p8295_p9 = por %p8294_p8, %p8293_p5 }
  0x36   : > { %p8296_p10 = pnand %p8295_p9, %p8289_p2 }
  0x38   : > { %8299 = shalt.err (!%p8296_p10)
}
  0x39   : > { %s8492_s17 = smov 32   ;;  %s8493_s27 = smov 2  }
  0x3a   : > { %7158 = dma.hbm_to_vmem [thread:$0]  (!%p8602_p6), %s9227_s8, 128, %s375_s14, [#allocation13], %s8492_s17, %s8492_s17, %s8493_s27  }
  0x3b   : > { %s8311_s26 = scalar_lea.vmem %s330_s12, 160  ;;  %p8319_p0 = scmp.lt.s32.totalorder %s330_s12, %s330_s12 }
  0x3c   : > { %p8312_p11 = scmp.ne.s32.totalorder %s330_s12, %s8311_s26  ;;  %p8320_p4 = scmp.lt.s32.totalorder %s8311_s26, %s8311_s26 }
  0x3e   : > { %p8314_p12 = pnand %p8312_p11, %p8610_p7  ;;  %p8321_p1 = por %p8320_p4, %p8319_p0 }
  0x40   : > { %p8315_p13 = pneg %p8314_p12 }
  0x42   : > { %p8322_p5 = pnand %p8321_p1, %p8315_p13 }
  0x44   : > { %8325 = shalt.err (!%p8322_p5)
}
  0x45   : > { %s9245_s3 = sld [smem:[#allocation22_spill]]  ;;  %s8494_s15 = smov [#allocation11]  }
  0x46   : > { %s358_s16 = sshll.u32 %s8494_s15, 4  ;;  %s8495_s14 = smov [#allocation14]   ;;  %s359_s16 = int_to_ptr.vmem [resolvable:$true] %s358_s16 }
  0x47   : > { %s388_s18 = sshll.u32 %s8495_s14, 4  ;;  %s8337_s10 = scalar_lea.vmem %s359_s16, 15360  ;;  %s389_s18 = int_to_ptr.vmem [resolvable:$true] %s388_s18 }
  0x48   : > { %p8338_p2 = scmp.ne.s32.totalorder %s359_s16, %s8337_s10  ;;  %p8345_p1 = scmp.lt.s32.totalorder %s359_s16, %s359_s16 }
  0x49   : > { %p8346_p9 = scmp.lt.s32.totalorder %s8337_s10, %s8337_s10 }
  0x4a   : > { %p8340_p8 = pnand %p8338_p2, %p8610_p7 }
  0x4b   : > { %7149 = dma.hbm_to_vmem [thread:$0]  (!%p8602_p6), %s9245_s3, 160, %s330_s12, [#allocation7], %s8492_s17, %s8492_s17, %s8493_s27  }
  0x4c   : > { %p8341_p4 = pneg %p8340_p8  ;;  %p8347_p10 = por %p8346_p9, %p8345_p1 }
  0x4e   : > { %p8348_p11 = pnand %p8347_p10, %p8341_p4 }
  0x50   : > { %8351 = shalt.err (!%p8348_p11)
}
  0x51   : > { %s9246_s12 = smov 128   ;;  %s9247_s6 = sld [smem:[#allocation24_spill]] }
  0x52   : > { %s8363_s26 = scalar_lea.vmem %s389_s18, 32  ;;  %p8371_p5 = scmp.lt.s32.totalorder %s389_s18, %s389_s18 }
  0x53   : > { %p8364_p12 = scmp.ne.s32.totalorder %s389_s18, %s8363_s26  ;;  %p8372_p2 = scmp.lt.s32.totalorder %s8363_s26, %s8363_s26 }
  0x55   : > { %p8366_p13 = pnand %p8364_p12, %p8610_p7  ;;  %p8373_p8 = por %p8372_p2, %p8371_p5 }
  0x57   : > { %7155 = dma.hbm_to_vmem [thread:$0]  (!%p8602_p6), %s9247_s6, 15360, %s359_s16, [#allocation10], %s9246_s12, %s9246_s12, %s8487_s13  }
  0x58   : > { %p8367_p0 = pneg %p8366_p13 }
  0x5a   : > { %p8374_p4 = pnand %p8373_p8, %p8367_p0 }
  0x5c   : > { %8377 = shalt.err (!%p8374_p4)
}
  0x5d   : > { %7161 = dma.hbm_to_vmem [thread:$0]  (!%p8602_p6), %s9228_s9, 32, %s389_s18, [#allocation13]  }
  0x5e   : > { %s6336_s29 = sadd.s32 4294967294, %s8482_s22   ;;  %s8670_s28 = sadd.s32 1, %s8482_s22  }
  0x5f   : > { %s36_s13 = ssub.s32 %s8482_s22, %s8670_s28  ;;  %s39_s15 = sadd.s32 1, %s8478_s21 }
  0x60   : > { %p37_p7 = scmp.eq.s32.totalorder %s36_s13, 0  ;;  %p46_p1 = scmp.ne.s32.totalorder %s8478_s21, %s8474_s20 }
  0x61   : > { %p47_p9 = scmp.eq.s32.totalorder %s8482_s22, 0  ;;  %p52_p10 = scmp.ne.s32.totalorder %s8474_s20, %s8470_s19 }
  0x62   : > { %s8681_s16 = scalar_select %p37_p7, %s8478_s21, %s39_s15  }
  0x63   : > { %p48_p11 = por %p47_p9, %p46_p1  ;;  %p9248_p12 = scmp.eq.s32.totalorder %s8588_s24, 0 }
  0x64   : > { %p291_p6 = scmp.eq.s32.totalorder %s8588_s24, 1  ;;  %p297_p0 = scmp.eq.s32.totalorder %s6336_s29, 1 }
  0x65   : > { %p8685_p13 = por %p9248_p12, %p52_p10  ;;  %p7176_p5 = scmp.lt.s32.totalorder %s8482_s22, 2 }
  0x66   : > { %s402_s18 = sand.u32 1, %s8478_s21   ;;  %p8692_p2 = por %p291_p6, %p46_p1 }
  0x67   : > { %s9249_s14 = scalar_select %p8685_p13, 1, 0 }
  0x68   : > { %s9250_s10 = scalar_select %p8692_p2, 1, 0 }
  0x69   : > { %p8696_p8 = por %p297_p0, %p52_p10  ;;  %s7112_s17 = smul.u32 56, %s402_s18 }
  0x6a   : > { %s7113_s27 = smul.u32 896, %s8482_s22  ;;  %p8701_p4 = pnand %p7176_p5, %p48_p11 }
  0x6b   : > { %s9251_s12 = scalar_select %p8696_p8, 1, 0 }
  0x6c   : > { %s8708_s29 = scalar_lea.hbm %s9219_s0, %s7113_s27  ;;  %s406_s13 = scalar_lea.vmem [#allocation3], %s7112_s17 }
  0x6d   : > { %s414_s15 = sshll.u32 %s406_s13, 4  ;;  %s8712_s2 = scalar_lea.sflag [#allocation4], %s402_s18  ;;  %s8710_s15 = int_to_ptr.vmem [resolvable:$true] %s414_s15 }
  0x6e   : > { %s8378_s3 = scalar_lea.hbm %s8708_s29, 896  ;;  %p8380_p1 = pneg %p8701_p4 }
  0x6f   : > { %p8379_p7 = scmp.ne.s32.totalorder %s8708_s29, %s8378_s3  ;;  %s8383_s27 = scalar_lea.hbm %s9219_s0, 1792 }
  0x70   : > { %p8384_p11 = scmp.lt.s32.totalorder %s8708_s29, %s9219_s0  ;;  %p8385_p12 = scmp.lt.s32.totalorder %s8383_s27, %s8378_s3 }
  0x71   : > { %p8381_p9 = pnand %p8380_p1, %p8379_p7 }
  0x72   : > { %p8386_p6 = por %p8385_p12, %p8384_p11 }
  0x73   : > { %p8382_p10 = pneg %p8381_p9 }
  0x75   : > { %p8387_p0 = pnand %p8386_p6, %p8382_p10 }
  0x77   : > { %8390 = shalt.err (!%p8387_p0)
}
  0x78   : > { %s8391_s18 = scalar_lea.vmem %s8710_s15, 896  ;;  %s8496_s17 = smov [#allocation3]  }
  0x79   : > { %p8392_p5 = scmp.ne.s32.totalorder %s8710_s15, %s8391_s18  ;;  %s8396_s13 = sshll.u32 %s8496_s17, 4  ;;  %s8397_s13 = int_to_ptr.vmem [resolvable:$false] %s8396_s13 }
  0x7a   : > { %s8398_s5 = scalar_lea.vmem %s8397_s13, 1792  ;;  %p8399_p9 = scmp.lt.s32.totalorder %s8710_s15, %s8397_s13 }
  0x7b   : > { %p8394_p8 = pnand %p8392_p5, %p8380_p1  ;;  %p8400_p2 = scmp.lt.s32.totalorder %s8398_s5, %s8391_s18 }
  0x7d   : > { %p8395_p7 = pneg %p8394_p8  ;;  %p8401_p13 = por %p8400_p2, %p8399_p9 }
  0x7f   : > { %p8402_p3 = pnand %p8401_p13, %p8395_p7 }
  0x81   : > { %8405 = shalt.err (!%p8402_p3)
}
  0x82   : > { %s8497_s3 = smov 448   ;;  %s8498_s6 = smov 28  }
  0x83   : > { %7165 = dma.hbm_to_vmem [thread:$0]  (!%p8701_p4), %s8708_s29, 896, %s8710_s15, %s8712_s2, %s8497_s3, %s8497_s3, %s8498_s6  }
  0x84   : > { %p9253_p1 = scmp.ne.s32.totalorder %s9240_s25, 0 }
  0x85   : > { %s8736_s23 = sand.u32 (!%p9253_p1), 1, %s8474_s20   ;;  %p9254_p3 = scmp.ne.s32.totalorder (!%p9253_p1), %s9249_s14, 0 }
  0x86   : > { %435 = sbr.rel (%p9253_p1) target bundleno = 1495 (0x5d7), region = 64  ;;  %s438_s30 = scalar_lea.sflag (!%p9253_p1), [#allocation4], %s8736_s23 }
  0x87   : > { %s7114_s27 = smul.u32 (!%p9253_p1), 56, %s8736_s23 }
  0x89   : > { %s8740_s18 = scalar_lea.vmem (!%p9253_p1), [#allocation3], %s7114_s27 }
  0x8b   : > { %8449 = dma.done.wait (%p9254_p3), %s438_s30, 896  }
  0x8c   : > { %8451 = vsyncadd (%p9254_p3), %s438_s30, 4294966400  ;;  %p9255_p13 = scmp.eq.s32.totalorder %s8588_s24, 0 }
  0x8e   : > { %8453 = dma.done.wait (%p9255_p13), [#allocation7], 62880   ;;  %p9256_p2 = pmov %p9255_p13 }
  0x90   : > { %8455 = vsyncadd (%p9256_p2), [#allocation7], 4294904416  ;;  %p9257_p8 = pmov %p9256_p2 }
  0x91   : > { %p9258_p4 = pmov %p9256_p2 }
  0x92   : > { %8457 = dma.done.wait (%p9257_p8), [#allocation10], 15440  }
  0x93   : > { %8459 = vsyncadd (%p9258_p4), [#allocation10], 4294951856  ;;  %p9259_p10 = pmov %p9256_p2 }
  0x94   : > { %p9260_p11 = pmov %p9256_p2 }
  0x95   : > { %8461 = dma.done.wait (%p9259_p10), [#allocation13], 160  }
  0x96   : > { %8463 = vsyncadd (%p9260_p11), [#allocation13], 4294967136  ;;  %v7234_v1 = vld [vmem:[#allocation6 + $0x74] ss:$8 sps:$4 sm:$0xff]   ;;  %v7238_v3 = vld [vmem:[#allocation6 + $0x70] ss:$8 sps:$4 sm:$0xff]  }
  0x97   : > { %v7236_v2 = vld [vmem:[#allocation6 + $0x174] ss:$8 sps:$4 sm:$0xff]   ;;  %1165 = vmatprep.subr.bf16.mxu0 %v7234_v1  ;;  %v7239_v4 = vld [vmem:[#allocation6 + $0x170] ss:$8 sps:$4 sm:$0xff]   ;;  %v7240_v5 = vld [vmem:[#allocation6 + $0x64] ss:$8 sps:$4 sm:$0xff]  }
  0x98   : > { %1208 = vmatprep.subr.bf16.mxu1 %v7236_v2  ;;  %1166 = vmatpush1.bf16.msra.mxu0 %v7238_v3  ;;  %v7242_v6 = vld [vmem:[#allocation6 + $0x164] ss:$8 sps:$4 sm:$0xff]   ;;  %v7244_v7 = vld [vmem:[#allocation6 + $0x60] ss:$8 sps:$4 sm:$0xff]   ;;  %v7246_v9 = vld [vmem:[#allocation6 + $0x54] ss:$8 sps:$4 sm:$0xff]  }
  0x99   : > { %1209 = vmatpush1.bf16.msra.mxu1 %v7239_v4  ;;  %1167 = vmatprep.subr.bf16.mxu0 %v7240_v5  ;;  %v7245_v8 = vld [vmem:[#allocation6 + $0x160] ss:$8 sps:$4 sm:$0xff]   ;;  %v7248_v10 = vld [vmem:[#allocation6 + $0x154] ss:$8 sps:$4 sm:$0xff]   ;;  %v7250_v11 = vld [vmem:[#allocation6 + $0x50] ss:$8 sps:$4 sm:$0xff]  }
  0x9a   : > { %1210 = vmatprep.subr.bf16.mxu1 %v7242_v6  ;;  %v7251_v12 = vld [vmem:[#allocation6 + $0x150] ss:$8 sps:$4 sm:$0xff]   ;;  %v7252_v13 = vld [vmem:[#allocation6 + $0x44] ss:$8 sps:$4 sm:$0xff]   ;;  %v7256_v15 = vld [vmem:[#allocation6 + $0x40] ss:$8 sps:$4 sm:$0xff]  }
  0x9b   : > { %v7254_v14 = vld [vmem:[#allocation6 + $0x144] ss:$8 sps:$4 sm:$0xff]   ;;  %v7257_v16 = vld [vmem:[#allocation6 + $0x140] ss:$8 sps:$4 sm:$0xff]   ;;  %v7258_v17 = vld [vmem:[#allocation6 + $0x34] ss:$8 sps:$4 sm:$0xff]  }
  0x9c   : > { %1168 = vmatpush1.bf16.msra.mxu0 %v7244_v7  ;;  %v7260_v18 = vld [vmem:[#allocation6 + $0x134] ss:$8 sps:$4 sm:$0xff]   ;;  %v7262_v19 = vld [vmem:[#allocation6 + $0x30] ss:$8 sps:$4 sm:$0xff]   ;;  %v7264_v21 = vld [vmem:[#allocation6 + $0x24] ss:$8 sps:$4 sm:$0xff]  }
  0x9d   : > { %1211 = vmatpush1.bf16.msra.mxu1 %v7245_v8  ;;  %1169 = vmatprep.subr.bf16.mxu0 %v7246_v9  ;;  %v7263_v20 = vld [vmem:[#allocation6 + $0x130] ss:$8 sps:$4 sm:$0xff]   ;;  %v7266_v22 = vld [vmem:[#allocation6 + $0x124] ss:$8 sps:$4 sm:$0xff]   ;;  %v7268_v23 = vld [vmem:[#allocation6 + $0x20] ss:$8 sps:$4 sm:$0xff]  }
  0x9e   : > { %1212 = vmatprep.subr.bf16.mxu1 %v7248_v10  ;;  %v7269_v24 = vld [vmem:[#allocation6 + $0x120] ss:$8 sps:$4 sm:$0xff]   ;;  %v7270_v25 = vld [vmem:[#allocation6 + $0x14] ss:$8 sps:$4 sm:$0xff]   ;;  %v7274_v27 = vld [vmem:[#allocation6 + $0x10] ss:$8 sps:$4 sm:$0xff]  }
  0x9f   : > { %v7272_v26 = vld [vmem:[#allocation6 + $0x114] ss:$8 sps:$4 sm:$0xff]   ;;  %v7275_v28 = vld [vmem:[#allocation6 + $0x110] ss:$8 sps:$4 sm:$0xff]   ;;  %v7276_v29 = vld [vmem:[#allocation6 + $0x4] ss:$8 sps:$4 sm:$0xff]  }
  0xa0   : > { %1170 = vmatpush1.bf16.msra.mxu0 %v7250_v11  ;;  %v7278_v30 = vld [vmem:[#allocation6 + $0x104] ss:$8 sps:$4 sm:$0xff]   ;;  %v7280_v31 = vld [vmem:[#allocation6] ss:$8 sps:$4 sm:$0xff]   ;;  %v7282_v33 = vld [vmem:[#allocation6 + $0xf4] ss:$8 sps:$4 sm:$0xff]  }
  0xa1   : > { %1213 = vmatpush1.bf16.msra.mxu1 %v7251_v12  ;;  %1171 = vmatprep.subr.bf16.mxu0 %v7252_v13  ;;  %v7281_v32 = vld [vmem:[#allocation6 + $0x100] ss:$8 sps:$4 sm:$0xff]   ;;  %v7284_v34 = vld [vmem:[#allocation6 + $0x1f4] ss:$8 sps:$4 sm:$0xff]   ;;  %v7286_v35 = vld [vmem:[#allocation6 + $0xf0] ss:$8 sps:$4 sm:$0xff]  }
  0xa2   : > { %1214 = vmatprep.subr.bf16.mxu1 %v7254_v14  ;;  %v7287_v36 = vld [vmem:[#allocation6 + $0x1f0] ss:$8 sps:$4 sm:$0xff]   ;;  %v7288_v37 = vld [vmem:[#allocation6 + $0xe4] ss:$8 sps:$4 sm:$0xff]   ;;  %v7292_v39 = vld [vmem:[#allocation6 + $0xe0] ss:$8 sps:$4 sm:$0xff]  }
  0xa3   : > { %v7290_v38 = vld [vmem:[#allocation6 + $0x1e4] ss:$8 sps:$4 sm:$0xff]   ;;  %v7293_v40 = vld [vmem:[#allocation6 + $0x1e0] ss:$8 sps:$4 sm:$0xff]   ;;  %v7294_v41 = vld [vmem:[#allocation6 + $0xd4] ss:$8 sps:$4 sm:$0xff]  }
  0xa4   : > { %1172 = vmatpush1.bf16.msra.mxu0 %v7256_v15  ;;  %v7296_v42 = vld [vmem:[#allocation6 + $0x1d4] ss:$8 sps:$4 sm:$0xff]   ;;  %v7298_v43 = vld [vmem:[#allocation6 + $0xd0] ss:$8 sps:$4 sm:$0xff]   ;;  %v7300_v45 = vld [vmem:[#allocation6 + $0xc4] ss:$8 sps:$4 sm:$0xff]  }
  0xa5   : > { %1215 = vmatpush1.bf16.msra.mxu1 %v7257_v16  ;;  %1173 = vmatprep.subr.bf16.mxu0 %v7258_v17  ;;  %v7299_v44 = vld [vmem:[#allocation6 + $0x1d0] ss:$8 sps:$4 sm:$0xff]   ;;  %v7302_v46 = vld [vmem:[#allocation6 + $0x1c4] ss:$8 sps:$4 sm:$0xff]   ;;  %v7304_v47 = vld [vmem:[#allocation6 + $0xc0] ss:$8 sps:$4 sm:$0xff]  }
  0xa6   : > { %1216 = vmatprep.subr.bf16.mxu1 %v7260_v18  ;;  %v7305_v48 = vld [vmem:[#allocation6 + $0x1c0] ss:$8 sps:$4 sm:$0xff]   ;;  %v7306_v50 = vld [vmem:[#allocation6 + $0xb4] ss:$8 sps:$4 sm:$0xff]   ;;  %v7310_v53 = vld [vmem:[#allocation6 + $0xb0] ss:$8 sps:$4 sm:$0xff]  }
  0xa7   : > { %v7330_v49 = vld [vmem:[%s8740_s18 + $0x4] ss:$28 sps:$4 sm:$0xff]   ;;  %v8760_v51 = vld [vmem:[%s8740_s18 + $0xc] ss:$28 sps:$4 sm:$0xff]   ;;  %vm1161_vm0 = vcmask 130048   ;;  %s6355_s2 = sshll.u32 %s8588_s24, 1 }
  0xa8   : > { %1174 = vmatpush1.bf16.msra.mxu0 %v7262_v19  ;;  %v7308_v52 = vld [vmem:[#allocation6 + $0x1b4] ss:$8 sps:$4 sm:$0xff]   ;;  %1197 = vmatprep.mubr.bf16.mxu0 %v7330_v49  ;;  %v7311_v54 = vld [vmem:[#allocation6 + $0x1b0] ss:$8 sps:$4 sm:$0xff]   ;;  %v7312_v55 = vld [vmem:[#allocation6 + $0xa4] ss:$8 sps:$4 sm:$0xff]  }
  0xa9   : > { %1217 = vmatpush1.bf16.msra.mxu1 %v7263_v20  ;;  %1175 = vmatprep.subr.bf16.mxu0 %v7264_v21  ;;  %v7314_v56 = vld [vmem:[#allocation6 + $0x1a4] ss:$8 sps:$4 sm:$0xff]   ;;  %v7316_v57 = vld [vmem:[#allocation6 + $0xa0] ss:$8 sps:$4 sm:$0xff]   ;;  %v7318_v59 = vld [vmem:[#allocation6 + $0x94] ss:$8 sps:$4 sm:$0xff]  }
  0xaa   : > { %1218 = vmatprep.subr.bf16.mxu1 %v7266_v22  ;;  %1240 = vmatprep.mubr.bf16.mxu1 %v8760_v51  ;;  %v7317_v58 = vld [vmem:[#allocation6 + $0x1a0] ss:$8 sps:$4 sm:$0xff]   ;;  %v7320_v60 = vld [vmem:[#allocation6 + $0x194] ss:$8 sps:$4 sm:$0xff]   ;;  %v7322_v61 = vld [vmem:[#allocation6 + $0x90] ss:$8 sps:$4 sm:$0xff]  }
  0xab   : > { %v7323_v62 = vld [vmem:[#allocation6 + $0x190] ss:$8 sps:$4 sm:$0xff]   ;;  %v7324_v63 = vld [vmem:[#allocation6 + $0x84] ss:$8 sps:$4 sm:$0xff]   ;;  %v7328_v1 = vld [vmem:[#allocation6 + $0x80] ss:$8 sps:$4 sm:$0xff]  }
  0xac   : > { %1176 = vmatpush1.bf16.msra.mxu0 %v7268_v23  ;;  %v7326_v0 = vld [vmem:[#allocation6 + $0x184] ss:$8 sps:$4 sm:$0xff]   ;;  %v7329_v2 = vld [vmem:[#allocation6 + $0x180] ss:$8 sps:$4 sm:$0xff]   ;;  %v7338_v3 = vld [vmem:[#allocation6 + $0x274] ss:$8 sps:$4 sm:$0xff]  }
  0xad   : > { %1219 = vmatpush1.bf16.msra.mxu1 %v7269_v24  ;;  %1177 = vmatprep.subr.bf16.mxu0 %v7270_v25  ;;  %v7341_v4 = vld [vmem:[#allocation6 + $0x384] ss:$8 sps:$4 sm:$0xff]   ;;  %v7336_v7 = vld [vmem:[#allocation6 + $0x270] ss:$8 sps:$4 sm:$0xff]   ;;  %v7339_v8 = vld [vmem:[#allocation6 + $0x380] ss:$8 sps:$4 sm:$0xff]  }
  0xae   : > { %1220 = vmatprep.subr.bf16.mxu1 %v7272_v26  ;;  %v8764_v5 = vld [vmem:[%s8740_s18] ss:$28 sps:$4 sm:$0xff]   ;;  %v8767_v6 = vld [vmem:[%s8740_s18 + $0x8] ss:$28 sps:$4 sm:$0xff]   ;;  %p510_p12 = scmp.lt.s32.totalorder %s6355_s2, 3  ;;  %vm4472_vm1 = vcmask 1043456  }
  0xaf   : > { %v7344_v9 = vld [vmem:[#allocation6 + $0x264] ss:$8 sps:$4 sm:$0xff]   ;;  %v7347_v10 = vld [vmem:[#allocation6 + $0x374] ss:$8 sps:$4 sm:$0xff]   ;;  %v7342_v11 = vld [vmem:[#allocation6 + $0x260] ss:$8 sps:$4 sm:$0xff]  }
  0xb0   : > { %1178 = vmatpush1.bf16.msra.mxu0 %v7274_v27  ;;  %v7345_v12 = vld [vmem:[#allocation6 + $0x370] ss:$8 sps:$4 sm:$0xff]   ;;  %v7350_v13 = vld [vmem:[#allocation6 + $0x254] ss:$8 sps:$4 sm:$0xff]   ;;  %v7353_v14 = vld [vmem:[#allocation6 + $0x364] ss:$8 sps:$4 sm:$0xff]  }
  0xb1   : > { %1221 = vmatpush1.bf16.msra.mxu1 %v7275_v28  ;;  %1179 = vmatprep.subr.bf16.mxu0 %v7276_v29  ;;  %v7348_v15 = vld [vmem:[#allocation6 + $0x250] ss:$8 sps:$4 sm:$0xff]   ;;  %v7351_v16 = vld [vmem:[#allocation6 + $0x360] ss:$8 sps:$4 sm:$0xff]   ;;  %v7356_v17 = vld [vmem:[#allocation6 + $0x244] ss:$8 sps:$4 sm:$0xff]  }
  0xb2   : > { %1222 = vmatprep.subr.bf16.mxu1 %v7278_v30  ;;  %v7359_v18 = vld [vmem:[#allocation6 + $0x354] ss:$8 sps:$4 sm:$0xff]   ;;  %v7354_v19 = vld [vmem:[#allocation6 + $0x240] ss:$8 sps:$4 sm:$0xff]   ;;  %v7357_v20 = vld [vmem:[#allocation6 + $0x350] ss:$8 sps:$4 sm:$0xff]  }
  0xb3   : > { %v7362_v21 = vld [vmem:[#allocation6 + $0x234] ss:$8 sps:$4 sm:$0xff]   ;;  %v7365_v22 = vld [vmem:[#allocation6 + $0x344] ss:$8 sps:$4 sm:$0xff]   ;;  %v7360_v23 = vld [vmem:[#allocation6 + $0x230] ss:$8 sps:$4 sm:$0xff]  }
  0xb4   : > { %1180 = vmatpush1.bf16.msra.mxu0 %v7280_v31  ;;  %v7363_v24 = vld [vmem:[#allocation6 + $0x340] ss:$8 sps:$4 sm:$0xff]   ;;  %v7368_v25 = vld [vmem:[#allocation6 + $0x224] ss:$8 sps:$4 sm:$0xff]   ;;  %v7371_v26 = vld [vmem:[#allocation6 + $0x334] ss:$8 sps:$4 sm:$0xff]  }
  0xb5   : > { %1223 = vmatpush1.bf16.msra.mxu1 %v7281_v32  ;;  %1181 = vmatprep.subr.bf16.mxu0 %v7282_v33  ;;  %v7366_v27 = vld [vmem:[#allocation6 + $0x220] ss:$8 sps:$4 sm:$0xff]   ;;  %v7369_v28 = vld [vmem:[#allocation6 + $0x330] ss:$8 sps:$4 sm:$0xff]   ;;  %v7374_v29 = vld [vmem:[#allocation6 + $0x214] ss:$8 sps:$4 sm:$0xff]  }
  0xb6   : > { %1224 = vmatprep.subr.bf16.mxu1 %v7284_v34  ;;  %v7377_v30 = vld [vmem:[#allocation6 + $0x324] ss:$8 sps:$4 sm:$0xff]   ;;  %v7372_v31 = vld [vmem:[#allocation6 + $0x210] ss:$8 sps:$4 sm:$0xff]   ;;  %v7375_v32 = vld [vmem:[#allocation6 + $0x320] ss:$8 sps:$4 sm:$0xff]  }
  0xb7   : > { %v7380_v33 = vld [vmem:[#allocation6 + $0x204] ss:$8 sps:$4 sm:$0xff]   ;;  %s9269_s2 = smov (!%p510_p12, %s6355_s2), 3  ;;  %vm4473_vm2 = vcmask 1044480   ;;  %vm8502_vm3 = vmmov 0   ;;  %vm4468_vm4 = vcmask 72704  }
  0xb8   : > { %1182 = vmatpush2.bf16.msra.mxu0 %v7286_v35  ;;  %v8772_v34 = vld [vmem:[%s8740_s18 + $0x14] ss:$28 sps:$4 sm:$0xff]   ;;  %s6356_s25 = sshll.u32 %s9269_s2, 2  ;;  %vm4847_vm5 = vcmask 1040384   ;;  %vm4843_vm6 = vcmask 408576   ;;  %vm5047_vm7 = vcmask 916480  }
  0xb9   : > { %1225 = vmatpush2.bf16.msra.mxu1 %v7287_v36  ;;  %1183 = vmatprep.subr.bf16.mxu0 %v7288_v37  ;;  %v7383_v35 = vld [vmem:[#allocation6 + $0x314] ss:$8 sps:$4 sm:$0xff]   ;;  %v7378_v36 = vld [vmem:[#allocation6 + $0x200] ss:$8 sps:$4 sm:$0xff]   ;;  %v7381_v37 = vld [vmem:[#allocation6 + $0x310] ss:$8 sps:$4 sm:$0xff]   ;;  %s8851_s29 = scalar_lea.vmem %s9220_s1, %s6356_s25 }
  0xba   : > { %1226 = vmatprep.subr.bf16.mxu1 %v7290_v38  ;;  %v7386_v38 = vld [vmem:[#allocation6 + $0x2f4] ss:$8 sps:$4 sm:$0xff]   ;;  %s507_s14 = scalar_lea.vmem [#allocation15], %s8736_s23  ;;  %vm6186_vm8 = vcmask 122880   ;;  %s6189_s13 = scalar_lea.sflag [#allocation5], %s8736_s23 }
  0xbb   : > { %s6201_s26 = sshll.u32 %s507_s14, 4  ;;  %p9261_p0 = scmp.ne.s32.totalorder %s9250_s10, 0  ;;  %s6202_s26 = int_to_ptr.vmem [resolvable:$true] %s6201_s26 }
  0xbc   : > { %1184 = vmatpush2.bf16.msra.mxu0 %v7292_v39  ;;  %v7389_v39 = vld [vmem:[#allocation6 + $0x404] ss:$8 sps:$4 sm:$0xff]   ;;  %s8406_s5 = scalar_lea.vmem %s6202_s26, 16  ;;  %s8503_s3 = smov [#allocation15]  }
  0xbd   : > { %1227 = vmatpush2.bf16.msra.mxu1 %v7293_v40  ;;  %1185 = vmatprep.subr.bf16.mxu0 %v7294_v41  ;;  %v7384_v40 = vld [vmem:[#allocation6 + $0x2f0] ss:$8 sps:$4 sm:$0xff]   ;;  %v7387_v41 = vld [vmem:[#allocation6 + $0x400] ss:$8 sps:$4 sm:$0xff]   ;;  %p8407_p6 = scmp.ne.s32.totalorder %s6202_s26, %s8406_s5  ;;  %s8410_s6 = sshll.u32 %s8503_s3, 4  ;;  %s8411_s6 = int_to_ptr.vmem [resolvable:$false] %s8410_s6 }
  0xbe   : > { %1228 = vmatprep.subr.bf16.mxu1 %v7296_v42  ;;  %v7392_v42 = vld [vmem:[#allocation6 + $0x2e4] ss:$8 sps:$4 sm:$0xff]   ;;  %p8413_p9 = scmp.lt.s32.totalorder %s6202_s26, %s8411_s6 }
  0xbf   : > { %p8408_p5 = pnand %p8407_p6, %p9261_p0 }
  0xc0   : > { %1186 = vmatpush2.bf16.msra.mxu0 %v7298_v43  ;;  %v7395_v43 = vld [vmem:[#allocation6 + $0x3f4] ss:$8 sps:$4 sm:$0xff]  }
  0xc1   : > { %1229 = vmatpush2.bf16.msra.mxu1 %v7299_v44  ;;  %1187 = vmatprep.subr.bf16.mxu0 %v7300_v45  ;;  %v7390_v44 = vld [vmem:[#allocation6 + $0x2e0] ss:$8 sps:$4 sm:$0xff]   ;;  %v7393_v45 = vld [vmem:[#allocation6 + $0x3f0] ss:$8 sps:$4 sm:$0xff]   ;;  %p8409_p7 = pneg %p8408_p5 }
  0xc2   : > { %1230 = vmatprep.subr.bf16.mxu1 %v7302_v46  ;;  %v7398_v46 = vld [vmem:[#allocation6 + $0x2d4] ss:$8 sps:$4 sm:$0xff]  }
  0xc4   : > { %1188 = vmatpush2.bf16.msra.mxu0 %v7304_v47  ;;  %v7401_v47 = vld [vmem:[#allocation6 + $0x3e4] ss:$8 sps:$4 sm:$0xff]  }
  0xc5   : > { %1231 = vmatpush2.bf16.msra.mxu1 %v7305_v48  ;;  %1189 = vmatprep.subr.bf16.mxu0 %v7306_v50  ;;  %v7396_v48 = vld [vmem:[#allocation6 + $0x2d0] ss:$8 sps:$4 sm:$0xff]   ;;  %v7404_v50 = vld [vmem:[#allocation6 + $0x2c4] ss:$8 sps:$4 sm:$0xff]  }
  0xc6   : > { %1232 = vmatprep.subr.bf16.mxu1 %v7308_v52  ;;  %v7407_v52 = vld [vmem:[#allocation6 + $0x3d4] ss:$8 sps:$4 sm:$0xff]  }
  0xc8   : > { %1190 = vmatpush2.bf16.msra.mxu0 %v7310_v53  ;;  %v7402_v53 = vld [vmem:[#allocation6 + $0x2c0] ss:$8 sps:$4 sm:$0xff]  }
  0xc9   : > { %1233 = vmatpush2.bf16.msra.mxu1 %v7311_v54  ;;  %1191 = vmatprep.subr.bf16.mxu0 %v7312_v55  ;;  %v7405_v54 = vld [vmem:[#allocation6 + $0x3d0] ss:$8 sps:$4 sm:$0xff]   ;;  %v7410_v55 = vld [vmem:[#allocation6 + $0x2b4] ss:$8 sps:$4 sm:$0xff]  }
  0xca   : > { %1234 = vmatprep.subr.bf16.mxu1 %v7314_v56  ;;  %v7413_v56 = vld [vmem:[#allocation6 + $0x3c4] ss:$8 sps:$4 sm:$0xff]  }
  0xcc   : > { %1192 = vmatpush2.bf16.msra.mxu0 %v7316_v57  ;;  %v7408_v57 = vld [vmem:[#allocation6 + $0x2b0] ss:$8 sps:$4 sm:$0xff]  }
  0xcd   : > { %1235 = vmatpush2.bf16.msra.mxu1 %v7317_v58  ;;  %1193 = vmatprep.subr.bf16.mxu0 %v7318_v59  ;;  %v7411_v58 = vld [vmem:[#allocation6 + $0x3c0] ss:$8 sps:$4 sm:$0xff]   ;;  %v7416_v59 = vld [vmem:[#allocation6 + $0x2a4] ss:$8 sps:$4 sm:$0xff]  }
  0xce   : > { %1236 = vmatprep.subr.bf16.mxu1 %v7320_v60  ;;  %v7419_v60 = vld [vmem:[#allocation6 + $0x3b4] ss:$8 sps:$4 sm:$0xff]  }
  0xd0   : > { %1194 = vmatpush2.bf16.msra.mxu0 %v7322_v61  ;;  %v7414_v61 = vld [vmem:[#allocation6 + $0x2a0] ss:$8 sps:$4 sm:$0xff]  }
  0xd1   : > { %1237 = vmatpush2.bf16.msra.mxu1 %v7323_v62  ;;  %1195 = vmatprep.subr.bf16.mxu0 %v7324_v63  ;;  %v7417_v62 = vld [vmem:[#allocation6 + $0x3b0] ss:$8 sps:$4 sm:$0xff]   ;;  %v7422_v63 = vld [vmem:[#allocation6 + $0x294] ss:$8 sps:$4 sm:$0xff]  }
  0xd2   : > { %1238 = vmatprep.subr.bf16.mxu1 %v7326_v0  ;;  %v7425_v0 = vld [vmem:[#allocation6 + $0x3a4] ss:$8 sps:$4 sm:$0xff]  }
  0xd4   : > { %1196 = vmatpush2.bf16.msra.mxu0 %v7328_v1  ;;  %v7420_v1 = vld [vmem:[#allocation6 + $0x290] ss:$8 sps:$4 sm:$0xff]  }
  0xd5   : > { %1239 = vmatpush2.bf16.msra.mxu1 %v7329_v2  ;;  %1251 = vmatprep.subr.bf16.mxu0 %v7338_v3  ;;  %v7423_v2 = vld [vmem:[#allocation6 + $0x3a0] ss:$8 sps:$4 sm:$0xff]   ;;  %v7428_v3 = vld [vmem:[#allocation6 + $0x284] ss:$8 sps:$4 sm:$0xff]  }
  0xd6   : > { %1939 = vmatprep.subr.bf16.mxu1 %v7341_v4  ;;  %v7431_v4 = vld [vmem:[#allocation6 + $0x394] ss:$8 sps:$4 sm:$0xff]  }
  0xd7   : > { %1198 = vmatmul.mubr.bf16.vlgmr.msra.gmra.mxu0 %v8764_v5 }
  0xd8   : > { %1241 = vmatmul.mubr.bf16.vlgmr.msra.gmra.mxu1 %v8767_v6  ;;  %1252 = vmatpush1.bf16.msra.mxu0 %v7336_v7  ;;  %v7426_v7 = vld [vmem:[#allocation6 + $0x280] ss:$8 sps:$4 sm:$0xff]  }
  0xd9   : > { %1940 = vmatpush1.bf16.msra.mxu1 %v7339_v8  ;;  %1253 = vmatprep.subr.bf16.mxu0 %v7344_v9  ;;  %v7429_v8 = vld [vmem:[#allocation6 + $0x390] ss:$8 sps:$4 sm:$0xff]   ;;  %v7437_v9 = vld [vmem:[#allocation6 + $0x584] ss:$8 sps:$4 sm:$0xff]  }
  0xda   : > { %1941 = vmatprep.subr.bf16.mxu1 %v7347_v10  ;;  %1971 = vmatprep.mubr.bf16.mxu1 %v7330_v49  ;;  %v7399_v49 = vld [vmem:[#allocation6 + $0x3e0] ss:$8 sps:$4 sm:$0xff]   ;;  %v7440_v10 = vld [vmem:[#allocation6 + $0x304] ss:$8 sps:$4 sm:$0xff]  }
  0xdb   : > { %1283 = vmatprep.mubr.bf16.mxu0 %v8772_v34 }
  0xdc   : > { %1254 = vmatpush1.bf16.msra.mxu0 %v7342_v11  ;;  %v8776_v11 = vld [vmem:[%s8740_s18 + $0x10] ss:$28 sps:$4 sm:$0xff]  }
  0xdd   : > { %1942 = vmatpush1.bf16.msra.mxu1 %v7345_v12  ;;  %1255 = vmatprep.subr.bf16.mxu0 %v7350_v13  ;;  %v7435_v12 = vld [vmem:[#allocation6 + $0x580] ss:$8 sps:$4 sm:$0xff]  }
  0xde   : > { %1943 = vmatprep.subr.bf16.mxu1 %v7353_v14  ;;  %v7438_v13 = vld [vmem:[#allocation6 + $0x300] ss:$8 sps:$4 sm:$0xff]   ;;  %v7443_v14 = vld [vmem:[#allocation6 + $0x574] ss:$8 sps:$4 sm:$0xff]  }
  0xe0   : > { %1256 = vmatpush1.bf16.msra.mxu0 %v7348_v15  ;;  %v7446_v15 = vld [vmem:[#allocation6 + $0x484] ss:$8 sps:$4 sm:$0xff]  }
  0xe1   : > { %1944 = vmatpush1.bf16.msra.mxu1 %v7351_v16  ;;  %1257 = vmatprep.subr.bf16.mxu0 %v7356_v17  ;;  %v7441_v16 = vld [vmem:[#allocation6 + $0x570] ss:$8 sps:$4 sm:$0xff]   ;;  %v8499_v17 = vmov 0  }
  0xe2   : > { %1945 = vmatprep.subr.bf16.mxu1 %v7359_v18  ;;  %v7450_v18 = vld [vmem:[#allocation6 + $0x564] ss:$8 sps:$4 sm:$0xff]  }
  0xe4   : > { %1258 = vmatpush1.bf16.msra.mxu0 %v7354_v19  ;;  %v7444_v19 = vld [vmem:[#allocation6 + $0x480] ss:$8 sps:$4 sm:$0xff]  }
  0xe5   : > { %1946 = vmatpush1.bf16.msra.mxu1 %v7357_v20  ;;  %1259 = vmatprep.subr.bf16.mxu0 %v7362_v21  ;;  %v8783_v20 = vld [vmem:[%s8740_s18 + $0x18] ss:$28 sps:$4 sm:$0xff]  }
  0xe6   : > { %1947 = vmatprep.subr.bf16.mxu1 %v7365_v22  ;;  %v7448_v21 = vld [vmem:[#allocation6 + $0x560] ss:$8 sps:$4 sm:$0xff]   ;;  %v7453_v22 = vld [vmem:[#allocation6 + $0x474] ss:$8 sps:$4 sm:$0xff]  }
  0xe8   : > { %1260 = vmatpush1.bf16.msra.mxu0 %v7360_v23  ;;  %v7451_v23 = vld [vmem:[#allocation6 + $0x470] ss:$8 sps:$4 sm:$0xff]  }
  0xe9   : > { %1948 = vmatpush1.bf16.msra.mxu1 %v7363_v24  ;;  %1261 = vmatprep.subr.bf16.mxu0 %v7368_v25  ;;  %v7454_v24 = vld [vmem:[#allocation6 + $0x550] ss:$8 sps:$4 sm:$0xff]   ;;  %v7459_v25 = vld [vmem:[#allocation6 + $0x464] ss:$8 sps:$4 sm:$0xff]  }
  0xea   : > { %1949 = vmatprep.subr.bf16.mxu1 %v7371_v26  ;;  %v7462_v26 = vld [vmem:[#allocation6 + $0x544] ss:$8 sps:$4 sm:$0xff]  }
  0xec   : > { %1262 = vmatpush1.bf16.msra.mxu0 %v7366_v27  ;;  %v7457_v27 = vld [vmem:[#allocation6 + $0x460] ss:$8 sps:$4 sm:$0xff]  }
  0xed   : > { %1950 = vmatpush1.bf16.msra.mxu1 %v7369_v28  ;;  %1263 = vmatprep.subr.bf16.mxu0 %v7374_v29  ;;  %v7460_v28 = vld [vmem:[#allocation6 + $0x540] ss:$8 sps:$4 sm:$0xff]   ;;  %v7465_v29 = vld [vmem:[#allocation6 + $0x454] ss:$8 sps:$4 sm:$0xff]  }
  0xee   : > { %1951 = vmatprep.subr.bf16.mxu1 %v7377_v30  ;;  %v7468_v30 = vld [vmem:[#allocation6 + $0x534] ss:$8 sps:$4 sm:$0xff]  }
  0xf0   : > { %1264 = vmatpush1.bf16.msra.mxu0 %v7372_v31  ;;  %v7463_v31 = vld [vmem:[#allocation6 + $0x450] ss:$8 sps:$4 sm:$0xff]  }
  0xf1   : > { %1952 = vmatpush1.bf16.msra.mxu1 %v7375_v32  ;;  %1265 = vmatprep.subr.bf16.mxu0 %v7380_v33  ;;  %v7466_v32 = vld [vmem:[#allocation6 + $0x530] ss:$8 sps:$4 sm:$0xff]   ;;  %v7471_v33 = vld [vmem:[#allocation6 + $0x444] ss:$8 sps:$4 sm:$0xff]  }
  0xf2   : > { %1953 = vmatprep.subr.bf16.mxu1 %v7383_v35  ;;  %v7469_v35 = vld [vmem:[#allocation6 + $0x440] ss:$8 sps:$4 sm:$0xff]  }
  0xf4   : > { %1266 = vmatpush1.bf16.msra.mxu0 %v7378_v36  ;;  %v7477_v36 = vld [vmem:[#allocation6 + $0x434] ss:$8 sps:$4 sm:$0xff]  }
  0xf5   : > { %1954 = vmatpush1.bf16.msra.mxu1 %v7381_v37  ;;  %1267 = vmatprep.subr.bf16.mxu0 %v7386_v38  ;;  %v7480_v37 = vld [vmem:[#allocation6 + $0x514] ss:$8 sps:$4 sm:$0xff]   ;;  %v7475_v38 = vld [vmem:[#allocation6 + $0x430] ss:$8 sps:$4 sm:$0xff]  }
  0xf6   : > { %1955 = vmatprep.subr.bf16.mxu1 %v7389_v39  ;;  %v7478_v39 = vld [vmem:[#allocation6 + $0x510] ss:$8 sps:$4 sm:$0xff]  }
  0xf8   : > { %1268 = vmatpush2.bf16.msra.mxu0 %v7384_v40  ;;  %v7483_v40 = vld [vmem:[#allocation6 + $0x424] ss:$8 sps:$4 sm:$0xff]  }
  0xf9   : > { %1956 = vmatpush2.bf16.msra.mxu1 %v7387_v41  ;;  %1269 = vmatprep.subr.bf16.mxu0 %v7392_v42  ;;  %v7486_v41 = vld [vmem:[#allocation6 + $0x604] ss:$8 sps:$4 sm:$0xff]   ;;  %v7481_v42 = vld [vmem:[#allocation6 + $0x420] ss:$8 sps:$4 sm:$0xff]  }
  0xfa   : > { %1957 = vmatprep.subr.bf16.mxu1 %v7395_v43  ;;  %v7484_v43 = vld [vmem:[#allocation6 + $0x600] ss:$8 sps:$4 sm:$0xff]  }
  0xfc   : > { %1270 = vmatpush2.bf16.msra.mxu0 %v7390_v44  ;;  %v7489_v44 = vld [vmem:[#allocation6 + $0x414] ss:$8 sps:$4 sm:$0xff]  }
  0xfd   : > { %1958 = vmatpush2.bf16.msra.mxu1 %v7393_v45  ;;  %1271 = vmatprep.subr.bf16.mxu0 %v7398_v46  ;;  %v7492_v45 = vld [vmem:[#allocation6 + $0x5f4] ss:$8 sps:$4 sm:$0xff]   ;;  %v7487_v46 = vld [vmem:[#allocation6 + $0x410] ss:$8 sps:$4 sm:$0xff]  }
  0xfe   : > { %1959 = vmatprep.subr.bf16.mxu1 %v7401_v47  ;;  %v7490_v47 = vld [vmem:[#allocation6 + $0x5f0] ss:$8 sps:$4 sm:$0xff]  }
 0x100   : > { %1272 = vmatpush2.bf16.msra.mxu0 %v7396_v48  ;;  %v7495_v48 = vld [vmem:[#allocation6 + $0x504] ss:$8 sps:$4 sm:$0xff]  }
 0x101   : > { %1960 = vmatpush2.bf16.msra.mxu1 %v7399_v49  ;;  %1273 = vmatprep.subr.bf16.mxu0 %v7404_v50  ;;  %v7498_v49 = vld [vmem:[#allocation6 + $0x5e4] ss:$8 sps:$4 sm:$0xff]   ;;  %v7493_v50 = vld [vmem:[#allocation6 + $0x500] ss:$8 sps:$4 sm:$0xff]  }
 0x102   : > { %1961 = vmatprep.subr.bf16.mxu1 %v7407_v52  ;;  %v7496_v52 = vld [vmem:[#allocation6 + $0x5e0] ss:$8 sps:$4 sm:$0xff]  }
 0x104   : > { %1274 = vmatpush2.bf16.msra.mxu0 %v7402_v53  ;;  %v7501_v53 = vld [vmem:[#allocation6 + $0x4f4] ss:$8 sps:$4 sm:$0xff]  }
 0x105   : > { %1962 = vmatpush2.bf16.msra.mxu1 %v7405_v54  ;;  %1275 = vmatprep.subr.bf16.mxu0 %v7410_v55  ;;  %v7504_v54 = vld [vmem:[#allocation6 + $0x5d4] ss:$8 sps:$4 sm:$0xff]   ;;  %v7499_v55 = vld [vmem:[#allocation6 + $0x4f0] ss:$8 sps:$4 sm:$0xff]  }
 0x106   : > { %1963 = vmatprep.subr.bf16.mxu1 %v7413_v56  ;;  %v7502_v56 = vld [vmem:[#allocation6 + $0x5d0] ss:$8 sps:$4 sm:$0xff]  }
 0x108   : > { %1276 = vmatpush2.bf16.msra.mxu0 %v7408_v57  ;;  %v7507_v57 = vld [vmem:[#allocation6 + $0x4e4] ss:$8 sps:$4 sm:$0xff]  }
 0x109   : > { %1964 = vmatpush2.bf16.msra.mxu1 %v7411_v58  ;;  %1277 = vmatprep.subr.bf16.mxu0 %v7416_v59  ;;  %v7510_v58 = vld [vmem:[#allocation6 + $0x5c4] ss:$8 sps:$4 sm:$0xff]   ;;  %v7505_v59 = vld [vmem:[#allocation6 + $0x4e0] ss:$8 sps:$4 sm:$0xff]  }
 0x10a   : > { %1965 = vmatprep.subr.bf16.mxu1 %v7419_v60  ;;  %v7508_v60 = vld [vmem:[#allocation6 + $0x5c0] ss:$8 sps:$4 sm:$0xff]  }
 0x10c   : > { %1278 = vmatpush2.bf16.msra.mxu0 %v7414_v61  ;;  %v7513_v61 = vld [vmem:[#allocation6 + $0x4d4] ss:$8 sps:$4 sm:$0xff]  }
 0x10d   : > { %1966 = vmatpush2.bf16.msra.mxu1 %v7417_v62  ;;  %1279 = vmatprep.subr.bf16.mxu0 %v7422_v63  ;;  %v7516_v62 = vld [vmem:[#allocation6 + $0x5b4] ss:$8 sps:$4 sm:$0xff]   ;;  %v7511_v63 = vld [vmem:[#allocation6 + $0x4d0] ss:$8 sps:$4 sm:$0xff]  }
 0x10e   : > { %1967 = vmatprep.subr.bf16.mxu1 %v7425_v0  ;;  %v7514_v0 = vld [vmem:[#allocation6 + $0x5b0] ss:$8 sps:$4 sm:$0xff]  }
 0x110   : > { %1280 = vmatpush2.bf16.msra.mxu0 %v7420_v1  ;;  %v7519_v1 = vld [vmem:[#allocation6 + $0x4c4] ss:$8 sps:$4 sm:$0xff]  }
 0x111   : > { %1968 = vmatpush2.bf16.msra.mxu1 %v7423_v2  ;;  %1281 = vmatprep.subr.bf16.mxu0 %v7428_v3  ;;  %v7522_v2 = vld [vmem:[#allocation6 + $0x5a4] ss:$8 sps:$4 sm:$0xff]   ;;  %v7517_v3 = vld [vmem:[#allocation6 + $0x4c0] ss:$8 sps:$4 sm:$0xff]  }
 0x112   : > { %1969 = vmatprep.subr.bf16.mxu1 %v7431_v4  ;;  %v7520_v4 = vld [vmem:[#allocation6 + $0x5a0] ss:$8 sps:$4 sm:$0xff]  }
 0x114   : > { %1282 = vmatpush2.bf16.msra.mxu0 %v7426_v7  ;;  %v7525_v7 = vld [vmem:[#allocation6 + $0x4b4] ss:$8 sps:$4 sm:$0xff]  }
 0x115   : > { %1970 = vmatpush2.bf16.msra.mxu1 %v7429_v8  ;;  %1308 = vmatprep.subr.bf16.mxu0 %v7440_v10  ;;  %v7528_v8 = vld [vmem:[#allocation6 + $0x594] ss:$8 sps:$4 sm:$0xff]   ;;  %v7526_v10 = vld [vmem:[#allocation6 + $0x590] ss:$8 sps:$4 sm:$0xff]  }
 0x116   : > { %2025 = vmatprep.subr.bf16.mxu1 %v7437_v9  ;;  %v7523_v9 = vld [vmem:[#allocation6 + $0x4b0] ss:$8 sps:$4 sm:$0xff]  }
 0x117   : > { %1284 = vmatmul.mubr.bf16.vlgmr.msra.gmra.mxu0 %v8776_v11 }
 0x118   : > { %1972 = vmatmul.mubr.bf16.vlgmr.msra.gmra.mxu1 %v8764_v5  ;;  %1309 = vmatpush1.bf16.msra.mxu0 %v7438_v13  ;;  %v7456_v5 = vld [vmem:[#allocation6 + $0x554] ss:$8 sps:$4 sm:$0xff]  }
 0x119   : > { %2026 = vmatpush1.bf16.msra.mxu1 %v7435_v12  ;;  %1326 = vmatprep.mubr.bf16.mxu0 %v8499_v17  ;;  %v7531_v12 = vld [vmem:[#allocation6 + $0x4a4] ss:$8 sps:$4 sm:$0xff]   ;;  %v7534_v13 = vld [vmem:[#allocation6 + $0x794] ss:$8 sps:$4 sm:$0xff]  }
 0x11a   : > { %2027 = vmatprep.subr.bf16.mxu1 %v7443_v14  ;;  %1982 = vmatprep.subr.bf16.mxu0 %v7446_v15  ;;  %v7529_v14 = vld [vmem:[#allocation6 + $0x4a0] ss:$8 sps:$4 sm:$0xff]   ;;  %v7532_v15 = vld [vmem:[#allocation6 + $0x790] ss:$8 sps:$4 sm:$0xff]  }
 0x11b   : > { %2057 = vmatprep.mubr.bf16.mxu1 %v8772_v34  ;;  %v7474_v34 = vld [vmem:[#allocation6 + $0x524] ss:$8 sps:$4 sm:$0xff]  }
 0x11d   : > { %2028 = vmatpush1.bf16.msra.mxu1 %v7441_v16  ;;  %v7537_v16 = vld [vmem:[#allocation6 + $0x494] ss:$8 sps:$4 sm:$0xff]  }
 0x11e   : > { %2029 = vmatprep.subr.bf16.mxu1 %v7450_v18  ;;  %v7540_v18 = vld [vmem:[#allocation6 + $0x784] ss:$8 sps:$4 sm:$0xff]  }
 0x11f   : > { %6462 = vmatmul.mubr.msk.bf16.vlgmr.msra.gmra.mxu0 %vm1161_vm0, %v8783_v20 }
 0x120   : > { %1983 = vmatpush1.bf16.msra.mxu0 %v7444_v19  ;;  %2014 = vmatprep.mubr.bf16.mxu0 %v8760_v51  ;;  %v7472_v51 = vld [vmem:[#allocation6 + $0x520] ss:$8 sps:$4 sm:$0xff]   ;;  %v7535_v19 = vld [vmem:[#allocation6 + $0x490] ss:$8 sps:$4 sm:$0xff]  }
 0x121   : > { %2030 = vmatpush1.bf16.msra.mxu1 %v7448_v21  ;;  %1984 = vmatprep.subr.bf16.mxu0 %v7453_v22  ;;  %v7538_v21 = vld [vmem:[#allocation6 + $0x780] ss:$8 sps:$4 sm:$0xff]   ;;  %v7543_v22 = vld [vmem:[#allocation6 + $0x774] ss:$8 sps:$4 sm:$0xff]  }
 0x122   : > { %2031 = vmatprep.subr.bf16.mxu1 %v7456_v5  ;;  %v7546_v5 = vld [vmem:[#allocation6 + $0x614] ss:$8 sps:$4 sm:$0xff]  }
 0x124   : > { %1985 = vmatpush1.bf16.msra.mxu0 %v7451_v23  ;;  %v8209_v23 = vld [vmem:[%s8740_s18 + $0xc] ss:$28 sps:$4 sm:$0xff]  }
 0x125   : > { %2032 = vmatpush1.bf16.msra.mxu1 %v7454_v24  ;;  %1986 = vmatprep.subr.bf16.mxu0 %v7459_v25  ;;  %v7541_v24 = vld [vmem:[#allocation6 + $0x770] ss:$8 sps:$4 sm:$0xff]  }
 0x126   : > { %2033 = vmatprep.subr.bf16.mxu1 %v7462_v26  ;;  %v7544_v25 = vld [vmem:[#allocation6 + $0x610] ss:$8 sps:$4 sm:$0xff]   ;;  %v7549_v26 = vld [vmem:[#allocation6 + $0x764] ss:$8 sps:$4 sm:$0xff]  }
 0x128   : > { %1987 = vmatpush1.bf16.msra.mxu0 %v7457_v27  ;;  %v7552_v27 = vld [vmem:[#allocation6 + $0x694] ss:$8 sps:$4 sm:$0xff]  }
 0x129   : > { %2034 = vmatpush1.bf16.msra.mxu1 %v7460_v28  ;;  %1988 = vmatprep.subr.bf16.mxu0 %v7465_v29  ;;  %v7555_v28 = vld [vmem:[#allocation6 + $0x754] ss:$8 sps:$4 sm:$0xff]   ;;  %v7550_v29 = vld [vmem:[#allocation6 + $0x690] ss:$8 sps:$4 sm:$0xff]  }
 0x12a   : > { %2035 = vmatprep.subr.bf16.mxu1 %v7468_v30  ;;  %v7553_v30 = vld [vmem:[#allocation6 + $0x750] ss:$8 sps:$4 sm:$0xff]  }
 0x12c   : > { %1989 = vmatpush1.bf16.msra.mxu0 %v7463_v31  ;;  %v7558_v31 = vld [vmem:[#allocation6 + $0x684] ss:$8 sps:$4 sm:$0xff]  }
 0x12d   : > { %2036 = vmatpush1.bf16.msra.mxu1 %v7466_v32  ;;  %1990 = vmatprep.subr.bf16.mxu0 %v7471_v33  ;;  %v7561_v32 = vld [vmem:[#allocation6 + $0x744] ss:$8 sps:$4 sm:$0xff]   ;;  %v7556_v33 = vld [vmem:[#allocation6 + $0x680] ss:$8 sps:$4 sm:$0xff]  }
 0x12e   : > { %2037 = vmatprep.subr.bf16.mxu1 %v7474_v34  ;;  %v7564_v34 = vld [vmem:[#allocation6 + $0x674] ss:$8 sps:$4 sm:$0xff]  }
 0x130   : > { %1991 = vmatpush1.bf16.msra.mxu0 %v7469_v35  ;;  %v7567_v35 = vld [vmem:[#allocation6 + $0x734] ss:$8 sps:$4 sm:$0xff]  }
 0x131   : > { %2038 = vmatpush1.bf16.msra.mxu1 %v7472_v51  ;;  %1992 = vmatprep.subr.bf16.mxu0 %v7477_v36  ;;  %v8795_v51 = vld [vmem:[%s8740_s18 + $0x4] ss:$28 sps:$4 sm:$0xff]  }
 0x132   : > { %2039 = vmatprep.subr.bf16.mxu1 %v7480_v37  ;;  %v7562_v36 = vld [vmem:[#allocation6 + $0x670] ss:$8 sps:$4 sm:$0xff]  }
 0x133   : > { %v7565_v37 = vld [vmem:[#allocation6 + $0x730] ss:$8 sps:$4 sm:$0xff]  }
 0x134   : > { %1993 = vmatpush1.bf16.msra.mxu0 %v7475_v38  ;;  %v7570_v38 = vld [vmem:[#allocation6 + $0x664] ss:$8 sps:$4 sm:$0xff]  }
 0x135   : > { %2040 = vmatpush1.bf16.msra.mxu1 %v7478_v39  ;;  %1994 = vmatprep.subr.bf16.mxu0 %v7483_v40  ;;  %v7573_v39 = vld [vmem:[#allocation6 + $0x724] ss:$8 sps:$4 sm:$0xff]   ;;  %v7568_v40 = vld [vmem:[#allocation6 + $0x660] ss:$8 sps:$4 sm:$0xff]  }
 0x136   : > { %2041 = vmatprep.subr.bf16.mxu1 %v7486_v41  ;;  %v7571_v41 = vld [vmem:[#allocation6 + $0x720] ss:$8 sps:$4 sm:$0xff]  }
 0x138   : > { %1995 = vmatpush1.bf16.msra.mxu0 %v7481_v42  ;;  %v7576_v42 = vld [vmem:[#allocation6 + $0x654] ss:$8 sps:$4 sm:$0xff]  }
 0x139   : > { %2042 = vmatpush2.bf16.msra.mxu1 %v7484_v43  ;;  %1996 = vmatprep.subr.bf16.mxu0 %v7489_v44  ;;  %v7579_v43 = vld [vmem:[#allocation6 + $0x814] ss:$8 sps:$4 sm:$0xff]   ;;  %v7574_v44 = vld [vmem:[#allocation6 + $0x650] ss:$8 sps:$4 sm:$0xff]  }
 0x13a   : > { %2043 = vmatprep.subr.bf16.mxu1 %v7492_v45  ;;  %v7577_v45 = vld [vmem:[#allocation6 + $0x810] ss:$8 sps:$4 sm:$0xff]  }
 0x13c   : > { %1997 = vmatpush1.bf16.msra.mxu0 %v7487_v46  ;;  %v7582_v46 = vld [vmem:[#allocation6 + $0x644] ss:$8 sps:$4 sm:$0xff]  }
 0x13d   : > { %2044 = vmatpush2.bf16.msra.mxu1 %v7490_v47  ;;  %1998 = vmatprep.subr.bf16.mxu0 %v7495_v48  ;;  %v7585_v47 = vld [vmem:[#allocation6 + $0x804] ss:$8 sps:$4 sm:$0xff]   ;;  %v7580_v48 = vld [vmem:[#allocation6 + $0x640] ss:$8 sps:$4 sm:$0xff]  }
 0x13e   : > { %2045 = vmatprep.subr.bf16.mxu1 %v7498_v49  ;;  %v7583_v49 = vld [vmem:[#allocation6 + $0x800] ss:$8 sps:$4 sm:$0xff]  }
 0x140   : > { %1999 = vmatpush2.bf16.msra.mxu0 %v7493_v50  ;;  %v7588_v50 = vld [vmem:[#allocation6 + $0x634] ss:$8 sps:$4 sm:$0xff]  }
 0x141   : > { %2046 = vmatpush2.bf16.msra.mxu1 %v7496_v52  ;;  %2000 = vmatprep.subr.bf16.mxu0 %v7501_v53  ;;  %v7591_v52 = vld [vmem:[#allocation6 + $0x7f4] ss:$8 sps:$4 sm:$0xff]   ;;  %v7586_v53 = vld [vmem:[#allocation6 + $0x630] ss:$8 sps:$4 sm:$0xff]  }
 0x142   : > { %2047 = vmatprep.subr.bf16.mxu1 %v7504_v54  ;;  %v7589_v54 = vld [vmem:[#allocation6 + $0x7f0] ss:$8 sps:$4 sm:$0xff]  }
 0x144   : > { %2001 = vmatpush2.bf16.msra.mxu0 %v7499_v55  ;;  %v7594_v55 = vld [vmem:[#allocation6 + $0x624] ss:$8 sps:$4 sm:$0xff]  }
 0x145   : > { %2048 = vmatpush2.bf16.msra.mxu1 %v7502_v56  ;;  %2002 = vmatprep.subr.bf16.mxu0 %v7507_v57  ;;  %v7597_v56 = vld [vmem:[#allocation6 + $0x7e4] ss:$8 sps:$4 sm:$0xff]   ;;  %v7592_v57 = vld [vmem:[#allocation6 + $0x620] ss:$8 sps:$4 sm:$0xff]  }
 0x146   : > { %2049 = vmatprep.subr.bf16.mxu1 %v7510_v58  ;;  %v7595_v58 = vld [vmem:[#allocation6 + $0x7e0] ss:$8 sps:$4 sm:$0xff]  }
 0x148   : > { %2003 = vmatpush2.bf16.msra.mxu0 %v7505_v59  ;;  %v7600_v59 = vld [vmem:[#allocation6 + $0x714] ss:$8 sps:$4 sm:$0xff]  }
 0x149   : > { %2050 = vmatpush2.bf16.msra.mxu1 %v7508_v60  ;;  %2004 = vmatprep.subr.bf16.mxu0 %v7513_v61  ;;  %v7603_v60 = vld [vmem:[#allocation6 + $0x7d4] ss:$8 sps:$4 sm:$0xff]   ;;  %v7598_v61 = vld [vmem:[#allocation6 + $0x710] ss:$8 sps:$4 sm:$0xff]  }
 0x14a   : > { %2051 = vmatprep.subr.bf16.mxu1 %v7516_v62  ;;  %v7601_v62 = vld [vmem:[#allocation6 + $0x7d0] ss:$8 sps:$4 sm:$0xff]  }
 0x14c   : > { %2005 = vmatpush2.bf16.msra.mxu0 %v7511_v63  ;;  %v7606_v63 = vld [vmem:[#allocation6 + $0x704] ss:$8 sps:$4 sm:$0xff]  }
 0x14d   : > { %2052 = vmatpush2.bf16.msra.mxu1 %v7514_v0  ;;  %2006 = vmatprep.subr.bf16.mxu0 %v7519_v1  ;;  %v7609_v0 = vld [vmem:[#allocation6 + $0x7c4] ss:$8 sps:$4 sm:$0xff]   ;;  %v7604_v1 = vld [vmem:[#allocation6 + $0x700] ss:$8 sps:$4 sm:$0xff]  }
 0x14e   : > { %2053 = vmatprep.subr.bf16.mxu1 %v7522_v2  ;;  %v7607_v2 = vld [vmem:[#allocation6 + $0x7c0] ss:$8 sps:$4 sm:$0xff]  }
 0x150   : > { %2007 = vmatpush2.bf16.msra.mxu0 %v7517_v3  ;;  %v626_v3 = vlaneseq }
 0x151   : > { %2054 = vmatpush2.bf16.msra.mxu1 %v7520_v4  ;;  %2008 = vmatprep.subr.bf16.mxu0 %v7525_v7  ;;  %v7612_v4 = vld [vmem:[#allocation6 + $0x6f4] ss:$8 sps:$4 sm:$0xff]  }
 0x152   : > { %2055 = vmatprep.subr.bf16.mxu1 %v7528_v8  ;;  %v7615_v7 = vld [vmem:[#allocation6 + $0x7b4] ss:$8 sps:$4 sm:$0xff]   ;;  %v7610_v8 = vld [vmem:[#allocation6 + $0x6f0] ss:$8 sps:$4 sm:$0xff]  }
 0x154   : > { %2009 = vmatpush2.bf16.msra.mxu0 %v7523_v9  ;;  %v7613_v9 = vld [vmem:[#allocation6 + $0x7b0] ss:$8 sps:$4 sm:$0xff]  }
 0x155   : > { %2056 = vmatpush2.bf16.msra.mxu1 %v7526_v10  ;;  %2010 = vmatprep.subr.bf16.mxu0 %v7531_v12  ;;  %v627_v10 = vshrl.u32 %v626_v3, 7  ;;  %v7618_v12 = vld [vmem:[#allocation6 + $0x6e4] ss:$8 sps:$4 sm:$0xff]   ;;  %v7664_v3 = vld [vmem:[#allocation6 + $0x950] ss:$8 sps:$4 sm:$0xff]  }
 0x156   : > { %2760 = vmatprep.subr.bf16.mxu1 %v7534_v13  ;;  %v7621_v13 = vld [vmem:[#allocation6 + $0x7a4] ss:$8 sps:$4 sm:$0xff]  }
 0x158   : > { %2058 = vmatmul.mubr.bf16.vlgmr.msra.gmra.mxu1 %v8776_v11  ;;  %2011 = vmatpush2.bf16.msra.mxu0 %v7529_v14  ;;  %v7547_v11 = vld [vmem:[#allocation6 + $0x760] ss:$8 sps:$4 sm:$0xff]  }
 0x159   : > { %2761 = vmatpush1.bf16.msra.mxu1 %v7532_v15  ;;  %2012 = vmatprep.subr.bf16.mxu0 %v7537_v16  ;;  %v7616_v14 = vld [vmem:[#allocation6 + $0x6e0] ss:$8 sps:$4 sm:$0xff]   ;;  %v7624_v16 = vld [vmem:[#allocation6 + $0x6d4] ss:$8 sps:$4 sm:$0xff]  }
 0x15a   : > { %2762 = vmatprep.subr.bf16.mxu1 %v7540_v18  ;;  %2792 = vmatprep.mubr.bf16.mxu1 %v8209_v23  ;;  %v7619_v15 = vld [vmem:[#allocation6 + $0x7a0] ss:$8 sps:$4 sm:$0xff]   ;;  %v8798_v18 = vsub.s32 0, %v627_v10 }
 0x15c   : > { %2013 = vmatpush2.bf16.msra.mxu0 %v7535_v19  ;;  %v624_v19 = vld [vmem:[#allocation8] sm:$0x3] }
 0x15d   : > { %2763 = vmatpush1.bf16.msra.mxu1 %v7538_v21  ;;  %2082 = vmatprep.subr.bf16.mxu0 %v7546_v5  ;;  %v7627_v21 = vld [vmem:[#allocation6 + $0x924] ss:$8 sps:$4 sm:$0xff]   ;;  %v7622_v5 = vld [vmem:[#allocation6 + $0x6d0] ss:$8 sps:$4 sm:$0xff]   ;;  %v629_v23 = vrot.slane %v624_v19, %v8798_v18 }
 0x15e   : > { %2764 = vmatprep.subr.bf16.mxu1 %v7543_v22  ;;  %v8800_v22 = vsub.s32 1, %v627_v10  ;;  %v7675_v10 = vld [vmem:[#allocation6 + $0x844] ss:$8 sps:$4 sm:$0xff]  }
 0x15f   : > { %2015 = vmatmul.mubr.bf16.vlgmr.msra.gmra.mxu0 %v8767_v6  ;;  %v7559_v6 = vld [vmem:[#allocation6 + $0x740] ss:$8 sps:$4 sm:$0xff]  }
 0x160   : > { %2083 = vmatpush1.bf16.msra.mxu0 %v7544_v25  ;;  %2100 = vmatprep.mubr.bf16.mxu0 %v8499_v17  ;;  %v7630_v25 = vld [vmem:[#allocation6 + $0x6c4] ss:$8 sps:$4 sm:$0xff]  }
 0x161   : > { %2765 = vmatpush1.bf16.msra.mxu1 %v7541_v24  ;;  %2717 = vmatprep.subr.bf16.mxu0 %v7552_v27  ;;  %v7625_v24 = vld [vmem:[#allocation6 + $0x920] ss:$8 sps:$4 sm:$0xff]   ;;  %v7636_v27 = vld [vmem:[#allocation6 + $0x9a4] ss:$8 sps:$4 sm:$0xff]  }
 0x162   : > { %2766 = vmatprep.subr.bf16.mxu1 %v7549_v26  ;;  %v633_v26 = vrot.slane %v624_v19, %v8800_v22  ;;  %v7679_v19 = vld [vmem:[#allocation6 + $0x830] ss:$8 sps:$4 sm:$0xff]  }
 0x165   : > { %2767 = vmatpush1.bf16.msra.mxu1 %v7547_v11 }
 0x166   : > { %2768 = vmatprep.subr.bf16.mxu1 %v7555_v28 }
 0x167   : > { %6561 = vmatmul.mubr.msk.bf16.vlgmr.msra.gmra.mxu0 %vm1161_vm0, %v8783_v20 }
 0x168   : > { %2718 = vmatpush1.bf16.msra.mxu0 %v7550_v29  ;;  %2749 = vmatprep.mubr.bf16.mxu0 %v8795_v51  ;;  %v8211_v29 = vld [vmem:[%s8740_s18 + $0x8] ss:$28 sps:$4 sm:$0xff]  }
 0x169   : > { %2769 = vmatpush1.bf16.msra.mxu1 %v7553_v30  ;;  %2719 = vmatprep.subr.bf16.mxu0 %v7558_v31  ;;  %v7628_v31 = vld [vmem:[#allocation6 + $0x6c0] ss:$8 sps:$4 sm:$0xff]  }
 0x16a   : > { %2770 = vmatprep.subr.bf16.mxu1 %v7561_v32 }
 0x16c   : > { %2720 = vmatpush1.bf16.msra.mxu0 %v7556_v33 }
 0x16d   : > { %2771 = vmatpush1.bf16.msra.mxu1 %v7559_v6  ;;  %2721 = vmatprep.subr.bf16.mxu0 %v7564_v34  ;;  %v7633_v6 = vld [vmem:[#allocation6 + $0x6b4] ss:$8 sps:$4 sm:$0xff]  }
 0x16e   : > { %2772 = vmatprep.subr.bf16.mxu1 %v7567_v35 }
 0x170   : > { %2722 = vmatpush1.bf16.msra.mxu0 %v7562_v36  ;;  %v7631_v36 = vld [vmem:[#allocation6 + $0x6b0] ss:$8 sps:$4 sm:$0xff]  }
 0x171   : > { %2773 = vmatpush1.bf16.msra.mxu1 %v7565_v37  ;;  %2723 = vmatprep.subr.bf16.mxu0 %v7570_v38 }
 0x172   : > { %2774 = vmatprep.subr.bf16.mxu1 %v7573_v39  ;;  %v7634_v39 = vld [vmem:[#allocation6 + $0x9a0] ss:$8 sps:$4 sm:$0xff]  }
 0x174   : > { %2724 = vmatpush1.bf16.msra.mxu0 %v7568_v40 }
 0x175   : > { %2775 = vmatpush1.bf16.msra.mxu1 %v7571_v41  ;;  %2725 = vmatprep.subr.bf16.mxu0 %v7576_v42 }
 0x176   : > { %2776 = vmatprep.subr.bf16.mxu1 %v7579_v43  ;;  %v7639_v43 = vld [vmem:[#allocation6 + $0x6a4] ss:$8 sps:$4 sm:$0xff]  }
 0x178   : > { %2726 = vmatpush1.bf16.msra.mxu0 %v7574_v44  ;;  %v7642_v44 = vld [vmem:[#allocation6 + $0x994] ss:$8 sps:$4 sm:$0xff]  }
 0x179   : > { %2777 = vmatpush2.bf16.msra.mxu1 %v7577_v45  ;;  %2727 = vmatprep.subr.bf16.mxu0 %v7582_v46 }
 0x17a   : > { %2778 = vmatprep.subr.bf16.mxu1 %v7585_v47  ;;  %v7637_v47 = vld [vmem:[#allocation6 + $0x6a0] ss:$8 sps:$4 sm:$0xff]  }
 0x17c   : > { %2728 = vmatpush1.bf16.msra.mxu0 %v7580_v48  ;;  %v7640_v48 = vld [vmem:[#allocation6 + $0x990] ss:$8 sps:$4 sm:$0xff]  }
 0x17d   : > { %2779 = vmatpush2.bf16.msra.mxu1 %v7583_v49  ;;  %2729 = vmatprep.subr.bf16.mxu0 %v7588_v50  ;;  %v7645_v50 = vld [vmem:[#allocation6 + $0x894] ss:$8 sps:$4 sm:$0xff]  }
 0x17e   : > { %2780 = vmatprep.subr.bf16.mxu1 %v7591_v52 }
 0x180   : > { %2730 = vmatpush1.bf16.msra.mxu0 %v7586_v53  ;;  %v7648_v53 = vld [vmem:[#allocation6 + $0x984] ss:$8 sps:$4 sm:$0xff]  }
 0x181   : > { %2781 = vmatpush2.bf16.msra.mxu1 %v7589_v54  ;;  %2731 = vmatprep.subr.bf16.mxu0 %v7594_v55  ;;  %v7643_v54 = vld [vmem:[#allocation6 + $0x890] ss:$8 sps:$4 sm:$0xff]   ;;  %v7646_v55 = vld [vmem:[#allocation6 + $0x980] ss:$8 sps:$4 sm:$0xff]  }
 0x182   : > { %2782 = vmatprep.subr.bf16.mxu1 %v7597_v56  ;;  %v7651_v56 = vld [vmem:[#allocation6 + $0x884] ss:$8 sps:$4 sm:$0xff]  }
 0x184   : > { %2732 = vmatpush1.bf16.msra.mxu0 %v7592_v57  ;;  %v7654_v57 = vld [vmem:[#allocation6 + $0x974] ss:$8 sps:$4 sm:$0xff]  }
 0x185   : > { %2783 = vmatpush2.bf16.msra.mxu1 %v7595_v58  ;;  %2733 = vmatprep.subr.bf16.mxu0 %v7600_v59  ;;  %v8818_v58 = vld [vmem:[%s8740_s18] ss:$28 sps:$4 sm:$0xff]  }
 0x186   : > { %2784 = vmatprep.subr.bf16.mxu1 %v7603_v60  ;;  %v7652_v59 = vld [vmem:[#allocation6 + $0x970] ss:$8 sps:$4 sm:$0xff]   ;;  %v7657_v60 = vld [vmem:[#allocation6 + $0x874] ss:$8 sps:$4 sm:$0xff]  }
 0x188   : > { %2734 = vmatpush2.bf16.msra.mxu0 %v7598_v61  ;;  %v7660_v61 = vld [vmem:[#allocation6 + $0x964] ss:$8 sps:$4 sm:$0xff]  }
 0x189   : > { %2785 = vmatpush2.bf16.msra.mxu1 %v7601_v62  ;;  %2735 = vmatprep.subr.bf16.mxu0 %v7606_v63  ;;  %v8822_v62 = vld [vmem:[%s8740_s18 + $0x14] ss:$28 sps:$4 sm:$0xff]  }
 0x18a   : > { %2786 = vmatprep.subr.bf16.mxu1 %v7609_v0  ;;  %v7658_v63 = vld [vmem:[#allocation6 + $0x960] ss:$8 sps:$4 sm:$0xff]   ;;  %v7663_v0 = vld [vmem:[#allocation6 + $0x864] ss:$8 sps:$4 sm:$0xff]  }
 0x18c   : > { %2736 = vmatpush2.bf16.msra.mxu0 %v7604_v1  ;;  %v7666_v1 = vld [vmem:[#allocation6 + $0x954] ss:$8 sps:$4 sm:$0xff]  }
 0x18d   : > { %2787 = vmatpush2.bf16.msra.mxu1 %v7607_v2  ;;  %2737 = vmatprep.subr.bf16.mxu0 %v7612_v4  ;;  %v7661_v2 = vld [vmem:[#allocation6 + $0x860] ss:$8 sps:$4 sm:$0xff]   ;;  %v7669_v4 = vld [vmem:[#allocation6 + $0x854] ss:$8 sps:$4 sm:$0xff]  }
 0x18e   : > { %2788 = vmatprep.subr.bf16.mxu1 %v7615_v7  ;;  %v7672_v7 = vld [vmem:[#allocation6 + $0x944] ss:$8 sps:$4 sm:$0xff]  }
 0x190   : > { %2738 = vmatpush2.bf16.msra.mxu0 %v7610_v8  ;;  %v7667_v8 = vld [vmem:[#allocation6 + $0x850] ss:$8 sps:$4 sm:$0xff]  }
 0x191   : > { %2789 = vmatpush2.bf16.msra.mxu1 %v7613_v9  ;;  %2739 = vmatprep.subr.bf16.mxu0 %v7618_v12  ;;  %v7670_v9 = vld [vmem:[#allocation6 + $0x940] ss:$8 sps:$4 sm:$0xff]   ;;  %v7678_v12 = vld [vmem:[#allocation6 + $0x934] ss:$8 sps:$4 sm:$0xff]  }
 0x192   : > { %2790 = vmatprep.subr.bf16.mxu1 %v7621_v13  ;;  %v7673_v13 = vld [vmem:[#allocation6 + $0x840] ss:$8 sps:$4 sm:$0xff]  }
 0x194   : > { %2740 = vmatpush2.bf16.msra.mxu0 %v7616_v14  ;;  %v7676_v14 = vld [vmem:[#allocation6 + $0x930] ss:$8 sps:$4 sm:$0xff]  }
 0x195   : > { %2791 = vmatpush2.bf16.msra.mxu1 %v7619_v15  ;;  %2741 = vmatprep.subr.bf16.mxu0 %v7624_v16  ;;  %v7681_v15 = vld [vmem:[#allocation6 + $0x834] ss:$8 sps:$4 sm:$0xff]   ;;  %v7684_v16 = vld [vmem:[#allocation6 + $0xa24] ss:$8 sps:$4 sm:$0xff]  }
 0x196   : > { %2860 = vmatprep.subr.bf16.mxu1 %v7627_v21  ;;  %v7682_v21 = vld [vmem:[#allocation6 + $0xa20] ss:$8 sps:$4 sm:$0xff]  }
 0x197   : > { %v1199_v11 = vpop.f32.mrf.mxu0 }
 0x198   : > { %v1242_v28 = vpop.f32.mrf.mxu1  ;;  %2793 = vmatmul.mubr.bf16.vlgmr.msra.gmra.mxu1 %v8211_v29  ;;  %2742 = vmatpush2.bf16.msra.mxu0 %v7622_v5  ;;  %v1200_v30 = vadd.f32 %v1199_v11, %v629_v23  ;;  %v7687_v5 = vld [vmem:[#allocation6 + $0x824] ss:$8 sps:$4 sm:$0xff]   ;;  %v7691_v11 = vld [vmem:[#allocation6 + $0x910] ss:$8 sps:$4 sm:$0xff]  }
 0x199   : > { %2861 = vmatpush1.bf16.msra.mxu1 %v7625_v24  ;;  %v1201_v32 = vpop.f32.mrf.mxu0  ;;  %2743 = vmatprep.subr.bf16.mxu0 %v7630_v25  ;;  %v7685_v24 = vld [vmem:[#allocation6 + $0x820] ss:$8 sps:$4 sm:$0xff]   ;;  %v7688_v25 = vld [vmem:[#allocation6 + $0xa10] ss:$8 sps:$4 sm:$0xff]   ;;  %v7699_v29 = vld [vmem:[#allocation6 + $0x904] ss:$8 sps:$4 sm:$0xff]  }
 0x19a   : > { %v1244_v33 = vpop.f32.mrf.mxu1  ;;  %2878 = vmatprep.mubr.bf16.mxu1 %v8499_v17  ;;  %v8806_v34 = vadd.f32 %v1242_v28, %v1200_v30  ;;  %v1202_v35 = vadd.f32 %v1201_v32, %v633_v26  ;;  %3495 = vmatprep.subr.bf16.mxu1 %v7636_v27  ;;  %v7696_v27 = vld [vmem:[#allocation6 + $0xa04] ss:$8 sps:$4 sm:$0xff]   ;;  %v7694_v28 = vld [vmem:[#allocation6 + $0xa00] ss:$8 sps:$4 sm:$0xff]   ;;  %v7702_v30 = vld [vmem:[#allocation6 + $0x9f4] ss:$8 sps:$4 sm:$0xff]  }
 0x19b   : > { %v1203_v37 = vpop.f32.mrf.mxu0  ;;  %v7700_v32 = vld [vmem:[#allocation6 + $0x9f0] ss:$8 sps:$4 sm:$0xff]  }
 0x19c   : > { %v1246_v38 = vpop.f32.mrf.mxu1  ;;  %v8808_v40 = vadd.f32 %v1244_v33, %v1202_v35  ;;  %2744 = vmatpush2.bf16.msra.mxu0 %v7628_v31  ;;  %v1204_v41 = vadd.f32 %v1203_v37, %v629_v23  ;;  %v7690_v23 = vld [vmem:[#allocation6 + $0xa14] ss:$8 sps:$4 sm:$0xff]   ;;  %v7697_v31 = vld [vmem:[#allocation6 + $0x900] ss:$8 sps:$4 sm:$0xff]   ;;  %v7703_v35 = vld [vmem:[#allocation6 + $0x8f0] ss:$8 sps:$4 sm:$0xff]  }
 0x19d   : > { %v1205_v42 = vpop.f32.mrf.mxu0  ;;  %2745 = vmatprep.subr.bf16.mxu0 %v7633_v6  ;;  %v7705_v33 = vld [vmem:[#allocation6 + $0x8f4] ss:$8 sps:$4 sm:$0xff]   ;;  %v7708_v6 = vld [vmem:[#allocation6 + $0x9e4] ss:$8 sps:$4 sm:$0xff]  }
 0x19e   : > { %v8810_v45 = vadd.f32 %v1246_v38, %v1204_v41  ;;  %v1206_v46 = vadd.f32 %v1205_v42, %v633_v26  ;;  %v1248_v49 = vpop.f32.mrf.mxu1  ;;  %v7693_v26 = vld [vmem:[#allocation6 + $0x914] ss:$8 sps:$4 sm:$0xff]   ;;  %v7711_v37 = vld [vmem:[#allocation6 + $0x8e4] ss:$8 sps:$4 sm:$0xff]   ;;  %v7712_v41 = vld [vmem:[#allocation6 + $0x9d0] ss:$8 sps:$4 sm:$0xff]  }
 0x19f   : > { %v7714_v38 = vld [vmem:[#allocation6 + $0x9d4] ss:$8 sps:$4 sm:$0xff]  }
 0x1a0   : > { %6660 = vmatmul.mubr.msk.bf16.vlgmr.msra.gmra.mxu1 %vm1161_vm0, %v8783_v20  ;;  %v8814_v52 = vadd.f32 %v1248_v49, %v1206_v46  ;;  %2746 = vmatpush2.bf16.msra.mxu0 %v7631_v36  ;;  %v7649_v20 = vld [vmem:[#allocation6 + $0x880] ss:$8 sps:$4 sm:$0xff]   ;;  %v7717_v42 = vld [vmem:[#allocation6 + $0x8d4] ss:$8 sps:$4 sm:$0xff]  }
 0x1a1   : > { %3496 = vmatpush1.bf16.msra.mxu1 %v7634_v39  ;;  %2747 = vmatprep.subr.bf16.mxu0 %v7639_v43  ;;  %v7706_v36 = vld [vmem:[#allocation6 + $0x9e0] ss:$8 sps:$4 sm:$0xff]   ;;  %v7720_v43 = vld [vmem:[#allocation6 + $0x9c4] ss:$8 sps:$4 sm:$0xff]  }
 0x1a2   : > { %3497 = vmatprep.subr.bf16.mxu1 %v7642_v44  ;;  %3527 = vmatprep.mubr.bf16.mxu1 %v8795_v51  ;;  %v7655_v51 = vld [vmem:[#allocation6 + $0x870] ss:$8 sps:$4 sm:$0xff]   ;;  %v7709_v39 = vld [vmem:[#allocation6 + $0x8e0] ss:$8 sps:$4 sm:$0xff]  }
 0x1a3   : > { %v7715_v44 = vld [vmem:[#allocation6 + $0x8d0] ss:$8 sps:$4 sm:$0xff]   ;;  %v7718_v46 = vld [vmem:[#allocation6 + $0x9c0] ss:$8 sps:$4 sm:$0xff]  }
 0x1a4   : > { %2748 = vmatpush2.bf16.msra.mxu0 %v7637_v47  ;;  %v7723_v47 = vld [vmem:[#allocation6 + $0x8c4] ss:$8 sps:$4 sm:$0xff]  }
 0x1a5   : > { %3498 = vmatpush1.bf16.msra.mxu1 %v7640_v48  ;;  %2803 = vmatprep.subr.bf16.mxu0 %v7645_v50  ;;  %v7726_v48 = vld [vmem:[#allocation6 + $0x9b4] ss:$8 sps:$4 sm:$0xff]   ;;  %v7721_v50 = vld [vmem:[#allocation6 + $0x8c0] ss:$8 sps:$4 sm:$0xff]  }
 0x1a6   : > { %3499 = vmatprep.subr.bf16.mxu1 %v7648_v53 }
 0x1a7   : > { %2750 = vmatmul.mubr.bf16.vlgmr.msra.gmra.mxu0 %v8818_v58 }
 0x1a8   : > { %2804 = vmatpush1.bf16.msra.mxu0 %v7643_v54  ;;  %2835 = vmatprep.mubr.bf16.mxu0 %v8822_v62  ;;  %v7724_v54 = vld [vmem:[#allocation6 + $0x9b0] ss:$8 sps:$4 sm:$0xff]  }
 0x1a9   : > { %3500 = vmatpush1.bf16.msra.mxu1 %v7646_v55  ;;  %2805 = vmatprep.subr.bf16.mxu0 %v7651_v56  ;;  %v7729_v55 = vld [vmem:[#allocation6 + $0x8b4] ss:$8 sps:$4 sm:$0xff]   ;;  %v7732_v56 = vld [vmem:[#allocation6 + $0xba4] ss:$8 sps:$4 sm:$0xff]  }
 0x1aa   : > { %3501 = vmatprep.subr.bf16.mxu1 %v7654_v57 }
 0x1ac   : > { %2806 = vmatpush1.bf16.msra.mxu0 %v7649_v20 }
 0x1ad   : > { %3502 = vmatpush1.bf16.msra.mxu1 %v7652_v59  ;;  %2807 = vmatprep.subr.bf16.mxu0 %v7657_v60  ;;  %v7727_v60 = vld [vmem:[#allocation6 + $0x8b0] ss:$8 sps:$4 sm:$0xff]  }
 0x1ae   : > { %3503 = vmatprep.subr.bf16.mxu1 %v7660_v61 }
 0x1b0   : > { %2808 = vmatpush1.bf16.msra.mxu0 %v7655_v51  ;;  %v7730_v51 = vld [vmem:[#allocation6 + $0xba0] ss:$8 sps:$4 sm:$0xff]  }
 0x1b1   : > { %3504 = vmatpush1.bf16.msra.mxu1 %v7658_v63  ;;  %2809 = vmatprep.subr.bf16.mxu0 %v7663_v0  ;;  %v7735_v63 = vld [vmem:[#allocation6 + $0x8a4] ss:$8 sps:$4 sm:$0xff]   ;;  %v7738_v0 = vld [vmem:[#allocation6 + $0xb94] ss:$8 sps:$4 sm:$0xff]  }
 0x1b2   : > { %3505 = vmatprep.subr.bf16.mxu1 %v7666_v1 }
 0x1b4   : > { %2810 = vmatpush1.bf16.msra.mxu0 %v7661_v2 }
 0x1b5   : > { %3506 = vmatpush1.bf16.msra.mxu1 %v7664_v3  ;;  %2811 = vmatprep.subr.bf16.mxu0 %v7669_v4  ;;  %v7733_v3 = vld [vmem:[#allocation6 + $0x8a0] ss:$8 sps:$4 sm:$0xff]   ;;  %v7741_v4 = vld [vmem:[#allocation6 + $0xaa4] ss:$8 sps:$4 sm:$0xff]  }
 0x1b6   : > { %3507 = vmatprep.subr.bf16.mxu1 %v7672_v7 }
 0x1b8   : > { %2812 = vmatpush1.bf16.msra.mxu0 %v7667_v8  ;;  %v7744_v8 = vld [vmem:[#allocation6 + $0xb84] ss:$8 sps:$4 sm:$0xff]  }
 0x1b9   : > { %3508 = vmatpush1.bf16.msra.mxu1 %v7670_v9  ;;  %2813 = vmatprep.subr.bf16.mxu0 %v7675_v10  ;;  %v7747_v10 = vld [vmem:[#allocation6 + $0xa94] ss:$8 sps:$4 sm:$0xff]  }
 0x1ba   : > { %3509 = vmatprep.subr.bf16.mxu1 %v7678_v12  ;;  %v7750_v12 = vld [vmem:[#allocation6 + $0xb74] ss:$8 sps:$4 sm:$0xff]  }
 0x1bc   : > { %2814 = vmatpush1.bf16.msra.mxu0 %v7673_v13  ;;  %v7745_v13 = vld [vmem:[#allocation6 + $0xa90] ss:$8 sps:$4 sm:$0xff]  }
 0x1bd   : > { %3510 = vmatpush1.bf16.msra.mxu1 %v7676_v14  ;;  %2815 = vmatprep.subr.bf16.mxu0 %v7681_v15  ;;  %v7748_v14 = vld [vmem:[#allocation6 + $0xb70] ss:$8 sps:$4 sm:$0xff]  }
 0x1be   : > { %3511 = vmatprep.subr.bf16.mxu1 %v7684_v16  ;;  %v8840_v15 = vld [vmem:[%s8740_s18 + $0x10] ss:$28 sps:$4 sm:$0xff]   ;;  %v7756_v16 = vld [vmem:[#allocation6 + $0xb64] ss:$8 sps:$4 sm:$0xff]  }
 0x1c0   : > { %2816 = vmatpush1.bf16.msra.mxu0 %v7679_v19  ;;  %v7751_v19 = vld [vmem:[#allocation6 + $0xa80] ss:$8 sps:$4 sm:$0xff]  }
 0x1c1   : > { %3512 = vmatpush2.bf16.msra.mxu1 %v7682_v21  ;;  %2817 = vmatprep.subr.bf16.mxu0 %v7687_v5  ;;  %v7754_v21 = vld [vmem:[#allocation6 + $0xb60] ss:$8 sps:$4 sm:$0xff]   ;;  %v8845_v5 = vld [vmem:[%s8740_s18 + $0xc] ss:$28 sps:$4 sm:$0xff]  }
 0x1c2   : > { %3513 = vmatprep.subr.bf16.mxu1 %v7690_v23  ;;  %v7759_v23 = vld [vmem:[#allocation6 + $0xa74] ss:$8 sps:$4 sm:$0xff]  }
 0x1c4   : > { %2818 = vmatpush1.bf16.msra.mxu0 %v7685_v24  ;;  %v7762_v24 = vld [vmem:[#allocation6 + $0xb54] ss:$8 sps:$4 sm:$0xff]  }
 0x1c5   : > { %3514 = vmatpush2.bf16.msra.mxu1 %v7688_v25  ;;  %2819 = vmatprep.subr.bf16.mxu0 %v7693_v26  ;;  %v7757_v25 = vld [vmem:[#allocation6 + $0xa70] ss:$8 sps:$4 sm:$0xff]  }
 0x1c6   : > { %3515 = vmatprep.subr.bf16.mxu1 %v7696_v27  ;;  %v7760_v26 = vld [vmem:[#allocation6 + $0xb50] ss:$8 sps:$4 sm:$0xff]   ;;  %v7765_v27 = vld [vmem:[#allocation6 + $0xa64] ss:$8 sps:$4 sm:$0xff]  }
 0x1c8   : > { %2820 = vmatpush2.bf16.msra.mxu0 %v7691_v11  ;;  %v7768_v11 = vld [vmem:[#allocation6 + $0xb44] ss:$8 sps:$4 sm:$0xff]  }
 0x1c9   : > { %3516 = vmatpush2.bf16.msra.mxu1 %v7694_v28  ;;  %2821 = vmatprep.subr.bf16.mxu0 %v7699_v29  ;;  %v7763_v28 = vld [vmem:[#allocation6 + $0xa60] ss:$8 sps:$4 sm:$0xff]  }
 0x1ca   : > { %3517 = vmatprep.subr.bf16.mxu1 %v7702_v30  ;;  %v7766_v29 = vld [vmem:[#allocation6 + $0xb40] ss:$8 sps:$4 sm:$0xff]   ;;  %v7771_v30 = vld [vmem:[#allocation6 + $0xa54] ss:$8 sps:$4 sm:$0xff]  }
 0x1cc   : > { %2822 = vmatpush2.bf16.msra.mxu0 %v7697_v31  ;;  %v7774_v31 = vld [vmem:[#allocation6 + $0xb34] ss:$8 sps:$4 sm:$0xff]  }
 0x1cd   : > { %3518 = vmatpush2.bf16.msra.mxu1 %v7700_v32  ;;  %2823 = vmatprep.subr.bf16.mxu0 %v7705_v33  ;;  %v7769_v32 = vld [vmem:[#allocation6 + $0xa50] ss:$8 sps:$4 sm:$0xff]  }
 0x1ce   : > { %3519 = vmatprep.subr.bf16.mxu1 %v7708_v6  ;;  %v7772_v33 = vld [vmem:[#allocation6 + $0xb30] ss:$8 sps:$4 sm:$0xff]   ;;  %v7777_v6 = vld [vmem:[#allocation6 + $0xa44] ss:$8 sps:$4 sm:$0xff]  }
 0x1d0   : > { %2824 = vmatpush2.bf16.msra.mxu0 %v7703_v35  ;;  %v7780_v35 = vld [vmem:[#allocation6 + $0xc24] ss:$8 sps:$4 sm:$0xff]  }
 0x1d1   : > { %3520 = vmatpush2.bf16.msra.mxu1 %v7706_v36  ;;  %2825 = vmatprep.subr.bf16.mxu0 %v7711_v37  ;;  %v7775_v36 = vld [vmem:[#allocation6 + $0xa40] ss:$8 sps:$4 sm:$0xff]  }
 0x1d2   : > { %3521 = vmatprep.subr.bf16.mxu1 %v7714_v38  ;;  %v7778_v37 = vld [vmem:[#allocation6 + $0xc20] ss:$8 sps:$4 sm:$0xff]   ;;  %v7783_v38 = vld [vmem:[#allocation6 + $0xa34] ss:$8 sps:$4 sm:$0xff]  }
 0x1d4   : > { %2826 = vmatpush2.bf16.msra.mxu0 %v7709_v39  ;;  %v7786_v39 = vld [vmem:[#allocation6 + $0xc14] ss:$8 sps:$4 sm:$0xff]  }
 0x1d5   : > { %3522 = vmatpush2.bf16.msra.mxu1 %v7712_v41  ;;  %2827 = vmatprep.subr.bf16.mxu0 %v7717_v42  ;;  %v7781_v41 = vld [vmem:[#allocation6 + $0xa30] ss:$8 sps:$4 sm:$0xff]  }
 0x1d6   : > { %3523 = vmatprep.subr.bf16.mxu1 %v7720_v43  ;;  %v7784_v42 = vld [vmem:[#allocation6 + $0xc10] ss:$8 sps:$4 sm:$0xff]   ;;  %v7789_v43 = vld [vmem:[#allocation6 + $0xb24] ss:$8 sps:$4 sm:$0xff]  }
 0x1d7   : > { %v1285_v49 = vpop.f32.mrf.mxu0 }
 0x1d8   : > { %2828 = vmatpush2.bf16.msra.mxu0 %v7715_v44  ;;  %v1286_v53 = vadd.f32 %v1285_v49, %v8806_v34  ;;  %v7792_v44 = vld [vmem:[#allocation6 + $0xc04] ss:$8 sps:$4 sm:$0xff]   ;;  %v7798_v49 = vld [vmem:[#allocation6 + $0xbf4] ss:$8 sps:$4 sm:$0xff]  }
 0x1d9   : > { %3524 = vmatpush2.bf16.msra.mxu1 %v7718_v46  ;;  %v1287_v57 = vpop.f32.mrf.mxu0  ;;  %2829 = vmatprep.subr.bf16.mxu0 %v7723_v47  ;;  %v7787_v46 = vld [vmem:[#allocation6 + $0xb20] ss:$8 sps:$4 sm:$0xff]  }
 0x1da   : > { %3525 = vmatprep.subr.bf16.mxu1 %v7726_v48  ;;  %v1288_v20 = vadd.f32 %v1287_v57, %v8808_v40  ;;  %v7790_v47 = vld [vmem:[#allocation6 + $0xc00] ss:$8 sps:$4 sm:$0xff]   ;;  %v7795_v48 = vld [vmem:[#allocation6 + $0xb14] ss:$8 sps:$4 sm:$0xff]  }
 0x1db   : > { %v1289_v59 = vpop.f32.mrf.mxu0  ;;  %v7802_v57 = vld [vmem:[#allocation6 + $0xbe0] ss:$8 sps:$4 sm:$0xff]  }
 0x1dc   : > { %2830 = vmatpush2.bf16.msra.mxu0 %v7721_v50  ;;  %v8828_v61 = vadd.f32 %v1289_v59, %v8810_v45  ;;  %v7736_v45 = vld [vmem:[#allocation6 + $0xb90] ss:$8 sps:$4 sm:$0xff]   ;;  %v7810_v59 = vld [vmem:[#allocation6 + $0xbd4] ss:$8 sps:$4 sm:$0xff]  }
 0x1dd   : > { %3526 = vmatpush2.bf16.msra.mxu1 %v7724_v54  ;;  %v1291_v34 = vpop.f32.mrf.mxu0  ;;  %2831 = vmatprep.subr.bf16.mxu0 %v7729_v55  ;;  %v7793_v50 = vld [vmem:[#allocation6 + $0xb10] ss:$8 sps:$4 sm:$0xff]   ;;  %v7801_v54 = vld [vmem:[#allocation6 + $0xb04] ss:$8 sps:$4 sm:$0xff]  }
 0x1de   : > { %3581 = vmatprep.subr.bf16.mxu1 %v7732_v56  ;;  %v8831_v1 = vadd.f32 %v1291_v34, %v8814_v52  ;;  %v7739_v52 = vld [vmem:[#allocation6 + $0xaa0] ss:$8 sps:$4 sm:$0xff]   ;;  %v7804_v55 = vld [vmem:[#allocation6 + $0xbe4] ss:$8 sps:$4 sm:$0xff]  }
 0x1df   : > { %v1328_v2 = vpop.f32.mrf.mxu0  ;;  %v7799_v56 = vld [vmem:[#allocation6 + $0xb00] ss:$8 sps:$4 sm:$0xff]   ;;  %v7816_v34 = vld [vmem:[#allocation6 + $0xbc4] ss:$8 sps:$4 sm:$0xff]  }
 0x1e0   : > { %3528 = vmatmul.mubr.bf16.vlgmr.msra.gmra.mxu1 %v8818_v58  ;;  %2832 = vmatpush2.bf16.msra.mxu0 %v7727_v60  ;;  %v8834_v40 = vadd.f32 %v1328_v2, %v1286_v53  ;;  %v7742_v58 = vld [vmem:[#allocation6 + $0xb80] ss:$8 sps:$4 sm:$0xff]   ;;  %v7796_v53 = vld [vmem:[#allocation6 + $0xbf0] ss:$8 sps:$4 sm:$0xff]   ;;  %v1973_v60 = vpop.f32.mrf.mxu1 }
 0x1e1   : > { %3582 = vmatpush1.bf16.msra.mxu1 %v7730_v51  ;;  %v1330_v7 = vpop.f32.mrf.mxu0  ;;  %2833 = vmatprep.subr.bf16.mxu0 %v7735_v63  ;;  %v7805_v51 = vld [vmem:[#allocation6 + $0xaf0] ss:$8 sps:$4 sm:$0xff]  }
 0x1e2   : > { %3583 = vmatprep.subr.bf16.mxu1 %v7738_v0  ;;  %v8836_v9 = vadd.f32 %v1330_v7, %v1288_v20  ;;  %3613 = vmatprep.mubr.bf16.mxu1 %v8822_v62  ;;  %v7753_v62 = vld [vmem:[#allocation6 + $0xa84] ss:$8 sps:$4 sm:$0xff]   ;;  %v7807_v20 = vld [vmem:[#allocation6 + $0xaf4] ss:$8 sps:$4 sm:$0xff]   ;;  %v7808_v63 = vld [vmem:[#allocation6 + $0xbd0] ss:$8 sps:$4 sm:$0xff]   ;;  %v1975_v2 = vpop.f32.mrf.mxu1 }
 0x1e3   : > { %v7813_v0 = vld [vmem:[#allocation6 + $0xae4] ss:$8 sps:$4 sm:$0xff]   ;;  %v7819_v7 = vld [vmem:[#allocation6 + $0xad4] ss:$8 sps:$4 sm:$0xff]  }
 0x1e4   : > { %2834 = vmatpush2.bf16.msra.mxu0 %v7733_v3  ;;  %v7811_v3 = vld [vmem:[#allocation6 + $0xae0] ss:$8 sps:$4 sm:$0xff]  }
 0x1e5   : > { %3584 = vmatpush1.bf16.msra.mxu1 %v7736_v45  ;;  %3538 = vmatprep.subr.bf16.mxu0 %v7741_v4  ;;  %v7814_v45 = vld [vmem:[#allocation6 + $0xbc0] ss:$8 sps:$4 sm:$0xff]   ;;  %v1977_v4 = vpop.f32.mrf.mxu1 }
 0x1e6   : > { %3585 = vmatprep.subr.bf16.mxu1 %v7744_v8  ;;  %v7822_v8 = vld [vmem:[#allocation6 + $0xbb4] ss:$8 sps:$4 sm:$0xff]  }
 0x1e7   : > { %2836 = vmatmul.mubr.bf16.vlgmr.msra.gmra.mxu0 %v8840_v15 }
 0x1e8   : > { %3539 = vmatpush1.bf16.msra.mxu0 %v7739_v52  ;;  %3570 = vmatprep.mubr.bf16.mxu0 %v8845_v5  ;;  %v1437_v52 = vld [vmem:[#allocation8 + $0x2] sm:$0x3] }
 0x1e9   : > { %3586 = vmatpush1.bf16.msra.mxu1 %v7742_v58  ;;  %3540 = vmatprep.subr.bf16.mxu0 %v7747_v10  ;;  %v7817_v58 = vld [vmem:[#allocation6 + $0xad0] ss:$8 sps:$4 sm:$0xff]  }
 0x1ea   : > { %3587 = vmatprep.subr.bf16.mxu1 %v7750_v12  ;;  %v7820_v10 = vld [vmem:[#allocation6 + $0xbb0] ss:$8 sps:$4 sm:$0xff]   ;;  %v1979_v12 = vpop.f32.mrf.mxu1 }
 0x1ec   : > { %3541 = vmatpush1.bf16.msra.mxu0 %v7745_v13  ;;  %v8853_v13 = vpop.f32.mrf.mxu0 }
 0x1ed   : > { %3588 = vmatpush1.bf16.msra.mxu1 %v7748_v14  ;;  %3542 = vmatprep.subr.bf16.mxu0 %v7753_v62  ;;  %v7825_v14 = vld [vmem:[#allocation6 + $0xac4] ss:$8 sps:$4 sm:$0xff]   ;;  %v7828_v62 = vld [vmem:[#allocation6 + $0xdb4] ss:$8 sps:$4 sm:$0xff]  }
 0x1ee   : > { %3589 = vmatprep.subr.bf16.mxu1 %v7756_v16  ;;  %v1442_v16 = vrot.slane %v1437_v52, %v8798_v18 }
 0x1f0   : > { %3543 = vmatpush1.bf16.msra.mxu0 %v7751_v19 }
 0x1f1   : > { %3590 = vmatpush1.bf16.msra.mxu1 %v7754_v21  ;;  %3544 = vmatprep.subr.bf16.mxu0 %v7759_v23  ;;  %v1446_v21 = vrot.slane %v1437_v52, %v8800_v22  ;;  %v7823_v23 = vld [vmem:[#allocation6 + $0xac0] ss:$8 sps:$4 sm:$0xff]   ;;  %v7852_v52 = vld [vmem:[#allocation6 + $0xca4] ss:$8 sps:$4 sm:$0xff]  }
 0x1f2   : > { %3591 = vmatprep.subr.bf16.mxu1 %v7762_v24  ;;  %v7826_v24 = vld [vmem:[#allocation6 + $0xdb0] ss:$8 sps:$4 sm:$0xff]  }
 0x1f4   : > { %3545 = vmatpush1.bf16.msra.mxu0 %v7757_v25  ;;  %v8857_v25 = vpop.f32.mrf.mxu0 }
 0x1f5   : > { %3592 = vmatpush1.bf16.msra.mxu1 %v7760_v26  ;;  %3546 = vmatprep.subr.bf16.mxu0 %v7765_v27  ;;  %v7831_v26 = vld [vmem:[#allocation6 + $0xab4] ss:$8 sps:$4 sm:$0xff]   ;;  %v7834_v27 = vld [vmem:[#allocation6 + $0xda4] ss:$8 sps:$4 sm:$0xff]  }
 0x1f6   : > { %3593 = vmatprep.subr.bf16.mxu1 %v7768_v11  ;;  %v1974_v11 = vadd.f32 %v1973_v60, %v1442_v16 }
 0x1f8   : > { %3547 = vmatpush1.bf16.msra.mxu0 %v7763_v28 }
 0x1f9   : > { %3594 = vmatpush1.bf16.msra.mxu1 %v7766_v29  ;;  %3548 = vmatprep.subr.bf16.mxu0 %v7771_v30  ;;  %v1976_v30 = vadd.f32 %v1975_v2, %v1446_v21  ;;  %v8874_v2 = vadd.f32 %v8853_v13, %v8828_v61  ;;  %v8889_v13 = vld [vmem:[%s8740_s18 + $0x18] ss:$28 sps:$4 sm:$0xff]  }
 0x1fa   : > { %3595 = vmatprep.subr.bf16.mxu1 %v7774_v31 }
 0x1fc   : > { %3549 = vmatpush1.bf16.msra.mxu0 %v7769_v32  ;;  %v7829_v32 = vld [vmem:[#allocation6 + $0xab0] ss:$8 sps:$4 sm:$0xff]  }
 0x1fd   : > { %3596 = vmatpush1.bf16.msra.mxu1 %v7772_v33  ;;  %3550 = vmatprep.subr.bf16.mxu0 %v7777_v6  ;;  %v7832_v33 = vld [vmem:[#allocation6 + $0xda0] ss:$8 sps:$4 sm:$0xff]  }
 0x1fe   : > { %3597 = vmatprep.subr.bf16.mxu1 %v7780_v35  ;;  %v7837_v35 = vld [vmem:[#allocation6 + $0xd94] ss:$8 sps:$4 sm:$0xff]  }
 0x200   : > { %3551 = vmatpush1.bf16.msra.mxu0 %v7775_v36  ;;  %v7840_v36 = vld [vmem:[#allocation6 + $0xc34] ss:$8 sps:$4 sm:$0xff]  }
 0x201   : > { %3598 = vmatpush2.bf16.msra.mxu1 %v7778_v37  ;;  %3552 = vmatprep.subr.bf16.mxu0 %v7783_v38  ;;  %v1978_v37 = vadd.f32 %v1977_v4, %v1442_v16  ;;  %v7844_v4 = vld [vmem:[#allocation6 + $0xcb0] ss:$8 sps:$4 sm:$0xff]   ;;  %v7853_v16 = vld [vmem:[#allocation6 + $0xd60] ss:$8 sps:$4 sm:$0xff]  }
 0x202   : > { %3599 = vmatprep.subr.bf16.mxu1 %v7786_v39 }
 0x204   : > { %3553 = vmatpush1.bf16.msra.mxu0 %v7781_v41 }
 0x205   : > { %3600 = vmatpush2.bf16.msra.mxu1 %v7784_v42  ;;  %3554 = vmatprep.subr.bf16.mxu0 %v7789_v43 }
 0x206   : > { %3601 = vmatprep.subr.bf16.mxu1 %v7792_v44  ;;  %v7835_v44 = vld [vmem:[#allocation6 + $0xd90] ss:$8 sps:$4 sm:$0xff]  }
 0x208   : > { %3555 = vmatpush2.bf16.msra.mxu0 %v7787_v46 }
 0x209   : > { %3602 = vmatpush2.bf16.msra.mxu1 %v7790_v47  ;;  %3556 = vmatprep.subr.bf16.mxu0 %v7795_v48  ;;  %v7838_v47 = vld [vmem:[#allocation6 + $0xc30] ss:$8 sps:$4 sm:$0xff]  }
 0x20a   : > { %3603 = vmatprep.subr.bf16.mxu1 %v7798_v49  ;;  %v7843_v49 = vld [vmem:[#allocation6 + $0xd84] ss:$8 sps:$4 sm:$0xff]  }
 0x20c   : > { %3557 = vmatpush2.bf16.msra.mxu0 %v7793_v50 }
 0x20d   : > { %3604 = vmatpush2.bf16.msra.mxu1 %v7796_v53  ;;  %3558 = vmatprep.subr.bf16.mxu0 %v7801_v54  ;;  %v7846_v54 = vld [vmem:[#allocation6 + $0xcb4] ss:$8 sps:$4 sm:$0xff]  }
 0x20e   : > { %3605 = vmatprep.subr.bf16.mxu1 %v7804_v55 }
 0x210   : > { %3559 = vmatpush2.bf16.msra.mxu0 %v7799_v56  ;;  %v8862_v56 = vld [vmem:[%s8740_s18 + $0x8] ss:$28 sps:$4 sm:$0xff]  }
 0x211   : > { %3606 = vmatpush2.bf16.msra.mxu1 %v7802_v57  ;;  %3560 = vmatprep.subr.bf16.mxu0 %v7807_v20  ;;  %v7841_v20 = vld [vmem:[#allocation6 + $0xd80] ss:$8 sps:$4 sm:$0xff]  }
 0x212   : > { %3607 = vmatprep.subr.bf16.mxu1 %v7810_v59 }
 0x214   : > { %3561 = vmatpush2.bf16.msra.mxu0 %v7805_v51  ;;  %v7849_v51 = vld [vmem:[#allocation6 + $0xd74] ss:$8 sps:$4 sm:$0xff]  }
 0x215   : > { %3608 = vmatpush2.bf16.msra.mxu1 %v7808_v63  ;;  %3562 = vmatprep.subr.bf16.mxu0 %v7813_v0 }
 0x216   : > { %3609 = vmatprep.subr.bf16.mxu1 %v7816_v34 }
 0x218   : > { %3563 = vmatpush2.bf16.msra.mxu0 %v7811_v3  ;;  %v2059_v19 = vpop.f32.mrf.mxu1 }
 0x219   : > { %3610 = vmatpush2.bf16.msra.mxu1 %v7814_v45  ;;  %3564 = vmatprep.subr.bf16.mxu0 %v7819_v7  ;;  %v7847_v7 = vld [vmem:[#allocation6 + $0xd70] ss:$8 sps:$4 sm:$0xff]  }
 0x21a   : > { %3611 = vmatprep.subr.bf16.mxu1 %v7822_v8  ;;  %v2061_v28 = vpop.f32.mrf.mxu1 }
 0x21c   : > { %3565 = vmatpush2.bf16.msra.mxu0 %v7817_v58  ;;  %v2063_v41 = vpop.f32.mrf.mxu1  ;;  %v7855_v58 = vld [vmem:[#allocation6 + $0xd64] ss:$8 sps:$4 sm:$0xff]  }
 0x21d   : > { %3612 = vmatpush2.bf16.msra.mxu1 %v7820_v10  ;;  %3566 = vmatprep.subr.bf16.mxu0 %v7825_v14  ;;  %v8882_v10 = vadd.f32 %v8857_v25, %v8831_v1  ;;  %v7858_v1 = vld [vmem:[#allocation6 + $0xc94] ss:$8 sps:$4 sm:$0xff]   ;;  %v7864_v25 = vld [vmem:[#allocation6 + $0xc84] ss:$8 sps:$4 sm:$0xff]  }
 0x21e   : > { %4316 = vmatprep.subr.bf16.mxu1 %v7828_v62  ;;  %v2065_v55 = vpop.f32.mrf.mxu1  ;;  %v7850_v62 = vld [vmem:[#allocation6 + $0xca0] ss:$8 sps:$4 sm:$0xff]  }
 0x21f   : > { %v2016_v29 = vpop.f32.mrf.mxu0 }
 0x220   : > { %3614 = vmatmul.mubr.bf16.vlgmr.msra.gmra.mxu1 %v8840_v15  ;;  %v2017_v31 = vadd.f32 %v2016_v29, %v1974_v11  ;;  %3567 = vmatpush2.bf16.msra.mxu0 %v7823_v23  ;;  %v1980_v15 = vadd.f32 %v1979_v12, %v1446_v21  ;;  %v8218_v21 = vld [vmem:[%s8740_s18 + $0x4] ss:$28 sps:$4 sm:$0xff]  }
 0x221   : > { %4317 = vmatpush1.bf16.msra.mxu1 %v7826_v24  ;;  %v2018_v6 = vpop.f32.mrf.mxu0  ;;  %3568 = vmatprep.subr.bf16.mxu0 %v7831_v26  ;;  %v7856_v23 = vld [vmem:[#allocation6 + $0xc90] ss:$8 sps:$4 sm:$0xff]   ;;  %v7867_v26 = vld [vmem:[#allocation6 + $0xd44] ss:$8 sps:$4 sm:$0xff]   ;;  %v7865_v11 = vld [vmem:[#allocation6 + $0xd40] ss:$8 sps:$4 sm:$0xff]  }
 0x222   : > { %4318 = vmatprep.subr.bf16.mxu1 %v7834_v27  ;;  %v2019_v38 = vadd.f32 %v2018_v6, %v1976_v30  ;;  %v2060_v39 = vadd.f32 %v2059_v19, %v2017_v31  ;;  %4348 = vmatprep.mubr.bf16.mxu1 %v8845_v5  ;;  %v7861_v19 = vld [vmem:[#allocation6 + $0xd54] ss:$8 sps:$4 sm:$0xff]   ;;  %v7859_v24 = vld [vmem:[#allocation6 + $0xd50] ss:$8 sps:$4 sm:$0xff]   ;;  %v7862_v27 = vld [vmem:[#allocation6 + $0xc80] ss:$8 sps:$4 sm:$0xff]  }
 0x223   : > { %v2020_v42 = vpop.f32.mrf.mxu0  ;;  %v7873_v29 = vld [vmem:[#allocation6 + $0xe34] ss:$8 sps:$4 sm:$0xff]   ;;  %v7868_v30 = vld [vmem:[#allocation6 + $0xc70] ss:$8 sps:$4 sm:$0xff]   ;;  %v7874_v6 = vld [vmem:[#allocation6 + $0xc60] ss:$8 sps:$4 sm:$0xff]  }
 0x224   : > { %v2021_v43 = vadd.f32 %v2020_v42, %v1978_v37  ;;  %3569 = vmatpush2.bf16.msra.mxu0 %v7829_v32  ;;  %v2062_v46 = vadd.f32 %v2061_v28, %v2019_v38  ;;  %v7870_v28 = vld [vmem:[#allocation6 + $0xc74] ss:$8 sps:$4 sm:$0xff]   ;;  %v7871_v31 = vld [vmem:[#allocation6 + $0xe30] ss:$8 sps:$4 sm:$0xff]   ;;  %v7876_v32 = vld [vmem:[#allocation6 + $0xc64] ss:$8 sps:$4 sm:$0xff]  }
 0x225   : > { %4319 = vmatpush1.bf16.msra.mxu1 %v7832_v33  ;;  %v2022_v48 = vpop.f32.mrf.mxu0  ;;  %3638 = vmatprep.subr.bf16.mxu0 %v7840_v36  ;;  %v7879_v33 = vld [vmem:[#allocation6 + $0xe24] ss:$8 sps:$4 sm:$0xff]   ;;  %v7882_v36 = vld [vmem:[#allocation6 + $0xc54] ss:$8 sps:$4 sm:$0xff]   ;;  %v7880_v38 = vld [vmem:[#allocation6 + $0xc50] ss:$8 sps:$4 sm:$0xff]  }
 0x226   : > { %4320 = vmatprep.subr.bf16.mxu1 %v7837_v35  ;;  %v2023_v50 = vadd.f32 %v2022_v48, %v1980_v15  ;;  %v2064_v53 = vadd.f32 %v2063_v41, %v2021_v43  ;;  %v7877_v35 = vld [vmem:[#allocation6 + $0xe20] ss:$8 sps:$4 sm:$0xff]   ;;  %v7885_v37 = vld [vmem:[#allocation6 + $0xe14] ss:$8 sps:$4 sm:$0xff]   ;;  %v7888_v41 = vld [vmem:[#allocation6 + $0xc44] ss:$8 sps:$4 sm:$0xff]  }
 0x227   : > { %3571 = vmatmul.mubr.bf16.vlgmr.msra.gmra.mxu0 %v8862_v56  ;;  %v2102_v5 = vpop.f32.mrf.mxu0  ;;  %v7891_v42 = vld [vmem:[#allocation6 + $0xe04] ss:$8 sps:$4 sm:$0xff]   ;;  %v7886_v15 = vld [vmem:[#allocation6 + $0xc40] ss:$8 sps:$4 sm:$0xff]   ;;  %v7895_v48 = vld [vmem:[#allocation6 + $0xdf0] ss:$8 sps:$4 sm:$0xff]  }
 0x228   : > { %v8865_v57 = vadd.f32 %v2102_v5, %v2060_v39  ;;  %3639 = vmatpush1.bf16.msra.mxu0 %v7838_v47  ;;  %v2066_v59 = vadd.f32 %v2065_v55, %v2023_v50  ;;  %3656 = vmatprep.mubr.bf16.mxu0 %v8499_v17  ;;  %v7883_v39 = vld [vmem:[#allocation6 + $0xe10] ss:$8 sps:$4 sm:$0xff]   ;;  %v7889_v43 = vld [vmem:[#allocation6 + $0xe00] ss:$8 sps:$4 sm:$0xff]   ;;  %v7903_v50 = vld [vmem:[#allocation6 + $0xde4] ss:$8 sps:$4 sm:$0xff]  }
 0x229   : > { %4321 = vmatpush1.bf16.msra.mxu1 %v7835_v44  ;;  %v2104_v60 = vpop.f32.mrf.mxu0  ;;  %4273 = vmatprep.subr.bf16.mxu0 %v7846_v54  ;;  %v7894_v44 = vld [vmem:[#allocation6 + $0xd34] ss:$8 sps:$4 sm:$0xff]   ;;  %v7892_v47 = vld [vmem:[#allocation6 + $0xd30] ss:$8 sps:$4 sm:$0xff]   ;;  %v7901_v54 = vld [vmem:[#allocation6 + $0xde0] ss:$8 sps:$4 sm:$0xff]  }
 0x22a   : > { %4322 = vmatprep.subr.bf16.mxu1 %v7843_v49  ;;  %v2111_v63 = vmax.f32 %v8834_v40, %v8865_v57  ;;  %v8870_v0 = vadd.f32 %v2104_v60, %v2062_v46  ;;  %v7897_v46 = vld [vmem:[#allocation6 + $0xdf4] ss:$8 sps:$4 sm:$0xff]   ;;  %v7900_v49 = vld [vmem:[#allocation6 + $0xd24] ss:$8 sps:$4 sm:$0xff]  }
 0x22b   : > { %v2106_v34 = vpop.f32.mrf.mxu0  ;;  %v7906_v55 = vld [vmem:[#allocation6 + $0xd14] ss:$8 sps:$4 sm:$0xff]   ;;  %v7912_v60 = vld [vmem:[#allocation6 + $0xd04] ss:$8 sps:$4 sm:$0xff]  }
 0x22c   : > { %v2112_v3 = vmax.f32 %v8836_v9, %v8870_v0  ;;  %v8878_v45 = vadd.f32 %v2106_v34, %v2064_v53  ;;  %v7898_v53 = vld [vmem:[#allocation6 + $0xd20] ss:$8 sps:$4 sm:$0xff]   ;;  %v7909_v5 = vld [vmem:[#allocation6 + $0xdd4] ss:$8 sps:$4 sm:$0xff]   ;;  %v7990_v9 = vld [vmem:[#allocation11 + $0x64] ss:$8 sps:$4 sm:$0xff]  }
 0x22d   : > { %4323 = vmatpush1.bf16.msra.mxu1 %v7841_v20  ;;  %v2108_v8 = vpop.f32.mrf.mxu0  ;;  %v7904_v20 = vld [vmem:[#allocation6 + $0xd10] ss:$8 sps:$4 sm:$0xff]   ;;  %v7910_v34 = vld [vmem:[#allocation6 + $0xd00] ss:$8 sps:$4 sm:$0xff]   ;;  %v7987_v57 = vld [vmem:[#allocation11 + $0x74] ss:$8 sps:$4 sm:$0xff]  }
 0x22e   : > { %4324 = vmatprep.subr.bf16.mxu1 %v7849_v51  ;;  %v2113_v61 = vmax.f32 %v8874_v2, %v8878_v45  ;;  %v8886_v12 = vadd.f32 %v2108_v8, %v2066_v59  ;;  %v7907_v59 = vld [vmem:[#allocation6 + $0xdd0] ss:$8 sps:$4 sm:$0xff]   ;;  %v7915_v51 = vld [vmem:[#allocation6 + $0xdc4] ss:$8 sps:$4 sm:$0xff]   ;;  %v7988_v0 = vld [vmem:[#allocation11 + $0x60] ss:$8 sps:$4 sm:$0xff]  }
 0x22f   : > { %6759 = vmatmul.mubr.msk.bf16.vlgmr.msra.gmra.mxu0 %vm1161_vm0, %v8889_v13  ;;  %v7921_v8 = vld [vmem:[#allocation6 + $0xf44] ss:$8 sps:$4 sm:$0xff]   ;;  %v4807_v2 = vld [vmem:[%s9226_s7 + $0x30] sm:$0x11]  ;;  %v7991_v45 = vld [vmem:[#allocation11 + $0x50] ss:$8 sps:$4 sm:$0xff]  }
 0x230   : > { %v2114_v14 = vmax.f32 %v8882_v10, %v8886_v12  ;;  %4274 = vmatpush1.bf16.msra.mxu0 %v7844_v4  ;;  %4305 = vmatprep.mubr.bf16.mxu0 %v8218_v21  ;;  %v7913_v4 = vld [vmem:[#allocation6 + $0xdc0] ss:$8 sps:$4 sm:$0xff]   ;;  %v7928_v21 = vld [vmem:[%s9223_s4] sm:$0x1f]  }
 0x231   : > { %4325 = vmatpush1.bf16.msra.mxu1 %v7847_v7  ;;  %4275 = vmatprep.subr.bf16.mxu0 %v7852_v52  ;;  %v7918_v7 = vld [vmem:[#allocation6 + $0xcf4] ss:$8 sps:$4 sm:$0xff]   ;;  %v7916_v52 = vld [vmem:[#allocation6 + $0xcf0] ss:$8 sps:$4 sm:$0xff]   ;;  %v7998_v12 = vld [vmem:[#allocation11 + $0x44] ss:$8 sps:$4 sm:$0xff]  }
 0x232   : > { %4326 = vmatprep.subr.bf16.mxu1 %v7855_v58  ;;  %v7919_v58 = vld [vmem:[#allocation6 + $0xf40] ss:$8 sps:$4 sm:$0xff]  }
 0x234   : > { %4276 = vmatpush1.bf16.msra.mxu0 %v7850_v62  ;;  %v7924_v62 = vld [vmem:[#allocation6 + $0xce4] ss:$8 sps:$4 sm:$0xff]  }
 0x235   : > { %4327 = vmatpush1.bf16.msra.mxu1 %v7853_v16  ;;  %4277 = vmatprep.subr.bf16.mxu0 %v7858_v1  ;;  %v8500_v16 = vmov 65535  }
 0x236   : > { %4328 = vmatprep.subr.bf16.mxu1 %v7861_v19  ;;  %v4474_v1 = vsel %vm4472_vm1, 4294967295, %v8500_v16  ;;  %v7922_v19 = vld [vmem:[#allocation6 + $0xce0] ss:$8 sps:$4 sm:$0xff]   ;;  %v7975_v16 = vld [vmem:[#allocation6 + $0xef4] ss:$8 sps:$4 sm:$0xff]  }
 0x238   : > { %4278 = vmatpush1.bf16.msra.mxu0 %v7856_v23  ;;  %v7927_v23 = vld [vmem:[#allocation6 + $0xcd4] ss:$8 sps:$4 sm:$0xff]  }
 0x239   : > { %4329 = vmatpush1.bf16.msra.mxu1 %v7859_v24  ;;  %4279 = vmatprep.subr.bf16.mxu0 %v7864_v25  ;;  %v8901_v24 = vsel %vm4473_vm2, %v4474_v1, 0  ;;  %v8501_v25 = vmov 0.0  }
 0x23a   : > { %4330 = vmatprep.subr.bf16.mxu1 %v7867_v26  ;;  %v7925_v26 = vld [vmem:[#allocation6 + $0xcd0] ss:$8 sps:$4 sm:$0xff]  }
 0x23c   : > { %4280 = vmatpush1.bf16.msra.mxu0 %v7862_v27  ;;  %v7931_v27 = vld [vmem:[#allocation6 + $0xcc4] ss:$8 sps:$4 sm:$0xff]  }
 0x23d   : > { %4331 = vmatpush1.bf16.msra.mxu1 %v7865_v11  ;;  %4281 = vmatprep.subr.bf16.mxu0 %v7870_v28  ;;  %v7929_v11 = vld [vmem:[#allocation6 + $0xcc0] ss:$8 sps:$4 sm:$0xff]   ;;  %v7936_v28 = vld [vmem:[%s9223_s4 + $0x8] sm:$0x1f]  }
 0x23e   : > { %4332 = vmatprep.subr.bf16.mxu1 %v7873_v29  ;;  %v7934_v29 = vld [vmem:[#allocation6 + $0xeb4] ss:$8 sps:$4 sm:$0xff]  }
 0x240   : > { %4282 = vmatpush1.bf16.msra.mxu0 %v7868_v30  ;;  %v8914_v30 = vld [vmem:[%s8851_s29] sm:$0xff]  }
 0x241   : > { %4333 = vmatpush2.bf16.msra.mxu1 %v7871_v31  ;;  %4283 = vmatprep.subr.bf16.mxu0 %v7876_v32  ;;  %v4537_v31 = vand.u32 %v7936_v28, %v8901_v24  ;;  %v7939_v32 = vld [vmem:[#allocation6 + $0xea4] ss:$8 sps:$4 sm:$0xff]   ;;  %v7981_v28 = vld [vmem:[#allocation6 + $0xed4] ss:$8 sps:$4 sm:$0xff]  }
 0x242   : > { %4334 = vmatprep.subr.bf16.mxu1 %v7879_v33  ;;  %v8219_v33 = vld [vmem:[%s8740_s18] ss:$28 sps:$4 sm:$0xff]  }
 0x244   : > { %4284 = vmatpush1.bf16.msra.mxu0 %v7874_v6  ;;  %v7937_v6 = vld [vmem:[#allocation6 + $0xea0] ss:$8 sps:$4 sm:$0xff]  }
 0x245   : > { %4335 = vmatpush2.bf16.msra.mxu1 %v7877_v35  ;;  %4285 = vmatprep.subr.bf16.mxu0 %v7882_v36  ;;  %v7943_v35 = vld [vmem:[%s9223_s4 + $0x10] sm:$0x1f]  }
 0x246   : > { %4336 = vmatprep.subr.bf16.mxu1 %v7885_v37  ;;  %v7942_v36 = vld [vmem:[#allocation6 + $0xe94] ss:$8 sps:$4 sm:$0xff]  }
 0x247   : > { %v8220_v37 = vld [vmem:[%s8740_s18 + $0x14] ss:$28 sps:$4 sm:$0xff]  }
 0x248   : > { %4286 = vmatpush1.bf16.msra.mxu0 %v7880_v38  ;;  %v7940_v38 = vld [vmem:[#allocation6 + $0xe90] ss:$8 sps:$4 sm:$0xff]  }
 0x249   : > { %4337 = vmatpush2.bf16.msra.mxu1 %v7883_v39  ;;  %4287 = vmatprep.subr.bf16.mxu0 %v7888_v41  ;;  %v4599_v39 = vand.u32 %v7943_v35, %v8901_v24  ;;  %v7946_v41 = vld [vmem:[#allocation6 + $0xe84] ss:$8 sps:$4 sm:$0xff]  }
 0x24a   : > { %4338 = vmatprep.subr.bf16.mxu1 %v7891_v42  ;;  %v7944_v42 = vld [vmem:[#allocation6 + $0xe80] ss:$8 sps:$4 sm:$0xff]  }
 0x24c   : > { %4288 = vmatpush1.bf16.msra.mxu0 %v7886_v15  ;;  %v7950_v15 = vld [vmem:[%s9223_s4 + $0x18] sm:$0x1f]  }
 0x24d   : > { %4339 = vmatpush2.bf16.msra.mxu1 %v7889_v43  ;;  %4289 = vmatprep.subr.bf16.mxu0 %v7894_v44  ;;  %v7949_v43 = vld [vmem:[#allocation6 + $0xe74] ss:$8 sps:$4 sm:$0xff]   ;;  %v7947_v44 = vld [vmem:[#allocation6 + $0xe70] ss:$8 sps:$4 sm:$0xff]  }
 0x24e   : > { %4340 = vmatprep.subr.bf16.mxu1 %v7897_v46  ;;  %v4661_v46 = vand.u32 %v7950_v15, %v8901_v24 }
 0x250   : > { %4290 = vmatpush2.bf16.msra.mxu0 %v7892_v47  ;;  %v7953_v47 = vld [vmem:[#allocation6 + $0xe64] ss:$8 sps:$4 sm:$0xff]  }
 0x251   : > { %4341 = vmatpush2.bf16.msra.mxu1 %v7895_v48  ;;  %4291 = vmatprep.subr.bf16.mxu0 %v7900_v49  ;;  %v7951_v48 = vld [vmem:[#allocation6 + $0xe60] ss:$8 sps:$4 sm:$0xff]   ;;  %v7957_v49 = vld [vmem:[%s9223_s4 + $0x20] sm:$0x1f]  }
 0x252   : > { %4342 = vmatprep.subr.bf16.mxu1 %v7903_v50  ;;  %v7956_v50 = vld [vmem:[#allocation6 + $0xe54] ss:$8 sps:$4 sm:$0xff]  }
 0x254   : > { %4292 = vmatpush2.bf16.msra.mxu0 %v7898_v53  ;;  %v7954_v53 = vld [vmem:[#allocation6 + $0xe50] ss:$8 sps:$4 sm:$0xff]  }
 0x255   : > { %4343 = vmatpush2.bf16.msra.mxu1 %v7901_v54  ;;  %4293 = vmatprep.subr.bf16.mxu0 %v7906_v55  ;;  %v4723_v54 = vand.u32 %v7957_v49, %v8901_v24  ;;  %v7960_v55 = vld [vmem:[#allocation6 + $0xe44] ss:$8 sps:$4 sm:$0xff]  }
 0x256   : > { %4344 = vmatprep.subr.bf16.mxu1 %v7909_v5  ;;  %v7958_v5 = vld [vmem:[#allocation6 + $0xe40] ss:$8 sps:$4 sm:$0xff]  }
 0x258   : > { %4294 = vmatpush2.bf16.msra.mxu0 %v7904_v20  ;;  %v7963_v20 = vld [vmem:[#allocation6 + $0xf34] ss:$8 sps:$4 sm:$0xff]  }
 0x259   : > { %4345 = vmatpush2.bf16.msra.mxu1 %v7907_v59  ;;  %4295 = vmatprep.subr.bf16.mxu0 %v7912_v60  ;;  %v7961_v59 = vld [vmem:[#allocation6 + $0xf30] ss:$8 sps:$4 sm:$0xff]   ;;  %v7966_v60 = vld [vmem:[#allocation6 + $0xf24] ss:$8 sps:$4 sm:$0xff]  }
 0x25a   : > { %4346 = vmatprep.subr.bf16.mxu1 %v7915_v51  ;;  %v7964_v51 = vld [vmem:[#allocation6 + $0xf20] ss:$8 sps:$4 sm:$0xff]  }
 0x25c   : > { %4296 = vmatpush2.bf16.msra.mxu0 %v7910_v34  ;;  %v7969_v34 = vld [vmem:[#allocation6 + $0xf14] ss:$8 sps:$4 sm:$0xff]  }
 0x25d   : > { %4347 = vmatpush2.bf16.msra.mxu1 %v7913_v4  ;;  %4297 = vmatprep.subr.bf16.mxu0 %v7918_v7  ;;  %v2794_v4 = vpop.f32.mrf.mxu1  ;;  %v7967_v7 = vld [vmem:[#allocation6 + $0xf10] ss:$8 sps:$4 sm:$0xff]  }
 0x25e   : > { %4416 = vmatprep.subr.bf16.mxu1 %v7921_v8  ;;  %v7972_v8 = vld [vmem:[#allocation6 + $0xf04] ss:$8 sps:$4 sm:$0xff]  }
 0x260   : > { %4349 = vmatmul.mubr.bf16.vlgmr.msra.gmra.mxu1 %v8862_v56  ;;  %4298 = vmatpush2.bf16.msra.mxu0 %v7916_v52  ;;  %v4477_v56 = vand.u32 %v7928_v21, %v8901_v24  ;;  %v2796_v52 = vpop.f32.mrf.mxu1  ;;  %v7973_v21 = vld [vmem:[#allocation6 + $0xef0] ss:$8 sps:$4 sm:$0xff]   ;;  %v7978_v24 = vld [vmem:[#allocation6 + $0xee4] ss:$8 sps:$4 sm:$0xff]  }
 0x261   : > { %4417 = vmatpush1.bf16.msra.mxu1 %v7919_v58  ;;  %4299 = vmatprep.subr.bf16.mxu0 %v7924_v62  ;;  %v7970_v58 = vld [vmem:[#allocation6 + $0xf00] ss:$8 sps:$4 sm:$0xff]  }
 0x262   : > { %4434 = vmatprep.mubr.bf16.mxu1 %v8499_v17  ;;  %7082 = vmatprep.subr.bf16.mxu1 %v8501_v25  ;;  %v2798_v1 = vpop.f32.mrf.mxu1 }
 0x264   : > { %4300 = vmatpush2.bf16.msra.mxu0 %v7922_v19  ;;  %v2215_v19 = vld [vmem:[#allocation8 + $0x4] sm:$0x3] }
 0x265   : > { %4301 = vmatprep.subr.bf16.mxu0 %v7927_v23 }
 0x267   : > { %v2751_v62 = vpop.f32.mrf.mxu0 }
 0x268   : > { %6858 = vmatmul.mubr.msk.bf16.vlgmr.msra.gmra.mxu1 %vm1161_vm0, %v8889_v13  ;;  %4302 = vmatpush2.bf16.msra.mxu0 %v7925_v26  ;;  %v7932_v13 = vld [vmem:[#allocation6 + $0xeb0] ss:$8 sps:$4 sm:$0xff]   ;;  %v2800_v26 = vpop.f32.mrf.mxu1 }
 0x269   : > { %7083 = vmatpush3.bf16.msra.mxu1 %v4477_v56  ;;  %4303 = vmatprep.subr.bf16.mxu0 %v7931_v27  ;;  %v2753_v23 = vpop.f32.mrf.mxu0  ;;  %v2224_v56 = vrot.slane %v2215_v19, %v8800_v22  ;;  %v7976_v27 = vld [vmem:[#allocation6 + $0xee0] ss:$8 sps:$4 sm:$0xff]  }
 0x26a   : > { %7084 = vmatprep.mubr.msk.bf16.mxu1 %vm8502_vm3, %v8501_v25  ;;  %7088 = vmatprep.subr.bf16.mxu1 %v8501_v25 }
 0x26c   : > { %4304 = vmatpush2.bf16.msra.mxu0 %v7929_v11  ;;  %v2755_v11 = vpop.f32.mrf.mxu0 }
 0x26d   : > { %4359 = vmatprep.subr.bf16.mxu0 %v7934_v29 }
 0x26f   : > { %4306 = vmatmul.mubr.bf16.vlgmr.msra.gmra.mxu0 %v8219_v33  ;;  %v7984_v33 = vld [vmem:[#allocation6 + $0xec4] ss:$8 sps:$4 sm:$0xff]  }
 0x270   : > { %7085 = vmatmul.mubr.msk.bf16.vlgmr.msra.gmra.mxu1 %vm4468_vm4, %v8914_v30  ;;  %4360 = vmatpush1.bf16.msra.mxu0 %v7932_v13  ;;  %v2754_v13 = vadd.f32 %v2753_v23, %v2224_v56  ;;  %v8008_v23 = vld [vmem:[#allocation11 + $0x20] ss:$8 sps:$4 sm:$0xff]  }
 0x271   : > { %7089 = vmatpush3.bf16.msra.mxu1 %v4537_v31  ;;  %4361 = vmatprep.subr.bf16.mxu0 %v7939_v32  ;;  %v7979_v31 = vld [vmem:[#allocation6 + $0xed0] ss:$8 sps:$4 sm:$0xff]   ;;  %v2757_v32 = vpop.f32.mrf.mxu0 }
 0x272   : > { %7090 = vmatprep.mubr.msk.bf16.mxu1 %vm8502_vm3, %v8501_v25  ;;  %7094 = vmatprep.subr.bf16.mxu1 %v8501_v25 }
 0x273   : > { %4391 = vmatprep.mubr.bf16.mxu0 %v8220_v37 }
 0x274   : > { %4362 = vmatpush1.bf16.msra.mxu0 %v7937_v6 }
 0x275   : > { %4363 = vmatprep.subr.bf16.mxu0 %v7942_v36 }
 0x278   : > { %7091 = vmatmul.mubr.msk.bf16.vlgmr.msra.gmra.mxu1 %vm4468_vm4, %v8914_v30  ;;  %4364 = vmatpush1.bf16.msra.mxu0 %v7940_v38  ;;  %v2758_v38 = vadd.f32 %v2757_v32, %v2224_v56  ;;  %v8016_v56 = vld [vmem:[#allocation11 + $0x14] ss:$8 sps:$4 sm:$0xff]   ;;  %v8025_v32 = vld [vmem:[#allocation11 + $0xe0] ss:$8 sps:$4 sm:$0xff]  }
 0x279   : > { %7095 = vmatpush3.bf16.msra.mxu1 %v4599_v39  ;;  %4365 = vmatprep.subr.bf16.mxu0 %v7946_v41  ;;  %v2797_v41 = vadd.f32 %v2796_v52, %v2754_v13  ;;  %v7999_v52 = vld [vmem:[%s9226_s7 + $0x20] ss:$8 sps:$4 sm:$0xff]  }
 0x27a   : > { %7096 = vmatprep.mubr.msk.bf16.mxu1 %vm8502_vm3, %v8501_v25  ;;  %7100 = vmatprep.subr.bf16.mxu1 %v8501_v25 }
 0x27c   : > { %4366 = vmatpush1.bf16.msra.mxu0 %v7944_v42  ;;  %v7982_v42 = vld [vmem:[#allocation6 + $0xec0] ss:$8 sps:$4 sm:$0xff]  }
 0x27d   : > { %4367 = vmatprep.subr.bf16.mxu0 %v7949_v43 }
 0x280   : > { %7097 = vmatmul.mubr.msk.bf16.vlgmr.msra.gmra.mxu1 %vm4468_vm4, %v8914_v30  ;;  %4368 = vmatpush1.bf16.msra.mxu0 %v7947_v44 }
 0x281   : > { %7101 = vmatpush3.bf16.msra.mxu1 %v4661_v46  ;;  %4369 = vmatprep.subr.bf16.mxu0 %v7953_v47 }
 0x282   : > { %7102 = vmatprep.mubr.msk.bf16.mxu1 %vm8502_vm3, %v8501_v25  ;;  %7106 = vmatprep.subr.bf16.mxu1 %v8501_v25 }
 0x284   : > { %4370 = vmatpush1.bf16.msra.mxu0 %v7951_v48 }
 0x285   : > { %4371 = vmatprep.subr.bf16.mxu0 %v7956_v50 }
 0x288   : > { %7103 = vmatmul.mubr.msk.bf16.vlgmr.msra.gmra.mxu1 %vm4468_vm4, %v8914_v30  ;;  %4372 = vmatpush1.bf16.msra.mxu0 %v7954_v53  ;;  %v2801_v53 = vadd.f32 %v2800_v26, %v2758_v38  ;;  %v8014_v26 = vld [vmem:[#allocation11 + $0x10] ss:$8 sps:$4 sm:$0xff]   ;;  %v8033_v38 = vld [vmem:[#allocation11 + $0xd4] ss:$8 sps:$4 sm:$0xff]  }
 0x289   : > { %7107 = vmatpush3.bf16.msra.mxu1 %v4723_v54  ;;  %4373 = vmatprep.subr.bf16.mxu0 %v7960_v55 }
 0x28a   : > { %7108 = vmatprep.mubr.msk.bf16.mxu1 %vm8502_vm3, %v8501_v25  ;;  %v2220_v25 = vrot.slane %v2215_v19, %v8798_v18  ;;  %v8010_v19 = vld [vmem:[#allocation11 + $0x24] ss:$8 sps:$4 sm:$0xff]  }
 0x28c   : > { %4374 = vmatpush1.bf16.msra.mxu0 %v7958_v5  ;;  %v2752_v29 = vadd.f32 %v2751_v62, %v2220_v25  ;;  %v2756_v6 = vadd.f32 %v2755_v11, %v2220_v25  ;;  %v8002_v62 = vld [vmem:[#allocation11 + $0x30] ss:$8 sps:$4 sm:$0xff]  }
 0x28d   : > { %4375 = vmatprep.subr.bf16.mxu0 %v7963_v20  ;;  %v8011_v25 = vld [vmem:[%s9226_s7] ss:$8 sps:$4 sm:$0xff]  }
 0x28e   : > { %v2795_v35 = vadd.f32 %v2794_v4, %v2752_v29  ;;  %v2799_v46 = vadd.f32 %v2798_v1, %v2756_v6  ;;  %v8005_v1 = vld [vmem:[%s9226_s7 + $0x10] ss:$8 sps:$4 sm:$0xff]  }
 0x28f   : > { %v8019_v29 = vld [vmem:[#allocation11] ss:$8 sps:$4 sm:$0xff]  }
 0x290   : > { %7109 = vmatmul.mubr.msk.bf16.vlgmr.msra.gmra.mxu1 %vm4468_vm4, %v8914_v30  ;;  %4376 = vmatpush2.bf16.msra.mxu0 %v7961_v59  ;;  %v2880_v30 = vpop.f32.mrf.mxu1 }
 0x291   : > { %4886 = vmatprep.mubr.bf16.mxu1 %v8499_v17  ;;  %4377 = vmatprep.subr.bf16.mxu0 %v7966_v60 }
 0x292   : > { %v2882_v36 = vpop.f32.mrf.mxu1 }
 0x294   : > { %4378 = vmatpush2.bf16.msra.mxu0 %v7964_v51  ;;  %v2884_v47 = vpop.f32.mrf.mxu1  ;;  %v8221_v51 = vld [vmem:[%s8740_s18 + $0x10] ss:$28 sps:$4 sm:$0xff]   ;;  %s7069_s18 = sshll.u32 %s8588_s24, 4  ;;  %s8412_s24 = scalar_lea.vmem %s8411_s6, 32 }
 0x295   : > { %4379 = vmatprep.subr.bf16.mxu0 %v7969_v34  ;;  %s9182_s17 = scalar_lea.hbm %s9230_s11, %s7069_s18  ;;  %p8414_p1 = scmp.lt.s32.totalorder %s8412_s24, %s8406_s5 }
 0x296   : > { %v2886_v60 = vpop.f32.mrf.mxu1 }
 0x297   : > { %p8415_p3 = por %p8414_p1, %p8413_p9 }
 0x298   : > { %4380 = vmatpush2.bf16.msra.mxu0 %v7967_v7  ;;  %v6889_v7 = vcombine.low %v4807_v2, %v4807_v2 }
 0x299   : > { %4381 = vmatprep.subr.bf16.mxu0 %v7972_v8  ;;  %v8001_v8 = vld [vmem:[%s9226_s7 + $0x24] ss:$8 sps:$4 sm:$0xff]   ;;  %p8416_p13 = pnand %p8415_p3, %p8409_p7 }
 0x29a   : > { %v4849_v10 = vsel %vm4847_vm5, %v6889_v7, 0  ;;  %v8051_v7 = vld [vmem:[#allocation11 + $0xa4] ss:$8 sps:$4 sm:$0xff]  }
 0x29c   : > { %4382 = vmatpush2.bf16.msra.mxu0 %v7970_v58  ;;  %v8004_v58 = vld [vmem:[#allocation11 + $0x34] ss:$8 sps:$4 sm:$0xff]  }
 0x29d   : > { %4383 = vmatprep.subr.bf16.mxu0 %v7975_v16  ;;  %v8007_v16 = vld [vmem:[%s9226_s7 + $0x14] ss:$8 sps:$4 sm:$0xff]  }
 0x2a0   : > { %4384 = vmatpush2.bf16.msra.mxu0 %v7973_v21  ;;  %v3529_v21 = vpop.f32.mrf.mxu1 }
 0x2a1   : > { %4385 = vmatprep.subr.bf16.mxu0 %v7978_v24  ;;  %v8013_v24 = vld [vmem:[%s9226_s7 + $0x4] ss:$8 sps:$4 sm:$0xff]  }
 0x2a2   : > { %v3531_v11 = vpop.f32.mrf.mxu1 }
 0x2a4   : > { %4386 = vmatpush2.bf16.msra.mxu0 %v7976_v27  ;;  %v9002_v27 = vld [vmem:[%s9226_s7 + $0x68] sm:$0x11]  ;;  %v3533_v13 = vpop.f32.mrf.mxu1 }
 0x2a5   : > { %4387 = vmatprep.subr.bf16.mxu0 %v7981_v28  ;;  %v6938_v28 = vcombine.high %v9002_v27, %v9002_v27 }
 0x2a6   : > { %v3535_v6 = vpop.f32.mrf.mxu1 }
 0x2a7   : > { %v2837_v37 = vpop.f32.mrf.mxu0 }
 0x2a8   : > { %v2838_v39 = vadd.f32 %v2837_v37, %v2795_v35  ;;  %4388 = vmatpush2.bf16.msra.mxu0 %v7979_v31  ;;  %v2993_v31 = vld [vmem:[#allocation8 + $0x6] sm:$0x3]  ;;  %v8031_v37 = vld [vmem:[#allocation11 + $0xd0] ss:$8 sps:$4 sm:$0xff]  }
 0x2a9   : > { %v2839_v15 = vpop.f32.mrf.mxu0  ;;  %4389 = vmatprep.subr.bf16.mxu0 %v7984_v33  ;;  %v8027_v33 = vld [vmem:[#allocation11 + $0xe4] ss:$8 sps:$4 sm:$0xff]   ;;  %v2998_v35 = vrot.slane %v2993_v31, %v8798_v18 }
 0x2aa   : > { %v2881_v43 = vadd.f32 %v2880_v30, %v2838_v39  ;;  %v2840_v44 = vadd.f32 %v2839_v15, %v2797_v41  ;;  %v8021_v30 = vld [vmem:[#allocation11 + $0x4] ss:$8 sps:$4 sm:$0xff]   ;;  %v3002_v39 = vrot.slane %v2993_v31, %v8800_v22 }
 0x2ab   : > { %v2841_v48 = vpop.f32.mrf.mxu0  ;;  %v3530_v41 = vadd.f32 %v3529_v21, %v2998_v35 }
 0x2ac   : > { %v2883_v49 = vadd.f32 %v2882_v36, %v2840_v44  ;;  %v2842_v50 = vadd.f32 %v2841_v48, %v2799_v46  ;;  %4390 = vmatpush2.bf16.msra.mxu0 %v7982_v42  ;;  %v8958_v54 = vmax.f32 %v2111_v63, %v2881_v43  ;;  %v7985_v63 = vld [vmem:[#allocation11 + $0x70] ss:$8 sps:$4 sm:$0xff]   ;;  %v8037_v43 = vld [vmem:[#allocation11 + $0xc0] ss:$8 sps:$4 sm:$0xff]   ;;  %v8039_v44 = vld [vmem:[#allocation11 + $0xc4] ss:$8 sps:$4 sm:$0xff]   ;;  %v3532_v46 = vadd.f32 %v3531_v11, %v3002_v39 }
 0x2ad   : > { %v2843_v55 = vpop.f32.mrf.mxu0  ;;  %5051 = vmatprep.subr.bf16.mxu0 %v7987_v57 }
 0x2ae   : > { %v2885_v5 = vadd.f32 %v2884_v47, %v2842_v50  ;;  %v2844_v20 = vadd.f32 %v2843_v55, %v2801_v53  ;;  %v8963_v59 = vmax.f32 %v2112_v3, %v2883_v49  ;;  %v7993_v3 = vld [vmem:[#allocation11 + $0x54] ss:$8 sps:$4 sm:$0xff]   ;;  %v3534_v49 = vadd.f32 %v3533_v13, %v2998_v35 }
 0x2af   : > { %4392 = vmatmul.mubr.bf16.vlgmr.msra.gmra.mxu0 %v8221_v51  ;;  %v3536_v51 = vadd.f32 %v3535_v6, %v3002_v39 }
 0x2b0   : > { %v2887_v34 = vadd.f32 %v2886_v60, %v2844_v20  ;;  %v8969_v4 = vmax.f32 %v2113_v61, %v2885_v5  ;;  %5052 = vmatpush1.bf16.msra.mxu0 %v7985_v63  ;;  %v6890_v61 = vcombine.high %v4807_v2, %v4807_v2  ;;  %v8043_v20 = vld [vmem:[#allocation11 + $0xb0] ss:$8 sps:$4 sm:$0xff]   ;;  %v8045_v60 = vld [vmem:[#allocation11 + $0xb4] ss:$8 sps:$4 sm:$0xff]  }
 0x2b1   : > { %5053 = vmatprep.subr.bf16.mxu0 %v7990_v9 }
 0x2b2   : > { %v8974_v40 = vmax.f32 %v2114_v14, %v2887_v34  ;;  %6891 = vmatprep.subr.msk.bf16.mxu1 %vm4847_vm5, %v6890_v61  ;;  %v7996_v14 = vld [vmem:[#allocation11 + $0x40] ss:$8 sps:$4 sm:$0xff]  }
 0x2b3   : > { %4863 = vmatpush1.bf16.msra.mxu1 %v4849_v10 }
 0x2b4   : > { %5054 = vmatpush1.bf16.msra.mxu0 %v7988_v0  ;;  %4864 = vmatprep.subr.bf16.mxu1 %v8001_v8 }
 0x2b5   : > { %5055 = vmatprep.subr.bf16.mxu0 %v7993_v3 }
 0x2b7   : > { %4865 = vmatpush1.bf16.msra.mxu1 %v7999_v52 }
 0x2b8   : > { %5056 = vmatpush1.bf16.msra.mxu0 %v7991_v45  ;;  %4866 = vmatprep.subr.bf16.mxu1 %v8007_v16  ;;  %v8057_v16 = vld [vmem:[#allocation11 + $0x94] ss:$8 sps:$4 sm:$0xff]  }
 0x2b9   : > { %5057 = vmatprep.subr.bf16.mxu0 %v7998_v12  ;;  %v8049_v12 = vld [vmem:[#allocation11 + $0xa0] ss:$8 sps:$4 sm:$0xff]  }
 0x2bb   : > { %4867 = vmatpush1.bf16.msra.mxu1 %v8005_v1 }
 0x2bc   : > { %5058 = vmatpush1.bf16.msra.mxu0 %v7996_v14  ;;  %4868 = vmatprep.subr.bf16.mxu1 %v8013_v24 }
 0x2bd   : > { %5059 = vmatprep.subr.bf16.mxu0 %v8004_v58 }
 0x2bf   : > { %4869 = vmatpush1.bf16.msra.mxu1 %v8011_v25  ;;  %v8063_v25 = vld [vmem:[#allocation11 + $0x84] ss:$8 sps:$4 sm:$0xff]  }
 0x2c0   : > { %5060 = vmatpush1.bf16.msra.mxu0 %v8002_v62  ;;  %6939 = vmatprep.subr.msk.bf16.mxu1 %vm4847_vm5, %v6938_v28 }
 0x2c1   : > { %5061 = vmatprep.subr.bf16.mxu0 %v8010_v19  ;;  %v8055_v19 = vld [vmem:[#allocation11 + $0x90] ss:$8 sps:$4 sm:$0xff]  }
 0x2c4   : > { %5062 = vmatpush1.bf16.msra.mxu0 %v8008_v23 }
 0x2c5   : > { %5063 = vmatprep.subr.bf16.mxu0 %v8016_v56  ;;  %v9028_v56 = vld [vmem:[%s9226_s7 + $0xa0] sm:$0x11] }
 0x2c6   : > { %v6986_v11 = vcombine.high %v9028_v56, %v9028_v56 }
 0x2c8   : > { %5064 = vmatpush1.bf16.msra.mxu0 %v8014_v26  ;;  %v8061_v26 = vld [vmem:[#allocation11 + $0x80] ss:$8 sps:$4 sm:$0xff]  }
 0x2c9   : > { %5065 = vmatprep.subr.bf16.mxu0 %v8021_v30 }
 0x2cc   : > { %5066 = vmatpush1.bf16.msra.mxu0 %v8019_v29 }
 0x2cd   : > { %5069 = vmatprep.subr.bf16.mxu0 %v8027_v33 }
 0x2d0   : > { %5070 = vmatpush2.bf16.msra.mxu0 %v8025_v32 }
 0x2d1   : > { %5071 = vmatprep.subr.bf16.mxu0 %v8033_v38 }
 0x2d4   : > { %5072 = vmatpush2.bf16.msra.mxu0 %v8031_v37 }
 0x2d5   : > { %5073 = vmatprep.subr.bf16.mxu0 %v8039_v44 }
 0x2d8   : > { %5074 = vmatpush2.bf16.msra.mxu0 %v8037_v43 }
 0x2d9   : > { %5075 = vmatprep.subr.bf16.mxu0 %v8045_v60 }
 0x2dc   : > { %5076 = vmatpush2.bf16.msra.mxu0 %v8043_v20 }
 0x2dd   : > { %5077 = vmatprep.subr.bf16.mxu0 %v8051_v7 }
 0x2e0   : > { %v3615_v36 = vpop.f32.mrf.mxu1  ;;  %5078 = vmatpush2.bf16.msra.mxu0 %v8049_v12 }
 0x2e1   : > { %5079 = vmatprep.subr.bf16.mxu0 %v8057_v16 }
 0x2e2   : > { %v3617_v42 = vpop.f32.mrf.mxu1 }
 0x2e4   : > { %v3619_v55 = vpop.f32.mrf.mxu1  ;;  %5080 = vmatpush2.bf16.msra.mxu0 %v8055_v19 }
 0x2e5   : > { %5081 = vmatprep.subr.bf16.mxu0 %v8063_v25 }
 0x2e6   : > { %v3621_v3 = vpop.f32.mrf.mxu1 }
 0x2e7   : > { %v3572_v15 = vpop.f32.mrf.mxu0 }
 0x2e8   : > { %v3573_v47 = vadd.f32 %v3572_v15, %v3530_v41  ;;  %5082 = vmatpush2.bf16.msra.mxu0 %v8061_v26 }
 0x2e9   : > { %v3574_v48 = vpop.f32.mrf.mxu0  ;;  %6987 = vmatprep.subr.msk.bf16.mxu0 %vm4847_vm5, %v6986_v11 }
 0x2ea   : > { %v3575_v50 = vadd.f32 %v3574_v48, %v3532_v46  ;;  %v3616_v53 = vadd.f32 %v3615_v36, %v3573_v47 }
 0x2eb   : > { %v3576_v5 = vpop.f32.mrf.mxu0 }
 0x2ec   : > { %v3577_v34 = vadd.f32 %v3576_v5, %v3534_v49  ;;  %v3618_v57 = vadd.f32 %v3617_v42, %v3575_v50  ;;  %v6865_v49 = vld [vmem:[#allocation9 + $0x1] ss:$0 sm:$0xff] }
 0x2ed   : > { %v3578_v63 = vpop.f32.mrf.mxu0 }
 0x2ee   : > { %v3579_v9 = vadd.f32 %v3578_v63, %v3536_v51  ;;  %v3620_v0 = vadd.f32 %v3619_v55, %v3577_v34  ;;  %v6870_v55 = vld [vmem:[#allocation9 + $0x2] ss:$0 sm:$0xff]  ;;  %v6875_v51 = vld [vmem:[#allocation9 + $0x3] ss:$0 sm:$0xff] }
 0x2ef   : > { %v3658_v2 = vpop.f32.mrf.mxu0 }
 0x2f0   : > { %v9009_v45 = vadd.f32 %v3658_v2, %v3616_v53  ;;  %v3622_v61 = vadd.f32 %v3621_v3, %v3579_v9  ;;  %v6859_v53 = vld [vmem:[#allocation9] ss:$0 sm:$0xff]  ;;  %v6880_v3 = vld [vmem:[#allocation9 + $0x4] ss:$0 sm:$0xff] }
 0x2f1   : > { %v3660_v10 = vpop.f32.mrf.mxu0 }
 0x2f2   : > { %v3667_v14 = vmax.f32 %v8958_v54, %v9009_v45  ;;  %v9013_v8 = vadd.f32 %v3660_v10, %v3618_v57 }
 0x2f3   : > { %v3662_v52 = vpop.f32.mrf.mxu0 }
 0x2f4   : > { %v3668_v58 = vmax.f32 %v8963_v59, %v9013_v8  ;;  %v9017_v62 = vadd.f32 %v3662_v52, %v3620_v0  ;;  %v8068_v8 = vld [vmem:[#allocation11 + $0x110] ss:$8 sps:$4 sm:$0xff]  }
 0x2f5   : > { %v3664_v1 = vpop.f32.mrf.mxu0 }
 0x2f6   : > { %v3669_v21 = vmax.f32 %v8969_v4, %v9017_v62  ;;  %v9021_v23 = vadd.f32 %v3664_v1, %v3622_v61  ;;  %v8077_v4 = vld [vmem:[#allocation11 + $0x104] ss:$8 sps:$4 sm:$0xff]  }
 0x2f8   : > { %v3670_v24 = vmax.f32 %v8974_v40, %v9021_v23  ;;  %v8075_v40 = vld [vmem:[#allocation11 + $0x100] ss:$8 sps:$4 sm:$0xff]  }
 0x2f9   : > { %v8072_v23 = vld [vmem:[%s9226_s7 + $0x90] ss:$8 sps:$4 sm:$0xff]  }
 0x320   : > { %v9033_v28 = vpop.f32.mrf.mxu1 }
 0x322   : > { %v9035_v29 = vpop.f32.mrf.mxu1 }
 0x324   : > { %v9037_v30 = vpop.f32.mrf.mxu1 }
 0x326   : > { %v9039_v13 = vpop.f32.mrf.mxu1 }
 0x328   : > { %v9041_v31 = vpop.f32.mrf.mxu1 }
 0x32a   : > { %v9043_v32 = vpop.f32.mrf.mxu1 }
 0x32c   : > { %v9045_v33 = vpop.f32.mrf.mxu1 }
 0x32e   : > { %v9047_v6 = vpop.f32.mrf.mxu1 }
 0x330   : > { %v4513_v35 = vpop.f32.mrf.mxu1 }
 0x331   : > { %v4514_v57 = vadd.f32 %v6859_v53, %v4513_v35  ;;  %v6937_v35 = vcombine.low %v9002_v27, %v9002_v27  ;;  %v8022_v27 = vld [vmem:[%s9226_s7 + $0x58] ss:$8 sps:$4 sm:$0xff]  }
 0x332   : > { %v7086_v36 = vpop.f32.mrf.mxu1 }
 0x334   : > { %v4516_v37 = vpop.f32.mrf.mxu1 }
 0x335   : > { %v4517_v63 = vadd.f32 %v6859_v53, %v4516_v37 }
 0x336   : > { %v7087_v38 = vpop.f32.mrf.mxu1 }
 0x338   : > { %v4573_v39 = vpop.f32.mrf.mxu1 }
 0x339   : > { %v4574_v20 = vadd.f32 %v6865_v49, %v4573_v39 }
 0x33a   : > { %v7092_v41 = vpop.f32.mrf.mxu1 }
 0x33b   : > { %v4580_v61 = vmax.f32 %v4514_v57, %v4574_v20  ;;  %v8046_v57 = vld [vmem:[#allocation11 + $0x150] ss:$8 sps:$4 sm:$0xff]  }
 0x33c   : > { %v4576_v42 = vpop.f32.mrf.mxu1 }
 0x33d   : > { %v4577_v60 = vadd.f32 %v6865_v49, %v4576_v42  ;;  %v5185_v42 = vsel %vm4847_vm5, %v6937_v35, 0  ;;  %v8034_v49 = vld [vmem:[%s9226_s7 + $0x38] ss:$8 sps:$4 sm:$0xff]  }
 0x33e   : > { %v7093_v15 = vpop.f32.mrf.mxu1 }
 0x33f   : > { %v4581_v7 = vmax.f32 %v4517_v63, %v4577_v60  ;;  %v8024_v15 = vld [vmem:[%s9226_s7 + $0x5c] ss:$8 sps:$4 sm:$0xff]  }
 0x340   : > { %v4635_v43 = vpop.f32.mrf.mxu1  ;;  %v8048_v60 = vld [vmem:[#allocation11 + $0x154] ss:$8 sps:$4 sm:$0xff]  }
 0x341   : > { %v4636_v9 = vadd.f32 %v6870_v55, %v4635_v43  ;;  %v8030_v43 = vld [vmem:[%s9226_s7 + $0x4c] ss:$8 sps:$4 sm:$0xff]  }
 0x342   : > { %v7098_v44 = vpop.f32.mrf.mxu1 }
 0x343   : > { %v4642_v16 = vmax.f32 %v4580_v61, %v4636_v9  ;;  %v8028_v44 = vld [vmem:[%s9226_s7 + $0x48] ss:$8 sps:$4 sm:$0xff]   ;;  %v8054_v9 = vld [vmem:[#allocation11 + $0x144] ss:$8 sps:$4 sm:$0xff]  }
 0x344   : > { %v4638_v46 = vpop.f32.mrf.mxu1 }
 0x345   : > { %v4639_v0 = vadd.f32 %v6870_v55, %v4638_v46  ;;  %v8036_v46 = vld [vmem:[%s9226_s7 + $0x3c] ss:$8 sps:$4 sm:$0xff]  }
 0x346   : > { %v7099_v47 = vpop.f32.mrf.mxu1 }
 0x347   : > { %v4643_v1 = vmax.f32 %v4581_v7, %v4639_v0  ;;  %v4307_v47 = vpop.f32.mrf.mxu0  ;;  %v8052_v7 = vld [vmem:[#allocation11 + $0x140] ss:$8 sps:$4 sm:$0xff]  }
 0x348   : > { %v4697_v48 = vpop.f32.mrf.mxu1 }
 0x349   : > { %v4698_v10 = vadd.f32 %v6875_v51, %v4697_v48  ;;  %v3771_v48 = vld [vmem:[#allocation8 + $0x8] sm:$0x3]  ;;  %v4309_v53 = vpop.f32.mrf.mxu0 }
 0x34a   : > { %v7104_v50 = vpop.f32.mrf.mxu1  ;;  %v3776_v55 = vrot.slane %v3771_v48, %v8798_v18  ;;  %v3780_v20 = vrot.slane %v3771_v48, %v8800_v22  ;;  %v8092_v48 = vld [vmem:[#allocation11 + $0x254] ss:$8 sps:$4 sm:$0xff]  }
 0x34b   : > { %v4704_v26 = vmax.f32 %v4642_v16, %v4698_v10  ;;  %v8042_v50 = vld [vmem:[#allocation11 + $0x164] ss:$8 sps:$4 sm:$0xff]   ;;  %v8060_v16 = vld [vmem:[#allocation11 + $0x134] ss:$8 sps:$4 sm:$0xff]  }
 0x34c   : > { %v4700_v5 = vpop.f32.mrf.mxu1  ;;  %v4310_v63 = vadd.f32 %v4309_v53, %v3780_v20  ;;  %v8098_v53 = vld [vmem:[#allocation11 + $0x244] ss:$8 sps:$4 sm:$0xff]  }
 0x34d   : > { %v4701_v12 = vadd.f32 %v6875_v51, %v4700_v5  ;;  %v8040_v5 = vld [vmem:[#allocation11 + $0x160] ss:$8 sps:$4 sm:$0xff]   ;;  %v4311_v51 = vpop.f32.mrf.mxu0 }
 0x34e   : > { %v7105_v34 = vpop.f32.mrf.mxu1 }
 0x34f   : > { %v4705_v11 = vmax.f32 %v4643_v1, %v4701_v12  ;;  %v4308_v34 = vadd.f32 %v4307_v47, %v3776_v55  ;;  %v4313_v0 = vpop.f32.mrf.mxu0  ;;  %v8095_v47 = vld [vmem:[#allocation11 + $0x1c4] ss:$8 sps:$4 sm:$0xff]  }
 0x350   : > { %v4759_v2 = vpop.f32.mrf.mxu1  ;;  %v4314_v10 = vadd.f32 %v4313_v0, %v3780_v20  ;;  %v8096_v20 = vld [vmem:[#allocation11 + $0x240] ss:$8 sps:$4 sm:$0xff]   ;;  %v8111_v0 = vld [vmem:[#allocation11 + $0x190] ss:$8 sps:$4 sm:$0xff]  }
 0x351   : > { %v4760_v19 = vadd.f32 %v6880_v3, %v4759_v2  ;;  %v4351_v2 = vadd.f32 %v9033_v28, %v4308_v34  ;;  %v8105_v34 = vld [vmem:[#allocation11 + $0x1a0] ss:$8 sps:$4 sm:$0xff]  }
 0x352   : > { %v7110_v52 = vpop.f32.mrf.mxu1 }
 0x353   : > { %v4766_v38 = vmax.f32 %v4704_v26, %v4760_v19  ;;  %v4353_v52 = vadd.f32 %v9035_v29, %v4310_v63  ;;  %v4357_v29 = vadd.f32 %v9039_v13, %v4314_v10  ;;  %v6985_v13 = vcombine.low %v9028_v56, %v9028_v56  ;;  %v8080_v56 = vld [vmem:[%s9226_s7 + $0x84] ss:$8 sps:$4 sm:$0xff]  }
 0x354   : > { %v4762_v25 = vpop.f32.mrf.mxu1  ;;  %v8113_v63 = vld [vmem:[#allocation11 + $0x194] ss:$8 sps:$4 sm:$0xff]   ;;  %v8114_v10 = vld [vmem:[#allocation11 + $0x210] ss:$8 sps:$4 sm:$0xff]  }
 0x355   : > { %v4763_v36 = vadd.f32 %v6880_v3, %v4762_v25  ;;  %v4312_v3 = vadd.f32 %v4311_v51, %v3776_v55  ;;  %v5522_v62 = vsel %vm4847_vm5, %v6985_v13, 0  ;;  %v8101_v55 = vld [vmem:[#allocation11 + $0x1b4] ss:$8 sps:$4 sm:$0xff]   ;;  %v8151_v13 = vld [vmem:[#allocation11 + $0x2a4] ss:$8 sps:$4 sm:$0xff]  }
 0x356   : > { %v7111_v37 = vpop.f32.mrf.mxu1  ;;  %v8104_v51 = vld [vmem:[#allocation11 + $0x234] ss:$8 sps:$4 sm:$0xff]  }
 0x357   : > { %v4767_v39 = vmax.f32 %v4705_v11, %v4763_v36  ;;  %v4355_v26 = vadd.f32 %v9037_v30, %v4312_v3  ;;  %v8058_v36 = vld [vmem:[#allocation11 + $0x130] ss:$8 sps:$4 sm:$0xff]   ;;  %v8108_v3 = vld [vmem:[#allocation11 + $0x220] ss:$8 sps:$4 sm:$0xff]  }
 0x359   : > { %v9051_v41 = vpack.c.bf16 %v4767_v39, %v4766_v38  ;;  %v8066_v38 = vld [vmem:[#allocation11 + $0x124] ss:$8 sps:$4 sm:$0xff]  }
 0x35b   : > { %6892 = vmatmul.mubr.msk.bf16.vlgmr.msra.gmra.mxu1 %vm4843_vm6, %v9051_v41 }
 0x35c   : > { %5199 = vmatpush1.bf16.msra.mxu1 %v5185_v42  ;;  %5222 = vmatprep.mubr.bf16.mxu1 %v8499_v17 }
 0x35d   : > { %5200 = vmatprep.subr.bf16.mxu1 %v8024_v15  ;;  %v8064_v15 = vld [vmem:[#allocation11 + $0x120] ss:$8 sps:$4 sm:$0xff]  }
 0x360   : > { %5201 = vmatpush1.bf16.msra.mxu1 %v8022_v27  ;;  %v8089_v27 = vld [vmem:[#allocation11 + $0x1d4] ss:$8 sps:$4 sm:$0xff]  }
 0x361   : > { %5202 = vmatprep.subr.bf16.mxu1 %v8030_v43  ;;  %v8086_v43 = vld [vmem:[%s9226_s7 + $0x74] ss:$8 sps:$4 sm:$0xff]  }
 0x364   : > { %5203 = vmatpush1.bf16.msra.mxu1 %v8028_v44  ;;  %v8087_v44 = vld [vmem:[#allocation11 + $0x1d0] ss:$8 sps:$4 sm:$0xff]  }
 0x365   : > { %5204 = vmatprep.subr.bf16.mxu1 %v8036_v46  ;;  %v8084_v46 = vld [vmem:[%s9226_s7 + $0x70] ss:$8 sps:$4 sm:$0xff]  }
 0x368   : > { %5205 = vmatpush1.bf16.msra.mxu1 %v8034_v49  ;;  %v8093_v49 = vld [vmem:[#allocation11 + $0x1c0] ss:$8 sps:$4 sm:$0xff]  }
 0x369   : > { %5383 = vmatprep.subr.bf16.mxu1 %v8042_v50  ;;  %v8090_v50 = vld [vmem:[#allocation11 + $0x250] ss:$8 sps:$4 sm:$0xff]  }
 0x36b   : > { %6940 = vmatmul.mubr.msk.bf16.vlgmr.msra.gmra.mxu1 %vm4843_vm6, %v9051_v41 }
 0x36c   : > { %5384 = vmatpush1.bf16.msra.mxu1 %v8040_v5  ;;  %v8099_v5 = vld [vmem:[#allocation11 + $0x1b0] ss:$8 sps:$4 sm:$0xff]  }
 0x36d   : > { %5385 = vmatprep.subr.bf16.mxu1 %v8048_v60  ;;  %v8107_v60 = vld [vmem:[#allocation11 + $0x1a4] ss:$8 sps:$4 sm:$0xff]  }
 0x36f   : > { %v4393_v61 = vpop.f32.mrf.mxu0 }
 0x370   : > { %5386 = vmatpush1.bf16.msra.mxu1 %v8046_v57  ;;  %v4394_v12 = vadd.f32 %v4393_v61, %v4351_v2  ;;  %v8102_v57 = vld [vmem:[#allocation11 + $0x230] ss:$8 sps:$4 sm:$0xff]   ;;  %v8119_v2 = vld [vmem:[#allocation11 + $0x184] ss:$8 sps:$4 sm:$0xff]   ;;  %v8116_v61 = vld [vmem:[#allocation11 + $0x214] ss:$8 sps:$4 sm:$0xff]  }
 0x371   : > { %5387 = vmatprep.subr.bf16.mxu1 %v8054_v9  ;;  %v4395_v1 = vpop.f32.mrf.mxu0  ;;  %v8110_v9 = vld [vmem:[#allocation11 + $0x224] ss:$8 sps:$4 sm:$0xff]  }
 0x372   : > { %v4437_v19 = vadd.f32 %v9041_v31, %v4394_v12  ;;  %v4396_v25 = vadd.f32 %v4395_v1, %v4353_v52  ;;  %v8125_v12 = vld [vmem:[#allocation11 + $0x174] ss:$8 sps:$4 sm:$0xff]   ;;  %v8122_v52 = vld [vmem:[#allocation11 + $0x204] ss:$8 sps:$4 sm:$0xff]   ;;  %v8123_v1 = vld [vmem:[#allocation11 + $0x170] ss:$8 sps:$4 sm:$0xff]  }
 0x373   : > { %v4397_v11 = vpop.f32.mrf.mxu0 }
 0x374   : > { %5388 = vmatpush1.bf16.msra.mxu1 %v8052_v7  ;;  %v4445_v28 = vmax.f32 %v3667_v14, %v4437_v19  ;;  %v4439_v35 = vadd.f32 %v9043_v32, %v4396_v25  ;;  %v4398_v37 = vadd.f32 %v4397_v11, %v4355_v26  ;;  %v8070_v14 = vld [vmem:[#allocation11 + $0x114] ss:$8 sps:$4 sm:$0xff]   ;;  %v8117_v7 = vld [vmem:[#allocation11 + $0x180] ss:$8 sps:$4 sm:$0xff]  }
 0x375   : > { %5389 = vmatprep.subr.bf16.mxu1 %v8060_v16  ;;  %v4399_v39 = vpop.f32.mrf.mxu0  ;;  %v7026_v16 = vld [vmem:[%s9226_s7 + $0xd8] sm:$0x11]  ;;  %v8128_v11 = vld [vmem:[#allocation11 + $0x1f4] ss:$8 sps:$4 sm:$0xff]  }
 0x376   : > { %v4446_v31 = vmax.f32 %v3668_v58, %v4439_v35  ;;  %v4441_v30 = vadd.f32 %v9045_v33, %v4398_v37  ;;  %v4400_v42 = vadd.f32 %v4399_v39, %v4357_v29  ;;  %v8081_v33 = vld [vmem:[#allocation11 + $0xf0] ss:$8 sps:$4 sm:$0xff]   ;;  %v8120_v19 = vld [vmem:[#allocation11 + $0x200] ss:$8 sps:$4 sm:$0xff]   ;;  %v7034_v25 = vcombine.high %v7026_v16, %v7026_v16  ;;  %v8133_v37 = vld [vmem:[#allocation11 + $0x1e4] ss:$8 sps:$4 sm:$0xff]  }
 0x377   : > { %v7033_v26 = vcombine.low %v7026_v16, %v7026_v16  ;;  %v8136_v35 = vld [vmem:[%s9226_s7 + $0xcc] ss:$8 sps:$4 sm:$0xff]   ;;  %v8134_v29 = vld [vmem:[%s9226_s7 + $0xc8] ss:$8 sps:$4 sm:$0xff]   ;;  %v8142_v39 = vld [vmem:[%s9226_s7 + $0xbc] ss:$8 sps:$4 sm:$0xff]  }
 0x378   : > { %5390 = vmatpush1.bf16.msra.mxu1 %v8058_v36  ;;  %v4447_v54 = vmax.f32 %v3669_v21, %v4441_v30  ;;  %v4443_v45 = vadd.f32 %v9047_v6, %v4400_v42  ;;  %v8074_v21 = vld [vmem:[%s9226_s7 + $0x94] ss:$8 sps:$4 sm:$0xff]   ;;  %v8078_v6 = vld [vmem:[%s9226_s7 + $0x80] ss:$8 sps:$4 sm:$0xff]  }
 0x379   : > { %5391 = vmatprep.subr.bf16.mxu1 %v8066_v38  ;;  %v8126_v36 = vld [vmem:[#allocation11 + $0x1f0] ss:$8 sps:$4 sm:$0xff]   ;;  %v8131_v38 = vld [vmem:[#allocation11 + $0x1e0] ss:$8 sps:$4 sm:$0xff]  }
 0x37a   : > { %v9098_v32 = vpack.c.bf16 %v4447_v54, %v4445_v28  ;;  %v4448_v59 = vmax.f32 %v3670_v24, %v4443_v45  ;;  %v8083_v24 = vld [vmem:[#allocation11 + $0xf4] ss:$8 sps:$4 sm:$0xff]   ;;  %v5859_v28 = vsel %vm4847_vm5, %v7033_v26, 0  ;;  %v8140_v30 = vld [vmem:[%s9226_s7 + $0xb8] ss:$8 sps:$4 sm:$0xff]  }
 0x37b   : > { %v8137_v42 = vld [vmem:[#allocation11 + $0x2c0] ss:$8 sps:$4 sm:$0xff]   ;;  %v8143_v45 = vld [vmem:[#allocation11 + $0x2b0] ss:$8 sps:$4 sm:$0xff]  }
 0x37c   : > { %5392 = vmatpush1.bf16.msra.mxu1 %v8064_v15  ;;  %v9103_v58 = vpack.c.bf16 %v4448_v59, %v4446_v31  ;;  %v8139_v31 = vld [vmem:[#allocation11 + $0x2c4] ss:$8 sps:$4 sm:$0xff]   ;;  %v8145_v15 = vld [vmem:[#allocation11 + $0x2b4] ss:$8 sps:$4 sm:$0xff]   ;;  %v8152_v59 = vld [vmem:[#allocation11 + $0x340] ss:$8 sps:$4 sm:$0xff]  }
 0x37d   : > { %5393 = vmatprep.subr.bf16.mxu1 %v8070_v14  ;;  %v8146_v54 = vld [vmem:[%s9226_s7 + $0xa8] ss:$8 sps:$4 sm:$0xff]   ;;  %v8154_v14 = vld [vmem:[#allocation11 + $0x344] ss:$8 sps:$4 sm:$0xff]  }
 0x37e   : > { %6923 = vmatprep.mubr.msk.bf16.mxu0 %vm5047_vm7, %v9103_v58  ;;  %6971 = vmatprep.mubr.msk.bf16.mxu1 %vm5047_vm7, %v9103_v58 }
 0x37f   : > { %5084 = vmatmul.mubr.bf16.vlgmr.msra.gmra.mxu0 %v9098_v32 }
 0x380   : > { %5394 = vmatpush1.bf16.msra.mxu1 %v8068_v8  ;;  %5536 = vmatpush1.bf16.msra.mxu0 %v5522_v62  ;;  %v8149_v8 = vld [vmem:[#allocation11 + $0x2a0] ss:$8 sps:$4 sm:$0xff]   ;;  %v8157_v62 = vld [vmem:[#allocation11 + $0x294] ss:$8 sps:$4 sm:$0xff]  }
 0x381   : > { %5395 = vmatprep.subr.bf16.mxu1 %v8077_v4  ;;  %5537 = vmatprep.subr.bf16.mxu0 %v8074_v21  ;;  %v8160_v4 = vld [vmem:[#allocation11 + $0x334] ss:$8 sps:$4 sm:$0xff]   ;;  %v8158_v21 = vld [vmem:[#allocation11 + $0x330] ss:$8 sps:$4 sm:$0xff]  }
 0x382   : > { %5559 = vmatprep.mubr.bf16.mxu0 %v8499_v17 }
 0x384   : > { %5396 = vmatpush1.bf16.msra.mxu1 %v8075_v40  ;;  %5538 = vmatpush1.bf16.msra.mxu0 %v8072_v23  ;;  %v8155_v40 = vld [vmem:[#allocation11 + $0x290] ss:$8 sps:$4 sm:$0xff]   ;;  %v8166_v23 = vld [vmem:[#allocation11 + $0x324] ss:$8 sps:$4 sm:$0xff]  }
 0x385   : > { %5397 = vmatprep.subr.bf16.mxu1 %v8083_v24  ;;  %5539 = vmatprep.subr.bf16.mxu0 %v8080_v56  ;;  %v8163_v24 = vld [vmem:[#allocation11 + $0x284] ss:$8 sps:$4 sm:$0xff]   ;;  %v8164_v56 = vld [vmem:[#allocation11 + $0x320] ss:$8 sps:$4 sm:$0xff]  }
 0x388   : > { %5398 = vmatpush1.bf16.msra.mxu1 %v8081_v33  ;;  %5540 = vmatpush1.bf16.msra.mxu0 %v8078_v6  ;;  %v8161_v33 = vld [vmem:[#allocation11 + $0x280] ss:$8 sps:$4 sm:$0xff]   ;;  %v8172_v6 = vld [vmem:[#allocation11 + $0x314] ss:$8 sps:$4 sm:$0xff]  }
 0x389   : > { %5401 = vmatprep.subr.bf16.mxu1 %v8089_v27  ;;  %5541 = vmatprep.subr.bf16.mxu0 %v8086_v43  ;;  %v8169_v27 = vld [vmem:[#allocation11 + $0x274] ss:$8 sps:$4 sm:$0xff]   ;;  %v8167_v43 = vld [vmem:[#allocation11 + $0x270] ss:$8 sps:$4 sm:$0xff]  }
 0x38c   : > { %5402 = vmatpush2.bf16.msra.mxu1 %v8087_v44  ;;  %5542 = vmatpush1.bf16.msra.mxu0 %v8084_v46  ;;  %v8175_v44 = vld [vmem:[#allocation11 + $0x264] ss:$8 sps:$4 sm:$0xff]   ;;  %v8176_v46 = vld [vmem:[#allocation11 + $0x300] ss:$8 sps:$4 sm:$0xff]  }
 0x38d   : > { %5403 = vmatprep.subr.bf16.mxu1 %v8095_v47  ;;  %5720 = vmatprep.subr.bf16.mxu0 %v8092_v48  ;;  %v8173_v47 = vld [vmem:[#allocation11 + $0x260] ss:$8 sps:$4 sm:$0xff]   ;;  %v8181_v48 = vld [vmem:[#allocation11 + $0x2f4] ss:$8 sps:$4 sm:$0xff]  }
 0x38f   : > { %6988 = vmatmul.mubr.msk.bf16.vlgmr.msra.gmra.mxu0 %vm4843_vm6, %v9051_v41 }
 0x390   : > { %5404 = vmatpush2.bf16.msra.mxu1 %v8093_v49  ;;  %5721 = vmatpush1.bf16.msra.mxu0 %v8090_v50  ;;  %v8179_v49 = vld [vmem:[#allocation11 + $0x2f0] ss:$8 sps:$4 sm:$0xff]   ;;  %v8184_v50 = vld [vmem:[#allocation11 + $0x2e4] ss:$8 sps:$4 sm:$0xff]  }
 0x391   : > { %7019 = vmatprep.mubr.msk.bf16.mxu0 %vm5047_vm7, %v9103_v58  ;;  %5722 = vmatprep.subr.bf16.mxu0 %v8098_v53  ;;  %v8182_v53 = vld [vmem:[#allocation11 + $0x2e0] ss:$8 sps:$4 sm:$0xff]  }
 0x392   : > { %5405 = vmatprep.subr.bf16.mxu1 %v8101_v55  ;;  %v8187_v55 = vld [vmem:[#allocation11 + $0x2d4] ss:$8 sps:$4 sm:$0xff]  }
 0x394   : > { %5406 = vmatpush2.bf16.msra.mxu1 %v8099_v5  ;;  %5723 = vmatpush1.bf16.msra.mxu0 %v8096_v20  ;;  %v8185_v5 = vld [vmem:[#allocation11 + $0x2d0] ss:$8 sps:$4 sm:$0xff]   ;;  %v8190_v20 = vld [vmem:[#allocation11 + $0x3b4] ss:$8 sps:$4 sm:$0xff]  }
 0x395   : > { %5407 = vmatprep.subr.bf16.mxu1 %v8107_v60  ;;  %5724 = vmatprep.subr.bf16.mxu0 %v8104_v51  ;;  %v8188_v60 = vld [vmem:[#allocation11 + $0x3b0] ss:$8 sps:$4 sm:$0xff]   ;;  %v8193_v51 = vld [vmem:[#allocation11 + $0x3a4] ss:$8 sps:$4 sm:$0xff]  }
 0x398   : > { %5408 = vmatpush2.bf16.msra.mxu1 %v8105_v34  ;;  %5725 = vmatpush1.bf16.msra.mxu0 %v8102_v57  ;;  %v8191_v34 = vld [vmem:[#allocation11 + $0x3a0] ss:$8 sps:$4 sm:$0xff]   ;;  %v8196_v57 = vld [vmem:[#allocation11 + $0x394] ss:$8 sps:$4 sm:$0xff]  }
 0x399   : > { %5409 = vmatprep.subr.bf16.mxu1 %v8113_v63  ;;  %5726 = vmatprep.subr.bf16.mxu0 %v8110_v9  ;;  %v8194_v63 = vld [vmem:[#allocation11 + $0x390] ss:$8 sps:$4 sm:$0xff]   ;;  %v8199_v9 = vld [vmem:[#allocation11 + $0x384] ss:$8 sps:$4 sm:$0xff]  }
 0x39c   : > { %5410 = vmatpush2.bf16.msra.mxu1 %v8111_v0  ;;  %5727 = vmatpush1.bf16.msra.mxu0 %v8108_v3  ;;  %v8197_v0 = vld [vmem:[#allocation11 + $0x380] ss:$8 sps:$4 sm:$0xff]   ;;  %v8202_v3 = vld [vmem:[#allocation11 + $0x374] ss:$8 sps:$4 sm:$0xff]  }
 0x39d   : > { %5411 = vmatprep.subr.bf16.mxu1 %v8119_v2  ;;  %5728 = vmatprep.subr.bf16.mxu0 %v8116_v61  ;;  %v8200_v2 = vld [vmem:[#allocation11 + $0x370] ss:$8 sps:$4 sm:$0xff]   ;;  %v8205_v61 = vld [vmem:[#allocation11 + $0x364] ss:$8 sps:$4 sm:$0xff]  }
 0x3a0   : > { %5412 = vmatpush2.bf16.msra.mxu1 %v8117_v7  ;;  %5729 = vmatpush1.bf16.msra.mxu0 %v8114_v10  ;;  %v8203_v7 = vld [vmem:[#allocation11 + $0x360] ss:$8 sps:$4 sm:$0xff]   ;;  %v8208_v10 = vld [vmem:[#allocation11 + $0x354] ss:$8 sps:$4 sm:$0xff]  }
 0x3a1   : > { %5413 = vmatprep.subr.bf16.mxu1 %v8125_v12  ;;  %5730 = vmatprep.subr.bf16.mxu0 %v8122_v52  ;;  %v8206_v12 = vld [vmem:[#allocation11 + $0x350] ss:$8 sps:$4 sm:$0xff]  }
 0x3a4   : > { %5414 = vmatpush2.bf16.msra.mxu1 %v8123_v1  ;;  %5731 = vmatpush1.bf16.msra.mxu0 %v8120_v19 }
 0x3a5   : > { %7035 = vmatprep.subr.msk.bf16.mxu1 %vm4847_vm5, %v7034_v25  ;;  %5732 = vmatprep.subr.bf16.mxu0 %v8128_v11 }
 0x3a7   : > { %5416 = vmatmul.mubr.bf16.vlgmr.msra.gmra.mxu1 %v9098_v32 }
 0x3a8   : > { %5873 = vmatpush1.bf16.msra.mxu1 %v5859_v28  ;;  %5896 = vmatprep.mubr.bf16.mxu1 %v8499_v17  ;;  %v8148_v17 = vld [vmem:[%s9226_s7 + $0xac] ss:$8 sps:$4 sm:$0xff]  }
 0x3a9   : > { %5733 = vmatpush1.bf16.msra.mxu0 %v8126_v36  ;;  %5874 = vmatprep.subr.bf16.mxu1 %v8136_v35 }
 0x3aa   : > { %5734 = vmatprep.subr.bf16.mxu0 %v8133_v37 }
 0x3ac   : > { %5875 = vmatpush1.bf16.msra.mxu1 %v8134_v29 }
 0x3ad   : > { %5735 = vmatpush1.bf16.msra.mxu0 %v8131_v38  ;;  %5876 = vmatprep.subr.bf16.mxu1 %v8142_v39 }
 0x3ae   : > { %5738 = vmatprep.subr.bf16.mxu0 %v8139_v31 }
 0x3b0   : > { %5877 = vmatpush1.bf16.msra.mxu1 %v8140_v30 }
 0x3b1   : > { %5739 = vmatpush2.bf16.msra.mxu0 %v8137_v42  ;;  %5878 = vmatprep.subr.bf16.mxu1 %v8148_v17 }
 0x3b2   : > { %5740 = vmatprep.subr.bf16.mxu0 %v8145_v15 }
 0x3b4   : > { %5879 = vmatpush1.bf16.msra.mxu1 %v8146_v54 }
 0x3b5   : > { %5741 = vmatpush2.bf16.msra.mxu0 %v8143_v45  ;;  %6057 = vmatprep.subr.bf16.mxu1 %v8154_v14 }
 0x3b6   : > { %5742 = vmatprep.subr.bf16.mxu0 %v8151_v13 }
 0x3b7   : > { %7036 = vmatmul.mubr.msk.bf16.vlgmr.msra.gmra.mxu1 %vm4843_vm6, %v9051_v41  ;;  %v8170_v41 = vld [vmem:[#allocation11 + $0x310] ss:$8 sps:$4 sm:$0xff]  }
 0x3b8   : > { %6058 = vmatpush1.bf16.msra.mxu1 %v8152_v59  ;;  %7067 = vmatprep.mubr.msk.bf16.mxu1 %vm5047_vm7, %v9103_v58  ;;  %v8178_v58 = vld [vmem:[#allocation11 + $0x304] ss:$8 sps:$4 sm:$0xff]   ;;  %v5427_v59 = vld [vmem:[#allocation12 + $0x2] sm:$0x3] }
 0x3b9   : > { %5743 = vmatpush2.bf16.msra.mxu0 %v8149_v8  ;;  %6059 = vmatprep.subr.bf16.mxu1 %v8160_v4  ;;  %v5094_v8 = vld [vmem:[#allocation12] sm:$0x3]  ;;  %v5764_v4 = vld [vmem:[#allocation12 + $0x4] sm:$0x3] }
 0x3ba   : > { %5744 = vmatprep.subr.bf16.mxu0 %v8157_v62 }
 0x3bc   : > { %6060 = vmatpush1.bf16.msra.mxu1 %v8158_v21  ;;  %v5432_v21 = vrot.slane %v5427_v59, %v8798_v18 }
 0x3bd   : > { %5745 = vmatpush2.bf16.msra.mxu0 %v8155_v40  ;;  %6061 = vmatprep.subr.bf16.mxu1 %v8166_v23 }
 0x3be   : > { %5746 = vmatprep.subr.bf16.mxu0 %v8163_v24 }
 0x3c0   : > { %6062 = vmatpush1.bf16.msra.mxu1 %v8164_v56  ;;  %v5099_v56 = vrot.slane %v5094_v8, %v8798_v18 }
 0x3c1   : > { %5747 = vmatpush2.bf16.msra.mxu0 %v8161_v33  ;;  %6063 = vmatprep.subr.bf16.mxu1 %v8172_v6  ;;  %v5436_v6 = vrot.slane %v5427_v59, %v8800_v22 }
 0x3c2   : > { %5748 = vmatprep.subr.bf16.mxu0 %v8169_v27  ;;  %v6101_v27 = vld [vmem:[#allocation12 + $0x6] sm:$0x3] }
 0x3c4   : > { %6064 = vmatpush1.bf16.msra.mxu1 %v8170_v41 }
 0x3c5   : > { %5749 = vmatpush2.bf16.msra.mxu0 %v8167_v43  ;;  %6065 = vmatprep.subr.bf16.mxu1 %v8178_v58  ;;  %v5769_v43 = vrot.slane %v5764_v4, %v8798_v18 }
 0x3c6   : > { %5750 = vmatprep.subr.bf16.mxu0 %v8175_v44  ;;  %v5103_v44 = vrot.slane %v5094_v8, %v8800_v22 }
 0x3c8   : > { %6066 = vmatpush1.bf16.msra.mxu1 %v8176_v46 }
 0x3c9   : > { %5751 = vmatpush2.bf16.msra.mxu0 %v8173_v47  ;;  %6067 = vmatprep.subr.bf16.mxu1 %v8181_v48  ;;  %v5773_v47 = vrot.slane %v5764_v4, %v8800_v22 }
 0x3cc   : > { %5753 = vmatmul.mubr.bf16.vlgmr.msra.gmra.mxu0 %v9098_v32  ;;  %6068 = vmatpush1.bf16.msra.mxu1 %v8179_v49 }
 0x3cd   : > { %6069 = vmatprep.subr.bf16.mxu1 %v8184_v50 }
 0x3d0   : > { %6070 = vmatpush1.bf16.msra.mxu1 %v8182_v53 }
 0x3d1   : > { %6071 = vmatprep.subr.bf16.mxu1 %v8187_v55  ;;  %v6106_v55 = vrot.slane %v6101_v27, %v8798_v18 }
 0x3d4   : > { %6072 = vmatpush1.bf16.msra.mxu1 %v8185_v5 }
 0x3d5   : > { %6075 = vmatprep.subr.bf16.mxu1 %v8190_v20 }
 0x3d8   : > { %6076 = vmatpush2.bf16.msra.mxu1 %v8188_v60 }
 0x3d9   : > { %6077 = vmatprep.subr.bf16.mxu1 %v8193_v51  ;;  %v6110_v51 = vrot.slane %v6101_v27, %v8800_v22  ;;  %v7068_v27 = vld [vmem:[#allocation2] ss:$0 sm:$0xff] }
 0x3dc   : > { %6078 = vmatpush2.bf16.msra.mxu1 %v8191_v34 }
 0x3dd   : > { %6079 = vmatprep.subr.bf16.mxu1 %v8196_v57 }
 0x3e0   : > { %6080 = vmatpush2.bf16.msra.mxu1 %v8194_v63 }
 0x3e1   : > { %6081 = vmatprep.subr.bf16.mxu1 %v8199_v9 }
 0x3e4   : > { %6082 = vmatpush2.bf16.msra.mxu1 %v8197_v0 }
 0x3e5   : > { %6083 = vmatprep.subr.bf16.mxu1 %v8202_v3 }
 0x3e8   : > { %6084 = vmatpush2.bf16.msra.mxu1 %v8200_v2 }
 0x3e9   : > { %6085 = vmatprep.subr.bf16.mxu1 %v8205_v61 }
 0x3ec   : > { %6086 = vmatpush2.bf16.msra.mxu1 %v8203_v7 }
 0x3ed   : > { %6087 = vmatprep.subr.bf16.mxu1 %v8208_v10  ;;  %v6121_v10 = vld [vmem:[#allocation14] sm:$0x3] }
 0x3f0   : > { %6088 = vmatpush2.bf16.msra.mxu1 %v8206_v12 }
 0x3f3   : > { %6090 = vmatmul.mubr.bf16.vlgmr.msra.gmra.mxu1 %v9098_v32 }
 0x41b   : > { %v4888_v52 = vpop.f32.mrf.mxu1 }
 0x41d   : > { %v4890_v16 = vpop.f32.mrf.mxu1 }
 0x41f   : > { %v4892_v1 = vpop.f32.mrf.mxu1 }
 0x421   : > { %v4894_v19 = vpop.f32.mrf.mxu1 }
 0x42b   : > { %v5224_v25 = vpop.f32.mrf.mxu1 }
 0x42d   : > { %v5226_v11 = vpop.f32.mrf.mxu1 }
 0x42f   : > { %v5228_v28 = vpop.f32.mrf.mxu1 }
 0x431   : > { %v5230_v37 = vpop.f32.mrf.mxu1 }
 0x43f   : > { %v5085_v26 = vpop.f32.mrf.mxu0 }
 0x440   : > { %v5086_v24 = vadd.f32 %v5085_v26, %v4888_v52 }
 0x441   : > { %v5087_v36 = vpop.f32.mrf.mxu0 }
 0x442   : > { %v5088_v58 = vadd.f32 %v5087_v36, %v4890_v16  ;;  %v5106_v5 = vadd.f32 %v5099_v56, %v5086_v24 }
 0x443   : > { %v5089_v35 = vpop.f32.mrf.mxu0 }
 0x444   : > { %v5090_v34 = vadd.f32 %v5089_v35, %v4892_v1  ;;  %v5107_v3 = vadd.f32 %v5103_v44, %v5088_v58 }
 0x445   : > { %v5091_v29 = vpop.f32.mrf.mxu0 }
 0x446   : > { %v5092_v57 = vadd.f32 %v5091_v29, %v4894_v19 }
 0x448   : > { %v5109_v1 = vadd.f32 %v5103_v44, %v5092_v57 }
 0x44f   : > { %v5561_v38 = vpop.f32.mrf.mxu0 }
 0x451   : > { %v5563_v31 = vpop.f32.mrf.mxu0 }
 0x453   : > { %v5565_v42 = vpop.f32.mrf.mxu0 }
 0x455   : > { %v5567_v15 = vpop.f32.mrf.mxu0 }
 0x467   : > { %v5417_v39 = vpop.f32.mrf.mxu1 }
 0x468   : > { %v5418_v62 = vadd.f32 %v5417_v39, %v5224_v25  ;;  %v6130_v25 = vrot.slane %v6121_v10, %v8800_v22 }
 0x469   : > { %v5419_v30 = vpop.f32.mrf.mxu1 }
 0x46a   : > { %v5420_v33 = vadd.f32 %v5419_v30, %v5226_v11  ;;  %v5439_v48 = vadd.f32 %v5432_v21, %v5418_v62 }
 0x46b   : > { %v5421_v17 = vpop.f32.mrf.mxu1 }
 0x46c   : > { %v5422_v49 = vadd.f32 %v5421_v17, %v5228_v28  ;;  %v5440_v20 = vadd.f32 %v5436_v6, %v5420_v33  ;;  %v5443_v12 = vmax.f32 %v5106_v5, %v5439_v48 }
 0x46d   : > { %v5423_v32 = vpop.f32.mrf.mxu1 }
 0x46e   : > { %v5424_v60 = vadd.f32 %v5423_v32, %v5230_v37  ;;  %v5441_v52 = vadd.f32 %v5432_v21, %v5422_v49  ;;  %v5444_v26 = vmax.f32 %v5107_v3, %v5440_v20  ;;  %v5108_v37 = vadd.f32 %v5099_v56, %v5090_v34 }
 0x46f   : > { %v6126_v32 = vrot.slane %v6121_v10, %v8798_v18 }
 0x470   : > { %v5442_v11 = vadd.f32 %v5436_v6, %v5424_v60 }
 0x477   : > { %v5898_v54 = vpop.f32.mrf.mxu1 }
 0x479   : > { %v5900_v14 = vpop.f32.mrf.mxu1 }
 0x47b   : > { %v5902_v40 = vpop.f32.mrf.mxu1 }
 0x47d   : > { %v5904_v50 = vpop.f32.mrf.mxu1 }
 0x48c   : > { %v5754_v45 = vpop.f32.mrf.mxu0 }
 0x48d   : > { %v5755_v41 = vadd.f32 %v5754_v45, %v5561_v38 }
 0x48e   : > { %v5756_v13 = vpop.f32.mrf.mxu0 }
 0x48f   : > { %v5757_v46 = vadd.f32 %v5756_v13, %v5563_v31  ;;  %v5776_v63 = vadd.f32 %v5769_v43, %v5755_v41 }
 0x490   : > { %v5758_v23 = vpop.f32.mrf.mxu0 }
 0x491   : > { %v5759_v9 = vadd.f32 %v5758_v23, %v5565_v42  ;;  %v5777_v2 = vadd.f32 %v5773_v47, %v5757_v46  ;;  %v5780_v19 = vmax.f32 %v5443_v12, %v5776_v63  ;;  %v5445_v42 = vmax.f32 %v5108_v37, %v5441_v52 }
 0x492   : > { %v5760_v53 = vpop.f32.mrf.mxu0 }
 0x493   : > { %v5761_v61 = vadd.f32 %v5760_v53, %v5567_v15  ;;  %v5778_v35 = vadd.f32 %v5769_v43, %v5759_v9  ;;  %v5781_v38 = vmax.f32 %v5444_v26, %v5777_v2 }
 0x495   : > { %v5779_v39 = vadd.f32 %v5773_v47, %v5761_v61  ;;  %v5782_v59 = vmax.f32 %v5445_v42, %v5778_v35 }
 0x4b3   : > { %v6091_v0 = vpop.f32.mrf.mxu1 }
 0x4b4   : > { %v6092_v7 = vadd.f32 %v6091_v0, %v5898_v54  ;;  %v5446_v54 = vmax.f32 %v5109_v1, %v5442_v11 }
 0x4b5   : > { %v6093_v16 = vpop.f32.mrf.mxu1 }
 0x4b6   : > { %v6113_v36 = vadd.f32 %v6106_v55, %v6092_v7  ;;  %v6094_v28 = vadd.f32 %v6093_v16, %v5900_v14  ;;  %v5783_v14 = vmax.f32 %v5446_v54, %v5779_v39 }
 0x4b7   : > { %v6095_v29 = vpop.f32.mrf.mxu1 }
 0x4b8   : > { %v6114_v31 = vadd.f32 %v6110_v51, %v6094_v28  ;;  %v6096_v30 = vadd.f32 %v6095_v29, %v5902_v40  ;;  %v6117_v15 = vmax.f32 %v5780_v19, %v6113_v36 }
 0x4b9   : > { %v6097_v17 = vpop.f32.mrf.mxu1 }
 0x4ba   : > { %v6118_v22 = vmax.f32 %v5781_v38, %v6114_v31  ;;  %v6115_v45 = vadd.f32 %v6106_v55, %v6096_v30  ;;  %v6098_v13 = vadd.f32 %v6097_v17, %v5904_v50  ;;  %v6133_v21 = vmul.f32 %v6126_v32, %v6117_v15 }
 0x4bc   : > { %v6116_v8 = vadd.f32 %v6110_v51, %v6098_v13  ;;  %v6134_v4 = vmul.f32 %v6130_v25, %v6118_v22  ;;  %v6119_v62 = vmax.f32 %v5782_v59, %v6115_v45 }
 0x4be   : > { %v6120_v23 = vmax.f32 %v5783_v14, %v6116_v8  ;;  %v6137_v24 = vsel %vm5047_vm7, %v6134_v4, 0.0  ;;  %v6135_v33 = vmul.f32 %v6126_v32, %v6119_v62 }
 0x4bf   : > { %v6138_v40 = vadd.f32 %v6137_v24, %v6133_v21 }
 0x4c0   : > { %v6136_v56 = vmul.f32 %v6130_v25, %v6120_v23 }
 0x4c1   : > { %6139 = vadd.xlane.f32.xlu0 %v6138_v40 }
 0x4c2   : > { %v6141_v18 = vsel %vm5047_vm7, %v6136_v56, 0.0 }
 0x4c3   : > { %v6142_v6 = vadd.f32 %v6141_v18, %v6135_v33 }
 0x4c5   : > { %6143 = vadd.xlane.f32.xlu0 %v6142_v6 }
 0x54a   : > { %v6140_v41 = vpop.xlane.xlu0 %6139 }
 0x54b   : > { %v6152_v43 = vadd.f32 %v7068_v27, %v6140_v41 }
 0x54d   : > { %6154 = vxpose.xlu1.b32.start [1/2] (short) (narrow) %v6152_v43, 8 }
 0x54e   : > { %v6144_v58 = vpop.xlane.xlu0 %6143 }
 0x54f   : > { %v6153_v44 = vadd.f32 %v7068_v27, %v6144_v58 }
 0x551   : > { %6155 = vxpose.xlu1.b32.end [2/2] (short) (narrow) %v6153_v44, 8 }
 0x5c9   : > { %v6170_v46 = vpop.trf.xlu1 }
 0x5ca   : > { %6187 = vst.msk [vmem:[%s507_s14] sm:$0x1] %vm6186_vm8, %v6170_v46 }
 0x5cb   : > { %8419 = shalt.err (!%p8416_p13)
}
 0x5cc   : > { %s8420_s27 = scalar_lea.hbm %s9182_s17, 16  ;;  %s8424_s2 = scalar_lea.hbm %s9230_s11, 32 }
 0x5cd   : > { %p8421_p2 = scmp.ne.s32.totalorder %s9182_s17, %s8420_s27  ;;  %p8425_p10 = scmp.lt.s32.totalorder %s9182_s17, %s9230_s11 }
 0x5ce   : > { %p8426_p11 = scmp.lt.s32.totalorder %s8424_s2, %s8420_s27 }
 0x5cf   : > { %p8422_p8 = pnand %p8421_p2, %p9261_p0 }
 0x5d0   : > { %p8427_p12 = por %p8426_p11, %p8425_p10 }
 0x5d1   : > { %p8423_p4 = pneg %p8422_p8 }
 0x5d3   : > { %p8428_p6 = pnand %p8427_p12, %p8423_p4 }
 0x5d5   : > { %8431 = shalt.err (!%p8428_p6)
}
 0x5d6   : > { %7141 = dma.vmem_to_hbm [thread:$0]  (%p9261_p0), %s6202_s26, 16, %s9182_s17, %s6189_s13  }
 0x5d7 PF: > { %s6213_s14 = sand.u32 1, %s8470_s19   ;;  %p9262_p5 = scmp.ne.s32.totalorder %s9251_s12, 0 }
 0x5d8   : > { %p9263_p7 = scmp.ge.s32.totalorder %s8482_s22, 2  ;;  %s6214_s29 = scalar_lea.sflag [#allocation5], %s6213_s14 }
 0x5da   : > { %p7167_p9 = pnand %p9263_p7, %p9262_p5 }
 0x5dc   : > { %p7168_p1 = pneg %p7167_p9 }
 0x5de   : > { %8465 = dma.done.wait (%p7168_p1), %s6214_s29, 16  }
 0x5df   : > { %8467 = vsyncadd (%p7168_p1), %s6214_s29, 4294967280  ;;  %p29_p3 = scmp.ge.s32.totalorder %s8670_s28, 4   ;;  %s9264_s19 = smov %s8474_s20 }
 0x5e0   : > { %s9265_s20 = smov %s8478_s21  ;;  %s9266_s21 = smov %s8681_s16 }
 0x5e1   : > { %s9267_s22 = smov %s8670_s28  ;;  %31 = sbr.rel (!%p29_p3) target bundleno = 13 (0xd), region = 161 }
 0x5e6   :  { %6218 = vsyncpa [#allocation4], 1 }
 0x5e7   :  { %6220 = vsyncpa [#allocation4 + $0x1], 1 }
 0x5e8   :  { %6221 = vsyncpa [#allocation7], 1 }
 0x5e9   :  { %6222 = vsyncpa [#allocation10], 1 }
 0x5ea   :  { %6223 = vsyncpa [#allocation13], 1 }
 0x5eb   :  { %6224 = vsyncpa [#allocation5], 1 }
 0x5ec   :  { %6226 = vsyncpa [#allocation5 + $0x1], 1 }

</bundles_post_ra>
